<compile_context>
chip_gen: v5e
topology: v5e:2x2
jax: 0.10.0
libtpu: 0.0.40
codegen_flags: <defaults>
</compile_context>

<pallas_src>
import functools

import numpy as np
import jax
import jax.numpy as jnp
from jax.experimental import pallas as pl
from jax.experimental.pallas import tpu as pltpu

NUM_SUMS = 18    # loss terms emitted per sample
NUM_ACC = 17     # scalar accumulators kept in SMEM across bands
OUT_LANES = 128  # lane-dense output row width


# ----------------------------------------------------------------------------
# fused kernel: one (sample, row-band) per grid step
# ----------------------------------------------------------------------------
def _fused_loss_kernel(
    # banded full-res images, (1, C, band*W) blocks
    inp_ref, prd_ref, gt_ref, xo3_ref,
    # whole-image half/quarter-res images, (1, C, N/4) / (1, C, N/16)
    xo2_ref, gt2_ref, xo1_ref, gt1_ref,
    # banded full-res masks, (1, 1, band*W)
    m_ref, rm_ref, mm_ref,
    # whole-image low-res masks
    m2_ref, rm2_ref, m1_ref, rm1_ref,
    # constants: stage-1 weight with disc row appended, biases, later stages
    w1a_ref, b1a_ref, w2_ref, b2_ref, w3_ref, b3_ref,
    # [w_mask, d_bias]
    dwmb_ref,
    # per-band 2x2 avg-pool matrices (band*W, band*W/4), (band*W/4, band*W/16)
    pb1_ref, pb2_ref,
    # per-lane scale factors (loss weights / mean denominators folded in)
    scale_ref,
    # output: (1, 1, OUT_LANES) pre-scaled loss row for this sample
    sums_ref,
    # scratch: gram accumulators + scalar accumulators
    g1_ref, g2_ref, g3_ref, acc_ref,
    *, mask_sigmoid):
  f32 = jnp.float32
  tstep = pl.program_id(1)
  n3 = inp_ref.shape[2]          # band * W
  c1 = w2_ref.shape[1]
  c2 = w3_ref.shape[1]
  c3 = w3_ref.shape[0]

  # ---- per-sample init (band 0): zero accumulators, whole-image low-res msr --
  @pl.when(tstep == 0)
  def _init():
    g1_ref[...] = jnp.zeros_like(g1_ref)
    g2_ref[...] = jnp.zeros_like(g2_ref)
    g3_ref[...] = jnp.zeros_like(g3_ref)
    for k in range(NUM_ACC):
      acc_ref[k] = jnp.float32(0.0)
    xo2 = xo2_ref[0].astype(f32)
    gt2 = gt2_ref[0].astype(f32)
    m2 = m2_ref[0].astype(f32)
    rm2 = rm2_ref[0].astype(f32)
    d2 = xo2 - gt2
    acc_ref[7] = jnp.sum(jnp.abs((1.0 - m2) * d2))
    acc_ref[8] = jnp.sum(jnp.abs((rm2 * m2) * d2))
    xo1 = xo1_ref[0].astype(f32)
    gt1 = gt1_ref[0].astype(f32)
    m1 = m1_ref[0].astype(f32)
    rm1 = rm1_ref[0].astype(f32)
    d1 = xo1 - gt1
    acc_ref[9] = jnp.sum(jnp.abs((1.0 - m1) * d1))
    acc_ref[10] = jnp.sum(jnp.abs((rm1 * m1) * d1))

  # ---- band-resident full-res data (bf16 DMA, f32 compute) ----
  inp = inp_ref[0].astype(f32)
  prd = prd_ref[0].astype(f32)
  gt = gt_ref[0].astype(f32)
  xo3 = xo3_ref[0].astype(f32)
  m = m_ref[0].astype(f32)
  rm = rm_ref[0].astype(f32)
  mmv = mm_ref[0].astype(f32)

  # composites (PasteImage=False path); VMEM-resident only
  out_p = rm * prd + (1.0 - rm) * inp          # blended "output"
  out_c = m * inp + (1.0 - m) * out_p          # output_comp

  # masked L1 partial sums as |mask * (x - y)|
  d_o = out_p - gt
  acc_ref[3] += jnp.sum(jnp.abs((1.0 - m) * d_o))
  acc_ref[4] += jnp.sum(jnp.abs((rm * m) * d_o))
  d3 = xo3 - gt
  acc_ref[5] += jnp.sum(jnp.abs((1.0 - m) * d3))
  acc_ref[6] += jnp.sum(jnp.abs((rm * m) * d3))

  # dice raw accumulators: a, b, c (ratio + batch mean done at finalize/outside)
  sgm = jax.nn.sigmoid(mmv) if mask_sigmoid else mmv
  tgt = 1.0 - m * rm
  acc_ref[11] += jnp.sum(sgm * tgt)
  acc_ref[12] += jnp.sum(sgm * sgm)
  acc_ref[13] += jnp.sum(tgt * tgt)

  # ---- extractor (3 images batched along lanes) with folded discriminator ----
  xcat = jnp.concatenate([out_p, out_c, gt], axis=1)           # (C, 3*n3)
  pre1 = jnp.dot(w1a_ref[...], xcat,
                 preferred_element_type=f32) + b1a_ref[...]     # (C1+1, 3*n3)
  f1 = jnp.maximum(pre1[:c1, :], 0.0)                           # (C1, 3*n3)

  dwmb = dwmb_ref[...]
  dmask = dwmb[:, 0:1] * m + dwmb[:, 1:2]                       # (1, n3)
  d_fake = pre1[c1:c1 + 1, 0:n3] + dmask                        # disc(out_p)
  d_real = pre1[c1:c1 + 1, 2 * n3:3 * n3] + dmask               # disc(gt)
  acc_ref[0] += jnp.sum((d_real - 1.0) ** 2)                    # lsgan D_real
  acc_ref[1] += jnp.sum(d_fake * d_fake)                        # lsgan D_fake
  acc_ref[2] += jnp.sum((d_fake - 1.0) ** 2)                    # lsgan G_fake

  pb1 = pb1_ref[...]
  pb2 = pb2_ref[...]
  w2 = w2_ref[...]
  b2 = b2_ref[...]
  w3 = w3_ref[...]
  b3 = b3_ref[...]

  def pool3(f, n, pmat):
    # per-image 2x2 avg pool of the 3 lane segments with a small band matrix
    return jnp.concatenate(
        [jnp.dot(f[:, i * n:(i + 1) * n], pmat, preferred_element_type=f32)
         for i in range(3)], axis=1)

  q1 = pool3(f1, n3, pb1)                                       # (C1, 3*n3/4)
  f2 = jnp.maximum(jnp.dot(w2, q1, preferred_element_type=f32) + b2, 0.0)
  n2 = n3 // 4
  q2 = pool3(f2, n2, pb2)                                       # (C2, 3*n3/16)
  f3 = jnp.maximum(jnp.dot(w3, q2, preferred_element_type=f32) + b3, 0.0)
  n1 = n2 // 4

  # ---- perceptual partial sums + one stacked gram per scale ----
  for f, n, g_ref, k in ((f1, n3, g1_ref, 14),
                         (f2, n2, g2_ref, 15),
                         (f3, n1, g3_ref, 16)):
    fo, fc, fg = f[:, 0:n], f[:, n:2 * n], f[:, 2 * n:3 * n]
    acc_ref[k] += jnp.sum(jnp.abs(fo - fg)) + jnp.sum(jnp.abs(fc - fg))
    fs = jnp.concatenate([fo, fc, fg], axis=0)                  # (3*Ci, n)
    g_ref[...] += jax.lax.dot_general(fs, fs, (((1,), (1,)), ((), ())),
                                      preferred_element_type=f32)

  # ---- finalize at the last band: style + dice, write lane-dense scaled row --
  @pl.when(tstep == pl.num_programs(1) - 1)
  def _fin():
    def style(g_ref, c):
      g = g_ref[...]
      gg = g[2 * c:3 * c, 2 * c:3 * c]                          # gram(feat_gt)
      return (jnp.sum(jnp.abs(g[0:c, 0:c] - gg))
              + jnp.sum(jnp.abs(g[c:2 * c, c:2 * c] - gg)))
    sty1 = style(g1_ref, c1)
    sty2 = style(g2_ref, c2)
    sty3 = style(g3_ref, c3)
    dice_d = 2.0 * acc_ref[11] / ((acc_ref[12] + 0.001) + (acc_ref[13] + 0.001))
    vals = [acc_ref[0], acc_ref[1], acc_ref[2], acc_ref[3], acc_ref[4],
            acc_ref[5], acc_ref[6], acc_ref[7], acc_ref[8], acc_ref[9],
            acc_ref[10], dice_d, acc_ref[14], acc_ref[15], acc_ref[16],
            sty1, sty2, sty3]
    lane = jax.lax.broadcasted_iota(jnp.int32, (1, OUT_LANES), 1)
    row = jnp.zeros((1, OUT_LANES), f32)
    for idx, v in enumerate(vals):
      row = jnp.where(lane == idx, v, row)
    sums_ref[0] = row * scale_ref[...]


# ----------------------------------------------------------------------------
# glue helpers
# ----------------------------------------------------------------------------
def _pool_matrix(rows, cols):
  """(rows*cols, rows*cols/4) matrix: 2x2 average pooling of one band image."""
  n_in = rows * cols
  n_out = (rows // 2) * (cols // 2)
  p = np.zeros((n_in, n_out), np.float32)
  for r in range(rows):
    for c in range(cols):
      p[r * cols + c, (r // 2) * (cols // 2) + (c // 2)] = 0.25
  return jnp.asarray(p)


def init_params(c_in):
  """Deterministic synthetic discriminator / extractor parameters."""
  k = jax.random.PRNGKey(42)
  k1, k2, k3, k4 = jax.random.split(k, 4)
  return {
      # discriminator: 1x1 conv over concat([img, mask]) -> 1 channel
      "d_w": 0.1 * jax.random.normal(k1, (c_in + 1, 1), jnp.float32),
      "d_b": jnp.zeros((1, 1), jnp.float32),
      # extractor: three 1x1-conv + relu stages with 2x avg-pool between them
      "e_w1": 0.1 * jax.random.normal(k2, (c_in, 8), jnp.float32),
      "e_b1": jnp.zeros((1, 8), jnp.float32),
      "e_w2": 0.1 * jax.random.normal(k3, (8, 16), jnp.float32),
      "e_b2": jnp.zeros((1, 16), jnp.float32),
      "e_w3": 0.1 * jax.random.normal(k4, (16, 32), jnp.float32),
      "e_b3": jnp.zeros((1, 32), jnp.float32),
  }


# ----------------------------------------------------------------------------
# LossWithGAN_STE.forward
# ----------------------------------------------------------------------------
def loss_with_gan_ste_forward(params, input_, mask_gt, x_o1, x_o2, x_o3,
                              output, mm, gt, raw_mask, *,
                              gan_mode="lsgan", paste=False, mask_sigmoid=True,
                              band_rows=None, input_dtype=jnp.bfloat16):
  assert gan_mode == "lsgan", "this port fixes gan_mode='lsgan'"
  assert not paste, "this port fixes PasteImage=False"

  B, C, H, W = input_.shape
  assert H % 4 == 0 and W % 4 == 0
  N3, N2, N1 = H * W, (H // 2) * (W // 2), (H // 4) * (W // 4)
  C1 = params["e_w1"].shape[1]
  C2 = params["e_w2"].shape[1]
  C3 = params["e_w3"].shape[1]

  # row-band tiling: band*W must be a lane-aligned block (or the whole image)
  if band_rows is None:
    band_rows = H
    for cand in (8, 4, 16, 32):
      if cand <= H and H % cand == 0 and (cand * W) % 128 == 0:
        band_rows = cand
        break
  assert band_rows % 4 == 0 and H % band_rows == 0
  assert (band_rows * W) % 128 == 0 or band_rows == H
  T = H // band_rows
  n3b = band_rows * W

  f32c = lambda x: x.astype(jnp.float32)
  img3 = lambda x: x.reshape(x.shape[0], x.shape[1], -1).astype(input_dtype)

  # nearest-neighbour downsamples (== F.interpolate(..., mode='nearest'))
  # TODO(synk): derive these in-kernel from the banded gt/mask/raw_mask once
  # the /2 and /4 band widths are lane-aligned, removing ~30% of input DMA.
  gt2, gt1 = gt[:, :, ::2, ::2], gt[:, :, ::4, ::4]
  m2, m1 = mask_gt[:, :, ::2, ::2], mask_gt[:, :, ::4, ::4]
  rm2, rm1 = raw_mask[:, :, ::2, ::2], raw_mask[:, :, ::4, ::4]

  # weights laid out for the in-kernel (Cout, Cin) @ (Cin, pixels) form; the
  # synthetic discriminator's image part is folded in as one extra stage-1 row
  d_w, d_b = f32c(params["d_w"]), f32c(params["d_b"])
  w1a = jnp.concatenate([f32c(params["e_w1"]).T, d_w[:C, :].T], axis=0)
  b1a = jnp.concatenate([f32c(params["e_b1"]).T,
                         jnp.zeros((1, 1), jnp.float32)], axis=0)
  dwmb = jnp.concatenate([d_w[C:C + 1, :], d_b], axis=1)            # (1, 2)
  w2, b2 = f32c(params["e_w2"]).T, f32c(params["e_b2"]).T
  w3, b3 = f32c(params["e_w3"]).T, f32c(params["e_b3"]).T
  pb1 = _pool_matrix(band_rows, W)
  pb2 = _pool_matrix(band_rows // 2, W // 2)

  # loss weights and mean denominators, folded into one per-lane scale vector
  sc = np.zeros((1, OUT_LANES), np.float32)
  sc[0, 0] = 1.0 / (B * N3)                      # D_real   (MSE vs ones)
  sc[0, 1] = 1.0 / (B * N3)                      # D_fake   (MSE vs zeros)
  sc[0, 2] = 0.1 / (B * N3)                      # G_fake   (0.1 * MSE vs ones)
  sc[0, 3] = 10.0 / (B * C * N3)                 # holeLoss
  sc[0, 4] = 2.0 / (B * C * N3)                  # validAreaLoss
  sc[0, 5] = 8.0 / (B * C * N3)                  # msr: (1-mask)*x_o3
  sc[0, 6] = 0.8 / (B * C * N3)                  # msr: rm*mask*x_o3
  sc[0, 7] = 6.0 / (B * C * N2)                  # msr: (1-mask_b)*x_o2
  sc[0, 8] = 1.0 / (B * C * N2)                  # msr: rm_b*mask_b*x_o2
  sc[0, 9] = 5.0 / (B * C * N1)                  # msr: (1-mask_a)*x_o1
  sc[0, 10] = 0.8 / (B * C * N1)                 # msr: rm_a*mask_a*x_o1
  sc[0, 11] = 1.0 / B                            # dice mean(d)
  sc[0, 12] = 0.01 / (B * C1 * N3)               # prc scale 1
  sc[0, 13] = 0.01 / (B * C2 * N2)               # prc scale 2
  sc[0, 14] = 0.01 / (B * C3 * N1)               # prc scale 3
  sc[0, 15] = 120.0 / (B * C1 * C1 * C1 * N3)    # style scale 1 (incl gram norm)
  sc[0, 16] = 120.0 / (B * C2 * C2 * C2 * N2)    # style scale 2
  sc[0, 17] = 120.0 / (B * C3 * C3 * C3 * N1)    # style scale 3
  scale = jnp.asarray(sc)

  def band_spec(c, n):
    return pl.BlockSpec((1, c, n), lambda b, t: (b, 0, t))

  def whole_spec(c, n):
    return pl.BlockSpec((1, c, n), lambda b, t: (b, 0, 0))

  def const_spec(shape):
    return pl.BlockSpec(shape, lambda b, t: (0, 0))

  in_specs = [
      band_spec(C, n3b), band_spec(C, n3b), band_spec(C, n3b), band_spec(C, n3b),
      whole_spec(C, N2), whole_spec(C, N2),
      whole_spec(C, N1), whole_spec(C, N1),
      band_spec(1, n3b), band_spec(1, n3b), band_spec(1, n3b),
      whole_spec(1, N2), whole_spec(1, N2),
      whole_spec(1, N1), whole_spec(1, N1),
      const_spec((C1 + 1, C)), const_spec((C1 + 1, 1)),
      const_spec((C2, C1)), const_spec((C2, 1)),
      const_spec((C3, C2)), const_spec((C3, 1)),
      const_spec((1, 2)),
      const_spec(pb1.shape), const_spec(pb2.shape),
      const_spec((1, OUT_LANES)),
  ]

  part = pl.pallas_call(
      functools.partial(_fused_loss_kernel, mask_sigmoid=bool(mask_sigmoid)),
      grid=(B, T),
      in_specs=in_specs,
      out_specs=pl.BlockSpec((1, 1, OUT_LANES), lambda b, t: (b, 0, 0)),
      out_shape=jax.ShapeDtypeStruct((B, 1, OUT_LANES), jnp.float32),
      scratch_shapes=[
          pltpu.VMEM((3 * C1, 3 * C1), jnp.float32),
          pltpu.VMEM((3 * C2, 3 * C2), jnp.float32),
          pltpu.VMEM((3 * C3, 3 * C3), jnp.float32),
          pltpu.SMEM((NUM_ACC,), jnp.float32),
      ],
      compiler_params=pltpu.CompilerParams(
          dimension_semantics=("parallel", "arbitrary"),
          vmem_limit_bytes=32 * 1024 * 1024),
  )(
      img3(input_), img3(output), img3(gt), img3(x_o3),
      img3(x_o2), img3(gt2), img3(x_o1), img3(gt1),
      img3(mask_gt), img3(raw_mask), img3(mm),
      img3(m2), img3(rm2), img3(m1), img3(rm1),
      w1a, b1a, w2, b2, w3, b3, dwmb, pb1, pb2, scale,
  )

  # tiny scalar glue: sum the B pre-scaled rows and combine lanes
  s = jnp.sum(part, axis=(0, 1))                  # (OUT_LANES,)

  D_real = s[0]
  D_fake = s[1]
  D_loss = D_real + D_fake
  # TODO(synk): D_loss.backward() + D_optimizer.step() (in-place discriminator
  # update before the G pass) has no forward-value equivalent; G_fake uses the
  # pre-step discriminator weights (output.detach() vs output only matters for
  # autodiff, so the fake discriminator map is computed once).
  G_fake = s[2]
  holeLoss = s[3]
  validAreaLoss = s[4]
  msrloss = s[5] + s[6] + s[7] + s[8] + s[9] + s[10]
  mask_loss = 1.0 - s[11]
  prcLoss = s[12] + s[13] + s[14]
  styleLoss = s[15] + s[16] + s[17]

  GLoss = (msrloss + holeLoss + validAreaLoss + prcLoss + styleLoss
           + G_fake + 1.0 * mask_loss)
  return (GLoss, D_real, D_fake, D_loss, G_fake, holeLoss, validAreaLoss,
          msrloss, prcLoss, styleLoss, mask_loss)


# ----------------------------------------------------------------------------
# main
# ----------------------------------------------------------------------------
if __name__ == "__main__":
  B, C, H, W = 2, 4, 16, 16
  key = jax.random.PRNGKey(0)
  ks = jax.random.split(key, 9)

  input_ = jax.random.uniform(ks[0], (B, C, H, W), jnp.float32)
  mask_gt = (jax.random.uniform(ks[1], (B, 1, H, W)) > 0.5).astype(jnp.float32)
  x_o1 = jax.random.uniform(ks[2], (B, C, H // 4, W // 4), jnp.float32)
  x_o2 = jax.random.uniform(ks[3], (B, C, H // 2, W // 2), jnp.float32)
  x_o3 = jax.random.uniform(ks[4], (B, C, H, W), jnp.float32)
  output = jax.random.uniform(ks[5], (B, C, H, W), jnp.float32)
  mm = jax.random.normal(ks[6], (B, 1, H, W), jnp.float32)
  gt = jax.random.uniform(ks[7], (B, C, H, W), jnp.float32)
  raw_mask = (jax.random.uniform(ks[8], (B, 1, H, W)) > 0.5).astype(jnp.float32)

  params = init_params(C)

  fwd = jax.jit(functools.partial(
      loss_with_gan_ste_forward,
      gan_mode="lsgan", paste=False, mask_sigmoid=True))

  results = fwd(params, input_, mask_gt, x_o1, x_o2, x_o3,
                output, mm, gt, raw_mask)
  results = jax.block_until_ready(results)
  print("KERNEL_OK")
</pallas_src>

<mosaic_0001>
module attributes {stable_mosaic.version = 11 : i64} {
  func.func @_fused_loss_kernel(%arg0: i32, %arg1: i32, %arg2: memref<1x4x128xbf16, #tpu.memory_space<vmem>>, %arg3: memref<1x4x128xbf16, #tpu.memory_space<vmem>>, %arg4: memref<1x4x128xbf16, #tpu.memory_space<vmem>>, %arg5: memref<1x4x128xbf16, #tpu.memory_space<vmem>>, %arg6: memref<1x4x64xbf16, #tpu.memory_space<vmem>>, %arg7: memref<1x4x64xbf16, #tpu.memory_space<vmem>>, %arg8: memref<1x4x16xbf16, #tpu.memory_space<vmem>>, %arg9: memref<1x4x16xbf16, #tpu.memory_space<vmem>>, %arg10: memref<1x1x128xbf16, #tpu.memory_space<vmem>>, %arg11: memref<1x1x128xbf16, #tpu.memory_space<vmem>>, %arg12: memref<1x1x128xbf16, #tpu.memory_space<vmem>>, %arg13: memref<1x1x64xbf16, #tpu.memory_space<vmem>>, %arg14: memref<1x1x64xbf16, #tpu.memory_space<vmem>>, %arg15: memref<1x1x16xbf16, #tpu.memory_space<vmem>>, %arg16: memref<1x1x16xbf16, #tpu.memory_space<vmem>>, %arg17: memref<9x4xf32, #tpu.memory_space<vmem>>, %arg18: memref<9x1xf32, #tpu.memory_space<vmem>>, %arg19: memref<16x8xf32, #tpu.memory_space<vmem>>, %arg20: memref<16x1xf32, #tpu.memory_space<vmem>>, %arg21: memref<32x16xf32, #tpu.memory_space<vmem>>, %arg22: memref<32x1xf32, #tpu.memory_space<vmem>>, %arg23: memref<1x2xf32, #tpu.memory_space<vmem>>, %arg24: memref<128x32xf32, #tpu.memory_space<vmem>>, %arg25: memref<32x8xf32, #tpu.memory_space<vmem>>, %arg26: memref<1x128xf32, #tpu.memory_space<vmem>>, %arg27: memref<1x1x128xf32, #tpu.memory_space<vmem>>, %arg28: memref<24x24xf32, #tpu.memory_space<vmem>>, %arg29: memref<48x48xf32, #tpu.memory_space<vmem>>, %arg30: memref<96x96xf32, #tpu.memory_space<vmem>>, %arg31: memref<17xf32, #tpu.memory_space<smem>>) attributes {dimension_semantics = [#tpu.dimension_semantics<parallel>, #tpu.dimension_semantics<arbitrary>], iteration_bounds = array<i64: 2, 2>, scalar_prefetch = 0 : i64, scratch_operands = 4 : i64, tpu.core_type = #tpu.core_type<tc>, window_params = [{transform_indices = @transform_0, window_bounds = array<i64: 1, 4, 128>}, {transform_indices = @transform_1, window_bounds = array<i64: 1, 4, 128>}, {transform_indices = @transform_2, window_bounds = array<i64: 1, 4, 128>}, {transform_indices = @transform_3, window_bounds = array<i64: 1, 4, 128>}, {transform_indices = @transform_4, window_bounds = array<i64: 1, 4, 64>}, {transform_indices = @transform_5, window_bounds = array<i64: 1, 4, 64>}, {transform_indices = @transform_6, window_bounds = array<i64: 1, 4, 16>}, {transform_indices = @transform_7, window_bounds = array<i64: 1, 4, 16>}, {transform_indices = @transform_8, window_bounds = array<i64: 1, 1, 128>}, {transform_indices = @transform_9, window_bounds = array<i64: 1, 1, 128>}, {transform_indices = @transform_10, window_bounds = array<i64: 1, 1, 128>}, {transform_indices = @transform_11, window_bounds = array<i64: 1, 1, 64>}, {transform_indices = @transform_12, window_bounds = array<i64: 1, 1, 64>}, {transform_indices = @transform_13, window_bounds = array<i64: 1, 1, 16>}, {transform_indices = @transform_14, window_bounds = array<i64: 1, 1, 16>}, {pipeline_mode = #tpu.pipeline_mode<synchronous>, transform_indices = @transform_15, window_bounds = array<i64: 9, 4>}, {pipeline_mode = #tpu.pipeline_mode<synchronous>, transform_indices = @transform_16, window_bounds = array<i64: 9, 1>}, {pipeline_mode = #tpu.pipeline_mode<synchronous>, transform_indices = @transform_17, window_bounds = array<i64: 16, 8>}, {pipeline_mode = #tpu.pipeline_mode<synchronous>, transform_indices = @transform_18, window_bounds = array<i64: 16, 1>}, {pipeline_mode = #tpu.pipeline_mode<synchronous>, transform_indices = @transform_19, window_bounds = array<i64: 32, 16>}, {pipeline_mode = #tpu.pipeline_mode<synchronous>, transform_indices = @transform_20, window_bounds = array<i64: 32, 1>}, {pipeline_mode = #tpu.pipeline_mode<synchronous>, transform_indices = @transform_21, window_bounds = array<i64: 1, 2>}, {pipeline_mode = #tpu.pipeline_mode<synchronous>, transform_indices = @transform_22, window_bounds = array<i64: 128, 32>}, {pipeline_mode = #tpu.pipeline_mode<synchronous>, transform_indices = @transform_23, window_bounds = array<i64: 32, 8>}, {pipeline_mode = #tpu.pipeline_mode<synchronous>, transform_indices = @transform_24, window_bounds = array<i64: 1, 128>}, {transform_indices = @transform_25, window_bounds = array<i64: 1, 1, 128>}]} {
    %c0_i32 = arith.constant 0 : i32
    %0 = arith.cmpi eq, %arg1, %c0_i32 : i32
    %1 = arith.extui %0 : i1 to i32
    %c0_i32_0 = arith.constant 0 : i32
    %2 = arith.cmpi ne, %1, %c0_i32_0 : i32
    scf.if %2 {
      %cst_104 = arith.constant 0.000000e+00 : f32
      %271 = vector.broadcast %cst_104 : f32 to vector<24x24xf32>
      %c0_105 = arith.constant 0 : index
      %c0_106 = arith.constant 0 : index
      %272 = vector.load %arg28[%c0_105, %c0_106] : memref<24x24xf32, #tpu.memory_space<vmem>>, vector<24x24xf32>
      tpu.vector_store %arg28[%c0_105, %c0_106], %271 {strides = array<i32>} : memref<24x24xf32, #tpu.memory_space<vmem>>, vector<24x24xf32>,
      %cst_107 = arith.constant 0.000000e+00 : f32
      %273 = vector.broadcast %cst_107 : f32 to vector<48x48xf32>
      %c0_108 = arith.constant 0 : index
      %c0_109 = arith.constant 0 : index
      %274 = vector.load %arg29[%c0_108, %c0_109] : memref<48x48xf32, #tpu.memory_space<vmem>>, vector<48x48xf32>
      tpu.vector_store %arg29[%c0_108, %c0_109], %273 {strides = array<i32>} : memref<48x48xf32, #tpu.memory_space<vmem>>, vector<48x48xf32>,
      %cst_110 = arith.constant 0.000000e+00 : f32
      %275 = vector.broadcast %cst_110 : f32 to vector<96x96xf32>
      %c0_111 = arith.constant 0 : index
      %c0_112 = arith.constant 0 : index
      %276 = vector.load %arg30[%c0_111, %c0_112] : memref<96x96xf32, #tpu.memory_space<vmem>>, vector<96x96xf32>
      tpu.vector_store %arg30[%c0_111, %c0_112], %275 {strides = array<i32>} : memref<96x96xf32, #tpu.memory_space<vmem>>, vector<96x96xf32>,
      %cst_113 = arith.constant 0.000000e+00 : f32
      %c0_114 = arith.constant 0 : index
      %277 = memref.load %arg31[%c0_114] : memref<17xf32, #tpu.memory_space<smem>>
      memref.store %cst_113, %arg31[%c0_114] : memref<17xf32, #tpu.memory_space<smem>>
      %cst_115 = arith.constant 0.000000e+00 : f32
      %c1_116 = arith.constant 1 : index
      %278 = memref.load %arg31[%c1_116] : memref<17xf32, #tpu.memory_space<smem>>
      memref.store %cst_115, %arg31[%c1_116] : memref<17xf32, #tpu.memory_space<smem>>
      %cst_117 = arith.constant 0.000000e+00 : f32
      %c2_118 = arith.constant 2 : index
      %279 = memref.load %arg31[%c2_118] : memref<17xf32, #tpu.memory_space<smem>>
      memref.store %cst_117, %arg31[%c2_118] : memref<17xf32, #tpu.memory_space<smem>>
      %cst_119 = arith.constant 0.000000e+00 : f32
      %c3_120 = arith.constant 3 : index
      %280 = memref.load %arg31[%c3_120] : memref<17xf32, #tpu.memory_space<smem>>
      memref.store %cst_119, %arg31[%c3_120] : memref<17xf32, #tpu.memory_space<smem>>
      %cst_121 = arith.constant 0.000000e+00 : f32
      %c4_122 = arith.constant 4 : index
      %281 = memref.load %arg31[%c4_122] : memref<17xf32, #tpu.memory_space<smem>>
      memref.store %cst_121, %arg31[%c4_122] : memref<17xf32, #tpu.memory_space<smem>>
      %cst_123 = arith.constant 0.000000e+00 : f32
      %c5_124 = arith.constant 5 : index
      %282 = memref.load %arg31[%c5_124] : memref<17xf32, #tpu.memory_space<smem>>
      memref.store %cst_123, %arg31[%c5_124] : memref<17xf32, #tpu.memory_space<smem>>
      %cst_125 = arith.constant 0.000000e+00 : f32
      %c6_126 = arith.constant 6 : index
      %283 = memref.load %arg31[%c6_126] : memref<17xf32, #tpu.memory_space<smem>>
      memref.store %cst_125, %arg31[%c6_126] : memref<17xf32, #tpu.memory_space<smem>>
      %cst_127 = arith.constant 0.000000e+00 : f32
      %c7 = arith.constant 7 : index
      %284 = memref.load %arg31[%c7] : memref<17xf32, #tpu.memory_space<smem>>
      memref.store %cst_127, %arg31[%c7] : memref<17xf32, #tpu.memory_space<smem>>
      %cst_128 = arith.constant 0.000000e+00 : f32
      %c8 = arith.constant 8 : index
      %285 = memref.load %arg31[%c8] : memref<17xf32, #tpu.memory_space<smem>>
      memref.store %cst_128, %arg31[%c8] : memref<17xf32, #tpu.memory_space<smem>>
      %cst_129 = arith.constant 0.000000e+00 : f32
      %c9 = arith.constant 9 : index
      %286 = memref.load %arg31[%c9] : memref<17xf32, #tpu.memory_space<smem>>
      memref.store %cst_129, %arg31[%c9] : memref<17xf32, #tpu.memory_space<smem>>
      %cst_130 = arith.constant 0.000000e+00 : f32
      %c10 = arith.constant 10 : index
      %287 = memref.load %arg31[%c10] : memref<17xf32, #tpu.memory_space<smem>>
      memref.store %cst_130, %arg31[%c10] : memref<17xf32, #tpu.memory_space<smem>>
      %cst_131 = arith.constant 0.000000e+00 : f32
      %c11_132 = arith.constant 11 : index
      %288 = memref.load %arg31[%c11_132] : memref<17xf32, #tpu.memory_space<smem>>
      memref.store %cst_131, %arg31[%c11_132] : memref<17xf32, #tpu.memory_space<smem>>
      %cst_133 = arith.constant 0.000000e+00 : f32
      %c12_134 = arith.constant 12 : index
      %289 = memref.load %arg31[%c12_134] : memref<17xf32, #tpu.memory_space<smem>>
      memref.store %cst_133, %arg31[%c12_134] : memref<17xf32, #tpu.memory_space<smem>>
      %cst_135 = arith.constant 0.000000e+00 : f32
      %c13_136 = arith.constant 13 : index
      %290 = memref.load %arg31[%c13_136] : memref<17xf32, #tpu.memory_space<smem>>
      memref.store %cst_135, %arg31[%c13_136] : memref<17xf32, #tpu.memory_space<smem>>
      %cst_137 = arith.constant 0.000000e+00 : f32
      %c14_138 = arith.constant 14 : index
      %291 = memref.load %arg31[%c14_138] : memref<17xf32, #tpu.memory_space<smem>>
      memref.store %cst_137, %arg31[%c14_138] : memref<17xf32, #tpu.memory_space<smem>>
      %cst_139 = arith.constant 0.000000e+00 : f32
      %c15_140 = arith.constant 15 : index
      %292 = memref.load %arg31[%c15_140] : memref<17xf32, #tpu.memory_space<smem>>
      memref.store %cst_139, %arg31[%c15_140] : memref<17xf32, #tpu.memory_space<smem>>
      %cst_141 = arith.constant 0.000000e+00 : f32
      %c16_142 = arith.constant 16 : index
      %293 = memref.load %arg31[%c16_142] : memref<17xf32, #tpu.memory_space<smem>>
      memref.store %cst_141, %arg31[%c16_142] : memref<17xf32, #tpu.memory_space<smem>>
      %c0_143 = arith.constant 0 : index
      %c0_144 = arith.constant 0 : index
      %c0_145 = arith.constant 0 : index
      %294 = vector.load %arg6[%c0_143, %c0_144, %c0_145] : memref<1x4x64xbf16, #tpu.memory_space<vmem>>, vector<1x4x64xbf16>
      %295 = vector.shape_cast %294 : vector<1x4x64xbf16> to vector<4x64xbf16>
      %296 = arith.extf %295 : vector<4x64xbf16> to vector<4x64xf32>
      %c0_146 = arith.constant 0 : index
      %c0_147 = arith.constant 0 : index
      %c0_148 = arith.constant 0 : index
      %297 = vector.load %arg7[%c0_146, %c0_147, %c0_148] : memref<1x4x64xbf16, #tpu.memory_space<vmem>>, vector<1x4x64xbf16>
      %298 = vector.shape_cast %297 : vector<1x4x64xbf16> to vector<4x64xbf16>
      %299 = arith.extf %298 : vector<4x64xbf16> to vector<4x64xf32>
      %c0_149 = arith.constant 0 : index
      %c0_150 = arith.constant 0 : index
      %c0_151 = arith.constant 0 : index
      %300 = vector.load %arg13[%c0_149, %c0_150, %c0_151] : memref<1x1x64xbf16, #tpu.memory_space<vmem>>, vector<1x1x64xbf16>
      %301 = vector.shape_cast %300 : vector<1x1x64xbf16> to vector<1x64xbf16>
      %302 = arith.extf %301 : vector<1x64xbf16> to vector<1x64xf32>
      %c0_152 = arith.constant 0 : index
      %c0_153 = arith.constant 0 : index
      %c0_154 = arith.constant 0 : index
      %303 = vector.load %arg14[%c0_152, %c0_153, %c0_154] : memref<1x1x64xbf16, #tpu.memory_space<vmem>>, vector<1x1x64xbf16>
      %304 = vector.shape_cast %303 : vector<1x1x64xbf16> to vector<1x64xbf16>
      %305 = arith.extf %304 : vector<1x64xbf16> to vector<1x64xf32>
      %306 = arith.subf %296, %299 : vector<4x64xf32>
      %cst_155 = arith.constant 1.000000e+00 : f32
      %307 = vector.broadcast %cst_155 : f32 to vector<1x64xf32>
      %308 = arith.subf %307, %302 : vector<1x64xf32>
      %309 = vector.broadcast %308 : vector<1x64xf32> to vector<4x64xf32>
      %310 = arith.mulf %309, %306 : vector<4x64xf32>
      %311 = math.absf %310 : vector<4x64xf32>
      %312 = vector.shape_cast %311 : vector<4x64xf32> to vector<1x4x64xf32>
      %cst_156 = arith.constant dense<0.000000e+00> : vector<1xf32>
      %313 = vector.multi_reduction <add>, %312, %cst_156 [1, 2] : vector<1x4x64xf32> to vector<1xf32>
      %314 = vector.shape_cast %313 : vector<1xf32> to vector<1x1x1xf32>
      %315 = vector.extract %314[0, 0, 0] : f32 from vector<1x1x1xf32>
      %c7_157 = arith.constant 7 : index
      %316 = memref.load %arg31[%c7_157] : memref<17xf32, #tpu.memory_space<smem>>
      memref.store %315, %arg31[%c7_157] : memref<17xf32, #tpu.memory_space<smem>>
      %317 = arith.mulf %305, %302 : vector<1x64xf32>
      %318 = vector.broadcast %317 : vector<1x64xf32> to vector<4x64xf32>
      %319 = arith.mulf %318, %306 : vector<4x64xf32>
      %320 = math.absf %319 : vector<4x64xf32>
      %321 = vector.shape_cast %320 : vector<4x64xf32> to vector<1x4x64xf32>
      %cst_158 = arith.constant dense<0.000000e+00> : vector<1xf32>
      %322 = vector.multi_reduction <add>, %321, %cst_158 [1, 2] : vector<1x4x64xf32> to vector<1xf32>
      %323 = vector.shape_cast %322 : vector<1xf32> to vector<1x1x1xf32>
      %324 = vector.extract %323[0, 0, 0] : f32 from vector<1x1x1xf32>
      %c8_159 = arith.constant 8 : index
      %325 = memref.load %arg31[%c8_159] : memref<17xf32, #tpu.memory_space<smem>>
      memref.store %324, %arg31[%c8_159] : memref<17xf32, #tpu.memory_space<smem>>
      %c0_160 = arith.constant 0 : index
      %c0_161 = arith.constant 0 : index
      %c0_162 = arith.constant 0 : index
      %326 = vector.load %arg8[%c0_160, %c0_161, %c0_162] : memref<1x4x16xbf16, #tpu.memory_space<vmem>>, vector<1x4x16xbf16>
      %327 = vector.shape_cast %326 : vector<1x4x16xbf16> to vector<4x16xbf16>
      %328 = arith.extf %327 : vector<4x16xbf16> to vector<4x16xf32>
      %c0_163 = arith.constant 0 : index
      %c0_164 = arith.constant 0 : index
      %c0_165 = arith.constant 0 : index
      %329 = vector.load %arg9[%c0_163, %c0_164, %c0_165] : memref<1x4x16xbf16, #tpu.memory_space<vmem>>, vector<1x4x16xbf16>
      %330 = vector.shape_cast %329 : vector<1x4x16xbf16> to vector<4x16xbf16>
      %331 = arith.extf %330 : vector<4x16xbf16> to vector<4x16xf32>
      %c0_166 = arith.constant 0 : index
      %c0_167 = arith.constant 0 : index
      %c0_168 = arith.constant 0 : index
      %332 = vector.load %arg15[%c0_166, %c0_167, %c0_168] : memref<1x1x16xbf16, #tpu.memory_space<vmem>>, vector<1x1x16xbf16>
      %333 = vector.shape_cast %332 : vector<1x1x16xbf16> to vector<1x16xbf16>
      %334 = arith.extf %333 : vector<1x16xbf16> to vector<1x16xf32>
      %c0_169 = arith.constant 0 : index
      %c0_170 = arith.constant 0 : index
      %c0_171 = arith.constant 0 : index
      %335 = vector.load %arg16[%c0_169, %c0_170, %c0_171] : memref<1x1x16xbf16, #tpu.memory_space<vmem>>, vector<1x1x16xbf16>
      %336 = vector.shape_cast %335 : vector<1x1x16xbf16> to vector<1x16xbf16>
      %337 = arith.extf %336 : vector<1x16xbf16> to vector<1x16xf32>
      %338 = arith.subf %328, %331 : vector<4x16xf32>
      %cst_172 = arith.constant 1.000000e+00 : f32
      %339 = vector.broadcast %cst_172 : f32 to vector<1x16xf32>
      %340 = arith.subf %339, %334 : vector<1x16xf32>
      %341 = vector.broadcast %340 : vector<1x16xf32> to vector<4x16xf32>
      %342 = arith.mulf %341, %338 : vector<4x16xf32>
      %343 = math.absf %342 : vector<4x16xf32>
      %344 = vector.shape_cast %343 : vector<4x16xf32> to vector<1x4x16xf32>
      %cst_173 = arith.constant dense<0.000000e+00> : vector<1xf32>
      %345 = vector.multi_reduction <add>, %344, %cst_173 [1, 2] : vector<1x4x16xf32> to vector<1xf32>
      %346 = vector.shape_cast %345 : vector<1xf32> to vector<1x1x1xf32>
      %347 = vector.extract %346[0, 0, 0] : f32 from vector<1x1x1xf32>
      %c9_174 = arith.constant 9 : index
      %348 = memref.load %arg31[%c9_174] : memref<17xf32, #tpu.memory_space<smem>>
      memref.store %347, %arg31[%c9_174] : memref<17xf32, #tpu.memory_space<smem>>
      %349 = arith.mulf %337, %334 : vector<1x16xf32>
      %350 = vector.broadcast %349 : vector<1x16xf32> to vector<4x16xf32>
      %351 = arith.mulf %350, %338 : vector<4x16xf32>
      %352 = math.absf %351 : vector<4x16xf32>
      %353 = vector.shape_cast %352 : vector<4x16xf32> to vector<1x4x16xf32>
      %cst_175 = arith.constant dense<0.000000e+00> : vector<1xf32>
      %354 = vector.multi_reduction <add>, %353, %cst_175 [1, 2] : vector<1x4x16xf32> to vector<1xf32>
      %355 = vector.shape_cast %354 : vector<1xf32> to vector<1x1x1xf32>
      %356 = vector.extract %355[0, 0, 0] : f32 from vector<1x1x1xf32>
      %c10_176 = arith.constant 10 : index
      %357 = memref.load %arg31[%c10_176] : memref<17xf32, #tpu.memory_space<smem>>
      memref.store %356, %arg31[%c10_176] : memref<17xf32, #tpu.memory_space<smem>>
    } else {
    }
    %c0 = arith.constant 0 : index
    %c0_1 = arith.constant 0 : index
    %c0_2 = arith.constant 0 : index
    %3 = vector.load %arg2[%c0, %c0_1, %c0_2] : memref<1x4x128xbf16, #tpu.memory_space<vmem>>, vector<1x4x128xbf16>
    %4 = vector.shape_cast %3 : vector<1x4x128xbf16> to vector<4x128xbf16>
    %5 = arith.extf %4 : vector<4x128xbf16> to vector<4x128xf32>
    %c0_3 = arith.constant 0 : index
    %c0_4 = arith.constant 0 : index
    %c0_5 = arith.constant 0 : index
    %6 = vector.load %arg3[%c0_3, %c0_4, %c0_5] : memref<1x4x128xbf16, #tpu.memory_space<vmem>>, vector<1x4x128xbf16>
    %7 = vector.shape_cast %6 : vector<1x4x128xbf16> to vector<4x128xbf16>
    %8 = arith.extf %7 : vector<4x128xbf16> to vector<4x128xf32>
    %c0_6 = arith.constant 0 : index
    %c0_7 = arith.constant 0 : index
    %c0_8 = arith.constant 0 : index
    %9 = vector.load %arg4[%c0_6, %c0_7, %c0_8] : memref<1x4x128xbf16, #tpu.memory_space<vmem>>, vector<1x4x128xbf16>
    %10 = vector.shape_cast %9 : vector<1x4x128xbf16> to vector<4x128xbf16>
    %11 = arith.extf %10 : vector<4x128xbf16> to vector<4x128xf32>
    %c0_9 = arith.constant 0 : index
    %c0_10 = arith.constant 0 : index
    %c0_11 = arith.constant 0 : index
    %12 = vector.load %arg5[%c0_9, %c0_10, %c0_11] : memref<1x4x128xbf16, #tpu.memory_space<vmem>>, vector<1x4x128xbf16>
    %13 = vector.shape_cast %12 : vector<1x4x128xbf16> to vector<4x128xbf16>
    %14 = arith.extf %13 : vector<4x128xbf16> to vector<4x128xf32>
    %c0_12 = arith.constant 0 : index
    %c0_13 = arith.constant 0 : index
    %c0_14 = arith.constant 0 : index
    %15 = vector.load %arg10[%c0_12, %c0_13, %c0_14] : memref<1x1x128xbf16, #tpu.memory_space<vmem>>, vector<1x1x128xbf16>
    %16 = vector.shape_cast %15 : vector<1x1x128xbf16> to vector<1x128xbf16>
    %17 = arith.extf %16 : vector<1x128xbf16> to vector<1x128xf32>
    %c0_15 = arith.constant 0 : index
    %c0_16 = arith.constant 0 : index
    %c0_17 = arith.constant 0 : index
    %18 = vector.load %arg11[%c0_15, %c0_16, %c0_17] : memref<1x1x128xbf16, #tpu.memory_space<vmem>>, vector<1x1x128xbf16>
    %19 = vector.shape_cast %18 : vector<1x1x128xbf16> to vector<1x128xbf16>
    %20 = arith.extf %19 : vector<1x128xbf16> to vector<1x128xf32>
    %c0_18 = arith.constant 0 : index
    %c0_19 = arith.constant 0 : index
    %c0_20 = arith.constant 0 : index
    %21 = vector.load %arg12[%c0_18, %c0_19, %c0_20] : memref<1x1x128xbf16, #tpu.memory_space<vmem>>, vector<1x1x128xbf16>
    %22 = vector.shape_cast %21 : vector<1x1x128xbf16> to vector<1x128xbf16>
    %23 = arith.extf %22 : vector<1x128xbf16> to vector<1x128xf32>
    %24 = vector.broadcast %20 : vector<1x128xf32> to vector<4x128xf32>
    %25 = arith.mulf %24, %8 : vector<4x128xf32>
    %cst = arith.constant 1.000000e+00 : f32
    %26 = vector.broadcast %cst : f32 to vector<1x128xf32>
    %27 = arith.subf %26, %20 : vector<1x128xf32>
    %28 = vector.broadcast %27 : vector<1x128xf32> to vector<4x128xf32>
    %29 = arith.mulf %28, %5 : vector<4x128xf32>
    %30 = arith.addf %25, %29 : vector<4x128xf32>
    %31 = vector.broadcast %17 : vector<1x128xf32> to vector<4x128xf32>
    %32 = arith.mulf %31, %5 : vector<4x128xf32>
    %cst_21 = arith.constant 1.000000e+00 : f32
    %33 = vector.broadcast %cst_21 : f32 to vector<1x128xf32>
    %34 = arith.subf %33, %17 : vector<1x128xf32>
    %35 = vector.broadcast %34 : vector<1x128xf32> to vector<4x128xf32>
    %36 = arith.mulf %35, %30 : vector<4x128xf32>
    %37 = arith.addf %32, %36 : vector<4x128xf32>
    %38 = arith.subf %30, %11 : vector<4x128xf32>
    %c3 = arith.constant 3 : index
    %39 = memref.load %arg31[%c3] : memref<17xf32, #tpu.memory_space<smem>>
    %cst_22 = arith.constant 1.000000e+00 : f32
    %40 = vector.broadcast %cst_22 : f32 to vector<1x128xf32>
    %41 = arith.subf %40, %17 : vector<1x128xf32>
    %42 = vector.broadcast %41 : vector<1x128xf32> to vector<4x128xf32>
    %43 = arith.mulf %42, %38 : vector<4x128xf32>
    %44 = math.absf %43 : vector<4x128xf32>
    %45 = vector.shape_cast %44 : vector<4x128xf32> to vector<1x4x128xf32>
    %cst_23 = arith.constant dense<0.000000e+00> : vector<1xf32>
    %46 = vector.multi_reduction <add>, %45, %cst_23 [1, 2] : vector<1x4x128xf32> to vector<1xf32>
    %47 = vector.shape_cast %46 : vector<1xf32> to vector<1x1x1xf32>
    %48 = vector.extract %47[0, 0, 0] : f32 from vector<1x1x1xf32>
    %49 = arith.addf %39, %48 : f32
    %c3_24 = arith.constant 3 : index
    %50 = memref.load %arg31[%c3_24] : memref<17xf32, #tpu.memory_space<smem>>
    memref.store %49, %arg31[%c3_24] : memref<17xf32, #tpu.memory_space<smem>>
    %c4 = arith.constant 4 : index
    %51 = memref.load %arg31[%c4] : memref<17xf32, #tpu.memory_space<smem>>
    %52 = arith.mulf %20, %17 : vector<1x128xf32>
    %53 = vector.broadcast %52 : vector<1x128xf32> to vector<4x128xf32>
    %54 = arith.mulf %53, %38 : vector<4x128xf32>
    %55 = math.absf %54 : vector<4x128xf32>
    %56 = vector.shape_cast %55 : vector<4x128xf32> to vector<1x4x128xf32>
    %cst_25 = arith.constant dense<0.000000e+00> : vector<1xf32>
    %57 = vector.multi_reduction <add>, %56, %cst_25 [1, 2] : vector<1x4x128xf32> to vector<1xf32>
    %58 = vector.shape_cast %57 : vector<1xf32> to vector<1x1x1xf32>
    %59 = vector.extract %58[0, 0, 0] : f32 from vector<1x1x1xf32>
    %60 = arith.addf %51, %59 : f32
    %c4_26 = arith.constant 4 : index
    %61 = memref.load %arg31[%c4_26] : memref<17xf32, #tpu.memory_space<smem>>
    memref.store %60, %arg31[%c4_26] : memref<17xf32, #tpu.memory_space<smem>>
    %62 = arith.subf %14, %11 : vector<4x128xf32>
    %c5 = arith.constant 5 : index
    %63 = memref.load %arg31[%c5] : memref<17xf32, #tpu.memory_space<smem>>
    %cst_27 = arith.constant 1.000000e+00 : f32
    %64 = vector.broadcast %cst_27 : f32 to vector<1x128xf32>
    %65 = arith.subf %64, %17 : vector<1x128xf32>
    %66 = vector.broadcast %65 : vector<1x128xf32> to vector<4x128xf32>
    %67 = arith.mulf %66, %62 : vector<4x128xf32>
    %68 = math.absf %67 : vector<4x128xf32>
    %69 = vector.shape_cast %68 : vector<4x128xf32> to vector<1x4x128xf32>
    %cst_28 = arith.constant dense<0.000000e+00> : vector<1xf32>
    %70 = vector.multi_reduction <add>, %69, %cst_28 [1, 2] : vector<1x4x128xf32> to vector<1xf32>
    %71 = vector.shape_cast %70 : vector<1xf32> to vector<1x1x1xf32>
    %72 = vector.extract %71[0, 0, 0] : f32 from vector<1x1x1xf32>
    %73 = arith.addf %63, %72 : f32
    %c5_29 = arith.constant 5 : index
    %74 = memref.load %arg31[%c5_29] : memref<17xf32, #tpu.memory_space<smem>>
    memref.store %73, %arg31[%c5_29] : memref<17xf32, #tpu.memory_space<smem>>
    %c6 = arith.constant 6 : index
    %75 = memref.load %arg31[%c6] : memref<17xf32, #tpu.memory_space<smem>>
    %76 = arith.mulf %20, %17 : vector<1x128xf32>
    %77 = vector.broadcast %76 : vector<1x128xf32> to vector<4x128xf32>
    %78 = arith.mulf %77, %62 : vector<4x128xf32>
    %79 = math.absf %78 : vector<4x128xf32>
    %80 = vector.shape_cast %79 : vector<4x128xf32> to vector<1x4x128xf32>
    %cst_30 = arith.constant dense<0.000000e+00> : vector<1xf32>
    %81 = vector.multi_reduction <add>, %80, %cst_30 [1, 2] : vector<1x4x128xf32> to vector<1xf32>
    %82 = vector.shape_cast %81 : vector<1xf32> to vector<1x1x1xf32>
    %83 = vector.extract %82[0, 0, 0] : f32 from vector<1x1x1xf32>
    %84 = arith.addf %75, %83 : f32
    %c6_31 = arith.constant 6 : index
    %85 = memref.load %arg31[%c6_31] : memref<17xf32, #tpu.memory_space<smem>>
    memref.store %84, %arg31[%c6_31] : memref<17xf32, #tpu.memory_space<smem>>
    %86 = arith.negf %23 : vector<1x128xf32>
    %87 = math.exp %86 : vector<1x128xf32>
    %cst_32 = arith.constant 1.000000e+00 : f32
    %88 = vector.broadcast %cst_32 : f32 to vector<1x128xf32>
    %89 = arith.addf %88, %87 : vector<1x128xf32>
    %90 = arith.divf %88, %89 : vector<1x128xf32>
    %91 = arith.mulf %17, %20 : vector<1x128xf32>
    %cst_33 = arith.constant 1.000000e+00 : f32
    %92 = vector.broadcast %cst_33 : f32 to vector<1x128xf32>
    %93 = arith.subf %92, %91 : vector<1x128xf32>
    %c11 = arith.constant 11 : index
    %94 = memref.load %arg31[%c11] : memref<17xf32, #tpu.memory_space<smem>>
    %95 = arith.mulf %90, %93 : vector<1x128xf32>
    %96 = vector.shape_cast %95 : vector<1x128xf32> to vector<1x1x128xf32>
    %cst_34 = arith.constant dense<0.000000e+00> : vector<1xf32>
    %97 = vector.multi_reduction <add>, %96, %cst_34 [1, 2] : vector<1x1x128xf32> to vector<1xf32>
    %98 = vector.shape_cast %97 : vector<1xf32> to vector<1x1x1xf32>
    %99 = vector.extract %98[0, 0, 0] : f32 from vector<1x1x1xf32>
    %100 = arith.addf %94, %99 : f32
    %c11_35 = arith.constant 11 : index
    %101 = memref.load %arg31[%c11_35] : memref<17xf32, #tpu.memory_space<smem>>
    memref.store %100, %arg31[%c11_35] : memref<17xf32, #tpu.memory_space<smem>>
    %c12 = arith.constant 12 : index
    %102 = memref.load %arg31[%c12] : memref<17xf32, #tpu.memory_space<smem>>
    %103 = arith.mulf %90, %90 : vector<1x128xf32>
    %104 = vector.shape_cast %103 : vector<1x128xf32> to vector<1x1x128xf32>
    %cst_36 = arith.constant dense<0.000000e+00> : vector<1xf32>
    %105 = vector.multi_reduction <add>, %104, %cst_36 [1, 2] : vector<1x1x128xf32> to vector<1xf32>
    %106 = vector.shape_cast %105 : vector<1xf32> to vector<1x1x1xf32>
    %107 = vector.extract %106[0, 0, 0] : f32 from vector<1x1x1xf32>
    %108 = arith.addf %102, %107 : f32
    %c12_37 = arith.constant 12 : index
    %109 = memref.load %arg31[%c12_37] : memref<17xf32, #tpu.memory_space<smem>>
    memref.store %108, %arg31[%c12_37] : memref<17xf32, #tpu.memory_space<smem>>
    %c13 = arith.constant 13 : index
    %110 = memref.load %arg31[%c13] : memref<17xf32, #tpu.memory_space<smem>>
    %111 = arith.mulf %93, %93 : vector<1x128xf32>
    %112 = vector.shape_cast %111 : vector<1x128xf32> to vector<1x1x128xf32>
    %cst_38 = arith.constant dense<0.000000e+00> : vector<1xf32>
    %113 = vector.multi_reduction <add>, %112, %cst_38 [1, 2] : vector<1x1x128xf32> to vector<1xf32>
    %114 = vector.shape_cast %113 : vector<1xf32> to vector<1x1x1xf32>
    %115 = vector.extract %114[0, 0, 0] : f32 from vector<1x1x1xf32>
    %116 = arith.addf %110, %115 : f32
    %c13_39 = arith.constant 13 : index
    %117 = memref.load %arg31[%c13_39] : memref<17xf32, #tpu.memory_space<smem>>
    memref.store %116, %arg31[%c13_39] : memref<17xf32, #tpu.memory_space<smem>>
    %118 = tpu.concatenate %30, %37, %11 in 1 : vector<4x128xf32>, vector<4x128xf32>, vector<4x128xf32> -> vector<4x384xf32>
    %c0_40 = arith.constant 0 : index
    %c0_41 = arith.constant 0 : index
    %119 = vector.load %arg17[%c0_40, %c0_41] : memref<9x4xf32, #tpu.memory_space<vmem>>, vector<9x4xf32>
    %cst_42 = arith.constant dense<0.000000e+00> : vector<9x384xf32>
    %120 = tpu.matmul %119, %118, %cst_42 {dimension_numbers = #tpu.dot_dimension_numbers<[1], [0], [0], [1], [0, 0, 1, 1], [], []>} : vector<9x4xf32>, vector<4x384xf32>, vector<9x384xf32> -> vector<9x384xf32>
    %c0_43 = arith.constant 0 : index
    %c0_44 = arith.constant 0 : index
    %121 = vector.load %arg18[%c0_43, %c0_44] : memref<9x1xf32, #tpu.memory_space<vmem>>, vector<9x1xf32>
    %122 = vector.broadcast %121 : vector<9x1xf32> to vector<9x384xf32>
    %123 = arith.addf %120, %122 : vector<9x384xf32>
    %124 = vector.extract_strided_slice %123 {offsets = [0, 0], sizes = [8, 384], strides = [1, 1]} : vector<9x384xf32> to vector<8x384xf32>
    %cst_45 = arith.constant 0.000000e+00 : f32
    %125 = vector.broadcast %cst_45 : f32 to vector<8x384xf32>
    %126 = arith.maximumf %124, %125 : vector<8x384xf32>
    %c0_46 = arith.constant 0 : index
    %c0_47 = arith.constant 0 : index
    %127 = vector.load %arg23[%c0_46, %c0_47] : memref<1x2xf32, #tpu.memory_space<vmem>>, vector<1x2xf32>
    %128 = vector.extract_strided_slice %127 {offsets = [0, 0], sizes = [1, 1], strides = [1, 1]} : vector<1x2xf32> to vector<1x1xf32>
    %129 = vector.broadcast %128 : vector<1x1xf32> to vector<1x128xf32>
    %130 = arith.mulf %129, %17 : vector<1x128xf32>
    %131 = vector.extract_strided_slice %127 {offsets = [0, 1], sizes = [1, 1], strides = [1, 1]} : vector<1x2xf32> to vector<1x1xf32>
    %132 = vector.broadcast %131 : vector<1x1xf32> to vector<1x128xf32>
    %133 = arith.addf %130, %132 : vector<1x128xf32>
    %134 = vector.extract_strided_slice %123 {offsets = [8, 0], sizes = [1, 128], strides = [1, 1]} : vector<9x384xf32> to vector<1x128xf32>
    %135 = arith.addf %134, %133 : vector<1x128xf32>
    %136 = vector.extract_strided_slice %123 {offsets = [8, 256], sizes = [1, 128], strides = [1, 1]} : vector<9x384xf32> to vector<1x128xf32>
    %137 = arith.addf %136, %133 : vector<1x128xf32>
    %c0_48 = arith.constant 0 : index
    %138 = memref.load %arg31[%c0_48] : memref<17xf32, #tpu.memory_space<smem>>
    %cst_49 = arith.constant 1.000000e+00 : f32
    %139 = vector.broadcast %cst_49 : f32 to vector<1x128xf32>
    %140 = arith.subf %137, %139 : vector<1x128xf32>
    %141 = arith.mulf %140, %140 : vector<1x128xf32>
    %142 = vector.shape_cast %141 : vector<1x128xf32> to vector<1x1x128xf32>
    %cst_50 = arith.constant dense<0.000000e+00> : vector<1xf32>
    %143 = vector.multi_reduction <add>, %142, %cst_50 [1, 2] : vector<1x1x128xf32> to vector<1xf32>
    %144 = vector.shape_cast %143 : vector<1xf32> to vector<1x1x1xf32>
    %145 = vector.extract %144[0, 0, 0] : f32 from vector<1x1x1xf32>
    %146 = arith.addf %138, %145 : f32
    %c0_51 = arith.constant 0 : index
    %147 = memref.load %arg31[%c0_51] : memref<17xf32, #tpu.memory_space<smem>>
    memref.store %146, %arg31[%c0_51] : memref<17xf32, #tpu.memory_space<smem>>
    %c1 = arith.constant 1 : index
    %148 = memref.load %arg31[%c1] : memref<17xf32, #tpu.memory_space<smem>>
    %149 = arith.mulf %135, %135 : vector<1x128xf32>
    %150 = vector.shape_cast %149 : vector<1x128xf32> to vector<1x1x128xf32>
    %cst_52 = arith.constant dense<0.000000e+00> : vector<1xf32>
    %151 = vector.multi_reduction <add>, %150, %cst_52 [1, 2] : vector<1x1x128xf32> to vector<1xf32>
    %152 = vector.shape_cast %151 : vector<1xf32> to vector<1x1x1xf32>
    %153 = vector.extract %152[0, 0, 0] : f32 from vector<1x1x1xf32>
    %154 = arith.addf %148, %153 : f32
    %c1_53 = arith.constant 1 : index
    %155 = memref.load %arg31[%c1_53] : memref<17xf32, #tpu.memory_space<smem>>
    memref.store %154, %arg31[%c1_53] : memref<17xf32, #tpu.memory_space<smem>>
    %c2 = arith.constant 2 : index
    %156 = memref.load %arg31[%c2] : memref<17xf32, #tpu.memory_space<smem>>
    %cst_54 = arith.constant 1.000000e+00 : f32
    %157 = vector.broadcast %cst_54 : f32 to vector<1x128xf32>
    %158 = arith.subf %135, %157 : vector<1x128xf32>
    %159 = arith.mulf %158, %158 : vector<1x128xf32>
    %160 = vector.shape_cast %159 : vector<1x128xf32> to vector<1x1x128xf32>
    %cst_55 = arith.constant dense<0.000000e+00> : vector<1xf32>
    %161 = vector.multi_reduction <add>, %160, %cst_55 [1, 2] : vector<1x1x128xf32> to vector<1xf32>
    %162 = vector.shape_cast %161 : vector<1xf32> to vector<1x1x1xf32>
    %163 = vector.extract %162[0, 0, 0] : f32 from vector<1x1x1xf32>
    %164 = arith.addf %156, %163 : f32
    %c2_56 = arith.constant 2 : index
    %165 = memref.load %arg31[%c2_56] : memref<17xf32, #tpu.memory_space<smem>>
    memref.store %164, %arg31[%c2_56] : memref<17xf32, #tpu.memory_space<smem>>
    %c0_57 = arith.constant 0 : index
    %c0_58 = arith.constant 0 : index
    %166 = vector.load %arg24[%c0_57, %c0_58] : memref<128x32xf32, #tpu.memory_space<vmem>>, vector<128x32xf32>
    %c0_59 = arith.constant 0 : index
    %c0_60 = arith.constant 0 : index
    %167 = vector.load %arg25[%c0_59, %c0_60] : memref<32x8xf32, #tpu.memory_space<vmem>>, vector<32x8xf32>
    %c0_61 = arith.constant 0 : index
    %c0_62 = arith.constant 0 : index
    %168 = vector.load %arg19[%c0_61, %c0_62] : memref<16x8xf32, #tpu.memory_space<vmem>>, vector<16x8xf32>
    %c0_63 = arith.constant 0 : index
    %c0_64 = arith.constant 0 : index
    %169 = vector.load %arg20[%c0_63, %c0_64] : memref<16x1xf32, #tpu.memory_space<vmem>>, vector<16x1xf32>
    %c0_65 = arith.constant 0 : index
    %c0_66 = arith.constant 0 : index
    %170 = vector.load %arg21[%c0_65, %c0_66] : memref<32x16xf32, #tpu.memory_space<vmem>>, vector<32x16xf32>
    %c0_67 = arith.constant 0 : index
    %c0_68 = arith.constant 0 : index
    %171 = vector.load %arg22[%c0_67, %c0_68] : memref<32x1xf32, #tpu.memory_space<vmem>>, vector<32x1xf32>
    %172 = vector.extract_strided_slice %126 {offsets = [0, 0], sizes = [8, 128], strides = [1, 1]} : vector<8x384xf32> to vector<8x128xf32>
    %cst_69 = arith.constant dense<0.000000e+00> : vector<8x32xf32>
    %173 = tpu.matmul %172, %166, %cst_69 {dimension_numbers = #tpu.dot_dimension_numbers<[1], [0], [0], [1], [0, 0, 1, 1], [], []>} : vector<8x128xf32>, vector<128x32xf32>, vector<8x32xf32> -> vector<8x32xf32>
    %174 = vector.extract_strided_slice %126 {offsets = [0, 128], sizes = [8, 128], strides = [1, 1]} : vector<8x384xf32> to vector<8x128xf32>
    %cst_70 = arith.constant dense<0.000000e+00> : vector<8x32xf32>
    %175 = tpu.matmul %174, %166, %cst_70 {dimension_numbers = #tpu.dot_dimension_numbers<[1], [0], [0], [1], [0, 0, 1, 1], [], []>} : vector<8x128xf32>, vector<128x32xf32>, vector<8x32xf32> -> vector<8x32xf32>
    %176 = vector.extract_strided_slice %126 {offsets = [0, 256], sizes = [8, 128], strides = [1, 1]} : vector<8x384xf32> to vector<8x128xf32>
    %cst_71 = arith.constant dense<0.000000e+00> : vector<8x32xf32>
    %177 = tpu.matmul %176, %166, %cst_71 {dimension_numbers = #tpu.dot_dimension_numbers<[1], [0], [0], [1], [0, 0, 1, 1], [], []>} : vector<8x128xf32>, vector<128x32xf32>, vector<8x32xf32> -> vector<8x32xf32>
    %178 = tpu.concatenate %173, %175, %177 in 1 : vector<8x32xf32>, vector<8x32xf32>, vector<8x32xf32> -> vector<8x96xf32>
    %cst_72 = arith.constant dense<0.000000e+00> : vector<16x96xf32>
    %179 = tpu.matmul %168, %178, %cst_72 {dimension_numbers = #tpu.dot_dimension_numbers<[1], [0], [0], [1], [0, 0, 1, 1], [], []>} : vector<16x8xf32>, vector<8x96xf32>, vector<16x96xf32> -> vector<16x96xf32>
    %180 = vector.broadcast %169 : vector<16x1xf32> to vector<16x96xf32>
    %181 = arith.addf %179, %180 : vector<16x96xf32>
    %cst_73 = arith.constant 0.000000e+00 : f32
    %182 = vector.broadcast %cst_73 : f32 to vector<16x96xf32>
    %183 = arith.maximumf %181, %182 : vector<16x96xf32>
    %184 = vector.extract_strided_slice %183 {offsets = [0, 0], sizes = [16, 32], strides = [1, 1]} : vector<16x96xf32> to vector<16x32xf32>
    %cst_74 = arith.constant dense<0.000000e+00> : vector<16x8xf32>
    %185 = tpu.matmul %184, %167, %cst_74 {dimension_numbers = #tpu.dot_dimension_numbers<[1], [0], [0], [1], [0, 0, 1, 1], [], []>} : vector<16x32xf32>, vector<32x8xf32>, vector<16x8xf32> -> vector<16x8xf32>
    %186 = vector.extract_strided_slice %183 {offsets = [0, 32], sizes = [16, 32], strides = [1, 1]} : vector<16x96xf32> to vector<16x32xf32>
    %cst_75 = arith.constant dense<0.000000e+00> : vector<16x8xf32>
    %187 = tpu.matmul %186, %167, %cst_75 {dimension_numbers = #tpu.dot_dimension_numbers<[1], [0], [0], [1], [0, 0, 1, 1], [], []>} : vector<16x32xf32>, vector<32x8xf32>, vector<16x8xf32> -> vector<16x8xf32>
    %188 = vector.extract_strided_slice %183 {offsets = [0, 64], sizes = [16, 32], strides = [1, 1]} : vector<16x96xf32> to vector<16x32xf32>
    %cst_76 = arith.constant dense<0.000000e+00> : vector<16x8xf32>
    %189 = tpu.matmul %188, %167, %cst_76 {dimension_numbers = #tpu.dot_dimension_numbers<[1], [0], [0], [1], [0, 0, 1, 1], [], []>} : vector<16x32xf32>, vector<32x8xf32>, vector<16x8xf32> -> vector<16x8xf32>
    %190 = tpu.concatenate %185, %187, %189 in 1 : vector<16x8xf32>, vector<16x8xf32>, vector<16x8xf32> -> vector<16x24xf32>
    %cst_77 = arith.constant dense<0.000000e+00> : vector<32x24xf32>
    %191 = tpu.matmul %170, %190, %cst_77 {dimension_numbers = #tpu.dot_dimension_numbers<[1], [0], [0], [1], [0, 0, 1, 1], [], []>} : vector<32x16xf32>, vector<16x24xf32>, vector<32x24xf32> -> vector<32x24xf32>
    %192 = vector.broadcast %171 : vector<32x1xf32> to vector<32x24xf32>
    %193 = arith.addf %191, %192 : vector<32x24xf32>
    %cst_78 = arith.constant 0.000000e+00 : f32
    %194 = vector.broadcast %cst_78 : f32 to vector<32x24xf32>
    %195 = arith.maximumf %193, %194 : vector<32x24xf32>
    %196 = vector.extract_strided_slice %126 {offsets = [0, 0], sizes = [8, 128], strides = [1, 1]} : vector<8x384xf32> to vector<8x128xf32>
    %197 = vector.extract_strided_slice %126 {offsets = [0, 128], sizes = [8, 128], strides = [1, 1]} : vector<8x384xf32> to vector<8x128xf32>
    %198 = vector.extract_strided_slice %126 {offsets = [0, 256], sizes = [8, 128], strides = [1, 1]} : vector<8x384xf32> to vector<8x128xf32>
    %c14 = arith.constant 14 : index
    %199 = memref.load %arg31[%c14] : memref<17xf32, #tpu.memory_space<smem>>
    %200 = arith.subf %196, %198 : vector<8x128xf32>
    %201 = math.absf %200 : vector<8x128xf32>
    %202 = vector.shape_cast %201 : vector<8x128xf32> to vector<1x8x128xf32>
    %cst_79 = arith.constant dense<0.000000e+00> : vector<1xf32>
    %203 = vector.multi_reduction <add>, %202, %cst_79 [1, 2] : vector<1x8x128xf32> to vector<1xf32>
    %204 = vector.shape_cast %203 : vector<1xf32> to vector<1x1x1xf32>
    %205 = vector.extract %204[0, 0, 0] : f32 from vector<1x1x1xf32>
    %206 = arith.subf %197, %198 : vector<8x128xf32>
    %207 = math.absf %206 : vector<8x128xf32>
    %208 = vector.shape_cast %207 : vector<8x128xf32> to vector<1x8x128xf32>
    %cst_80 = arith.constant dense<0.000000e+00> : vector<1xf32>
    %209 = vector.multi_reduction <add>, %208, %cst_80 [1, 2] : vector<1x8x128xf32> to vector<1xf32>
    %210 = vector.shape_cast %209 : vector<1xf32> to vector<1x1x1xf32>
    %211 = vector.extract %210[0, 0, 0] : f32 from vector<1x1x1xf32>
    %212 = arith.addf %205, %211 : f32
    %213 = arith.addf %199, %212 : f32
    %c14_81 = arith.constant 14 : index
    %214 = memref.load %arg31[%c14_81] : memref<17xf32, #tpu.memory_space<smem>>
    memref.store %213, %arg31[%c14_81] : memref<17xf32, #tpu.memory_space<smem>>
    %215 = tpu.concatenate %196, %197, %198 in 0 : vector<8x128xf32>, vector<8x128xf32>, vector<8x128xf32> -> vector<24x128xf32>
    %c0_82 = arith.constant 0 : index
    %c0_83 = arith.constant 0 : index
    %216 = vector.load %arg28[%c0_82, %c0_83] : memref<24x24xf32, #tpu.memory_space<vmem>>, vector<24x24xf32>
    %cst_84 = arith.constant dense<0.000000e+00> : vector<24x24xf32>
    %217 = tpu.matmul %215, %215, %cst_84 {dimension_numbers = #tpu.dot_dimension_numbers<[1], [1], [0], [0], [0, 0, 1, 0], [], []>} : vector<24x128xf32>, vector<24x128xf32>, vector<24x24xf32> -> vector<24x24xf32>
    %218 = arith.addf %216, %217 : vector<24x24xf32>
    %c0_85 = arith.constant 0 : index
    %c0_86 = arith.constant 0 : index
    %219 = vector.load %arg28[%c0_85, %c0_86] : memref<24x24xf32, #tpu.memory_space<vmem>>, vector<24x24xf32>
    tpu.vector_store %arg28[%c0_85, %c0_86], %218 {strides = array<i32>} : memref<24x24xf32, #tpu.memory_space<vmem>>, vector<24x24xf32>,
    %220 = vector.extract_strided_slice %183 {offsets = [0, 0], sizes = [16, 32], strides = [1, 1]} : vector<16x96xf32> to vector<16x32xf32>
    %221 = vector.extract_strided_slice %183 {offsets = [0, 32], sizes = [16, 32], strides = [1, 1]} : vector<16x96xf32> to vector<16x32xf32>
    %222 = vector.extract_strided_slice %183 {offsets = [0, 64], sizes = [16, 32], strides = [1, 1]} : vector<16x96xf32> to vector<16x32xf32>
    %c15 = arith.constant 15 : index
    %223 = memref.load %arg31[%c15] : memref<17xf32, #tpu.memory_space<smem>>
    %224 = arith.subf %220, %222 : vector<16x32xf32>
    %225 = math.absf %224 : vector<16x32xf32>
    %226 = vector.shape_cast %225 : vector<16x32xf32> to vector<1x16x32xf32>
    %cst_87 = arith.constant dense<0.000000e+00> : vector<1xf32>
    %227 = vector.multi_reduction <add>, %226, %cst_87 [1, 2] : vector<1x16x32xf32> to vector<1xf32>
    %228 = vector.shape_cast %227 : vector<1xf32> to vector<1x1x1xf32>
    %229 = vector.extract %228[0, 0, 0] : f32 from vector<1x1x1xf32>
    %230 = arith.subf %221, %222 : vector<16x32xf32>
    %231 = math.absf %230 : vector<16x32xf32>
    %232 = vector.shape_cast %231 : vector<16x32xf32> to vector<1x16x32xf32>
    %cst_88 = arith.constant dense<0.000000e+00> : vector<1xf32>
    %233 = vector.multi_reduction <add>, %232, %cst_88 [1, 2] : vector<1x16x32xf32> to vector<1xf32>
    %234 = vector.shape_cast %233 : vector<1xf32> to vector<1x1x1xf32>
    %235 = vector.extract %234[0, 0, 0] : f32 from vector<1x1x1xf32>
    %236 = arith.addf %229, %235 : f32
    %237 = arith.addf %223, %236 : f32
    %c15_89 = arith.constant 15 : index
    %238 = memref.load %arg31[%c15_89] : memref<17xf32, #tpu.memory_space<smem>>
    memref.store %237, %arg31[%c15_89] : memref<17xf32, #tpu.memory_space<smem>>
    %239 = tpu.concatenate %220, %221, %222 in 0 : vector<16x32xf32>, vector<16x32xf32>, vector<16x32xf32> -> vector<48x32xf32>
    %c0_90 = arith.constant 0 : index
    %c0_91 = arith.constant 0 : index
    %240 = vector.load %arg29[%c0_90, %c0_91] : memref<48x48xf32, #tpu.memory_space<vmem>>, vector<48x48xf32>
    %cst_92 = arith.constant dense<0.000000e+00> : vector<48x48xf32>
    %241 = tpu.matmul %239, %239, %cst_92 {dimension_numbers = #tpu.dot_dimension_numbers<[1], [1], [0], [0], [0, 0, 1, 0], [], []>} : vector<48x32xf32>, vector<48x32xf32>, vector<48x48xf32> -> vector<48x48xf32>
    %242 = arith.addf %240, %241 : vector<48x48xf32>
    %c0_93 = arith.constant 0 : index
    %c0_94 = arith.constant 0 : index
    %243 = vector.load %arg29[%c0_93, %c0_94] : memref<48x48xf32, #tpu.memory_space<vmem>>, vector<48x48xf32>
    tpu.vector_store %arg29[%c0_93, %c0_94], %242 {strides = array<i32>} : memref<48x48xf32, #tpu.memory_space<vmem>>, vector<48x48xf32>,
    %244 = vector.extract_strided_slice %195 {offsets = [0, 0], sizes = [32, 8], strides = [1, 1]} : vector<32x24xf32> to vector<32x8xf32>
    %245 = vector.extract_strided_slice %195 {offsets = [0, 8], sizes = [32, 8], strides = [1, 1]} : vector<32x24xf32> to vector<32x8xf32>
    %246 = vector.extract_strided_slice %195 {offsets = [0, 16], sizes = [32, 8], strides = [1, 1]} : vector<32x24xf32> to vector<32x8xf32>
    %c16 = arith.constant 16 : index
    %247 = memref.load %arg31[%c16] : memref<17xf32, #tpu.memory_space<smem>>
    %248 = arith.subf %244, %246 : vector<32x8xf32>
    %249 = math.absf %248 : vector<32x8xf32>
    %250 = vector.shape_cast %249 : vector<32x8xf32> to vector<1x32x8xf32>
    %cst_95 = arith.constant dense<0.000000e+00> : vector<1xf32>
    %251 = vector.multi_reduction <add>, %250, %cst_95 [1, 2] : vector<1x32x8xf32> to vector<1xf32>
    %252 = vector.shape_cast %251 : vector<1xf32> to vector<1x1x1xf32>
    %253 = vector.extract %252[0, 0, 0] : f32 from vector<1x1x1xf32>
    %254 = arith.subf %245, %246 : vector<32x8xf32>
    %255 = math.absf %254 : vector<32x8xf32>
    %256 = vector.shape_cast %255 : vector<32x8xf32> to vector<1x32x8xf32>
    %cst_96 = arith.constant dense<0.000000e+00> : vector<1xf32>
    %257 = vector.multi_reduction <add>, %256, %cst_96 [1, 2] : vector<1x32x8xf32> to vector<1xf32>
    %258 = vector.shape_cast %257 : vector<1xf32> to vector<1x1x1xf32>
    %259 = vector.extract %258[0, 0, 0] : f32 from vector<1x1x1xf32>
    %260 = arith.addf %253, %259 : f32
    %261 = arith.addf %247, %260 : f32
    %c16_97 = arith.constant 16 : index
    %262 = memref.load %arg31[%c16_97] : memref<17xf32, #tpu.memory_space<smem>>
    memref.store %261, %arg31[%c16_97] : memref<17xf32, #tpu.memory_space<smem>>
    %263 = tpu.concatenate %244, %245, %246 in 0 : vector<32x8xf32>, vector<32x8xf32>, vector<32x8xf32> -> vector<96x8xf32>
    %c0_98 = arith.constant 0 : index
    %c0_99 = arith.constant 0 : index
    %264 = vector.load %arg30[%c0_98, %c0_99] : memref<96x96xf32, #tpu.memory_space<vmem>>, vector<96x96xf32>
    %cst_100 = arith.constant dense<0.000000e+00> : vector<96x96xf32>
    %265 = tpu.matmul %263, %263, %cst_100 {dimension_numbers = #tpu.dot_dimension_numbers<[1], [1], [0], [0], [0, 0, 1, 0], [], []>} : vector<96x8xf32>, vector<96x8xf32>, vector<96x96xf32> -> vector<96x96xf32>
    %266 = arith.addf %264, %265 : vector<96x96xf32>
    %c0_101 = arith.constant 0 : index
    %c0_102 = arith.constant 0 : index
    %267 = vector.load %arg30[%c0_101, %c0_102] : memref<96x96xf32, #tpu.memory_space<vmem>>, vector<96x96xf32>
    tpu.vector_store %arg30[%c0_101, %c0_102], %266 {strides = array<i32>} : memref<96x96xf32, #tpu.memory_space<vmem>>, vector<96x96xf32>,
    %c1_i32 = arith.constant 1 : i32
    %268 = arith.cmpi eq, %arg1, %c1_i32 : i32
    %269 = arith.extui %268 : i1 to i32
    %c0_i32_103 = arith.constant 0 : i32
    %270 = arith.cmpi ne, %269, %c0_i32_103 : i32
    scf.if %270 {
      %c0_104 = arith.constant 0 : index
      %c0_105 = arith.constant 0 : index
      %271 = vector.load %arg28[%c0_104, %c0_105] : memref<24x24xf32, #tpu.memory_space<vmem>>, vector<24x24xf32>
      %272 = vector.extract_strided_slice %271 {offsets = [16, 16], sizes = [8, 8], strides = [1, 1]} : vector<24x24xf32> to vector<8x8xf32>
      %273 = vector.extract_strided_slice %271 {offsets = [0, 0], sizes = [8, 8], strides = [1, 1]} : vector<24x24xf32> to vector<8x8xf32>
      %274 = arith.subf %273, %272 : vector<8x8xf32>
      %275 = math.absf %274 : vector<8x8xf32>
      %276 = vector.shape_cast %275 : vector<8x8xf32> to vector<1x8x8xf32>
      %cst_106 = arith.constant dense<0.000000e+00> : vector<1xf32>
      %277 = vector.multi_reduction <add>, %276, %cst_106 [1, 2] : vector<1x8x8xf32> to vector<1xf32>
      %278 = vector.shape_cast %277 : vector<1xf32> to vector<1x1x1xf32>
      %279 = vector.extract %278[0, 0, 0] : f32 from vector<1x1x1xf32>
      %280 = vector.extract_strided_slice %271 {offsets = [8, 8], sizes = [8, 8], strides = [1, 1]} : vector<24x24xf32> to vector<8x8xf32>
      %281 = arith.subf %280, %272 : vector<8x8xf32>
      %282 = math.absf %281 : vector<8x8xf32>
      %283 = vector.shape_cast %282 : vector<8x8xf32> to vector<1x8x8xf32>
      %cst_107 = arith.constant dense<0.000000e+00> : vector<1xf32>
      %284 = vector.multi_reduction <add>, %283, %cst_107 [1, 2] : vector<1x8x8xf32> to vector<1xf32>
      %285 = vector.shape_cast %284 : vector<1xf32> to vector<1x1x1xf32>
      %286 = vector.extract %285[0, 0, 0] : f32 from vector<1x1x1xf32>
      %287 = arith.addf %279, %286 : f32
      %c0_108 = arith.constant 0 : index
      %c0_109 = arith.constant 0 : index
      %288 = vector.load %arg29[%c0_108, %c0_109] : memref<48x48xf32, #tpu.memory_space<vmem>>, vector<48x48xf32>
      %289 = vector.extract_strided_slice %288 {offsets = [32, 32], sizes = [16, 16], strides = [1, 1]} : vector<48x48xf32> to vector<16x16xf32>
      %290 = vector.extract_strided_slice %288 {offsets = [0, 0], sizes = [16, 16], strides = [1, 1]} : vector<48x48xf32> to vector<16x16xf32>
      %291 = arith.subf %290, %289 : vector<16x16xf32>
      %292 = math.absf %291 : vector<16x16xf32>
      %293 = vector.shape_cast %292 : vector<16x16xf32> to vector<1x16x16xf32>
      %cst_110 = arith.constant dense<0.000000e+00> : vector<1xf32>
      %294 = vector.multi_reduction <add>, %293, %cst_110 [1, 2] : vector<1x16x16xf32> to vector<1xf32>
      %295 = vector.shape_cast %294 : vector<1xf32> to vector<1x1x1xf32>
      %296 = vector.extract %295[0, 0, 0] : f32 from vector<1x1x1xf32>
      %297 = vector.extract_strided_slice %288 {offsets = [16, 16], sizes = [16, 16], strides = [1, 1]} : vector<48x48xf32> to vector<16x16xf32>
      %298 = arith.subf %297, %289 : vector<16x16xf32>
      %299 = math.absf %298 : vector<16x16xf32>
      %300 = vector.shape_cast %299 : vector<16x16xf32> to vector<1x16x16xf32>
      %cst_111 = arith.constant dense<0.000000e+00> : vector<1xf32>
      %301 = vector.multi_reduction <add>, %300, %cst_111 [1, 2] : vector<1x16x16xf32> to vector<1xf32>
      %302 = vector.shape_cast %301 : vector<1xf32> to vector<1x1x1xf32>
      %303 = vector.extract %302[0, 0, 0] : f32 from vector<1x1x1xf32>
      %304 = arith.addf %296, %303 : f32
      %c0_112 = arith.constant 0 : index
      %c0_113 = arith.constant 0 : index
      %305 = vector.load %arg30[%c0_112, %c0_113] : memref<96x96xf32, #tpu.memory_space<vmem>>, vector<96x96xf32>
      %306 = vector.extract_strided_slice %305 {offsets = [64, 64], sizes = [32, 32], strides = [1, 1]} : vector<96x96xf32> to vector<32x32xf32>
      %307 = vector.extract_strided_slice %305 {offsets = [0, 0], sizes = [32, 32], strides = [1, 1]} : vector<96x96xf32> to vector<32x32xf32>
      %308 = arith.subf %307, %306 : vector<32x32xf32>
      %309 = math.absf %308 : vector<32x32xf32>
      %310 = vector.shape_cast %309 : vector<32x32xf32> to vector<1x32x32xf32>
      %cst_114 = arith.constant dense<0.000000e+00> : vector<1xf32>
      %311 = vector.multi_reduction <add>, %310, %cst_114 [1, 2] : vector<1x32x32xf32> to vector<1xf32>
      %312 = vector.shape_cast %311 : vector<1xf32> to vector<1x1x1xf32>
      %313 = vector.extract %312[0, 0, 0] : f32 from vector<1x1x1xf32>
      %314 = vector.extract_strided_slice %305 {offsets = [32, 32], sizes = [32, 32], strides = [1, 1]} : vector<96x96xf32> to vector<32x32xf32>
      %315 = arith.subf %314, %306 : vector<32x32xf32>
      %316 = math.absf %315 : vector<32x32xf32>
      %317 = vector.shape_cast %316 : vector<32x32xf32> to vector<1x32x32xf32>
      %cst_115 = arith.constant dense<0.000000e+00> : vector<1xf32>
      %318 = vector.multi_reduction <add>, %317, %cst_115 [1, 2] : vector<1x32x32xf32> to vector<1xf32>
      %319 = vector.shape_cast %318 : vector<1xf32> to vector<1x1x1xf32>
      %320 = vector.extract %319[0, 0, 0] : f32 from vector<1x1x1xf32>
      %321 = arith.addf %313, %320 : f32
      %c11_116 = arith.constant 11 : index
      %322 = memref.load %arg31[%c11_116] : memref<17xf32, #tpu.memory_space<smem>>
      %cst_117 = arith.constant 2.000000e+00 : f32
      %323 = arith.mulf %cst_117, %322 : f32
      %c12_118 = arith.constant 12 : index
      %324 = memref.load %arg31[%c12_118] : memref<17xf32, #tpu.memory_space<smem>>
      %cst_119 = arith.constant 1.000000e-03 : f32
      %325 = arith.addf %324, %cst_119 : f32
      %c13_120 = arith.constant 13 : index
      %326 = memref.load %arg31[%c13_120] : memref<17xf32, #tpu.memory_space<smem>>
      %cst_121 = arith.constant 1.000000e-03 : f32
      %327 = arith.addf %326, %cst_121 : f32
      %328 = arith.addf %325, %327 : f32
      %329 = arith.divf %323, %328 : f32
      %c0_122 = arith.constant 0 : index
      %330 = memref.load %arg31[%c0_122] : memref<17xf32, #tpu.memory_space<smem>>
      %c1_123 = arith.constant 1 : index
      %331 = memref.load %arg31[%c1_123] : memref<17xf32, #tpu.memory_space<smem>>
      %c2_124 = arith.constant 2 : index
      %332 = memref.load %arg31[%c2_124] : memref<17xf32, #tpu.memory_space<smem>>
      %c3_125 = arith.constant 3 : index
      %333 = memref.load %arg31[%c3_125] : memref<17xf32, #tpu.memory_space<smem>>
      %c4_126 = arith.constant 4 : index
      %334 = memref.load %arg31[%c4_126] : memref<17xf32, #tpu.memory_space<smem>>
      %c5_127 = arith.constant 5 : index
      %335 = memref.load %arg31[%c5_127] : memref<17xf32, #tpu.memory_space<smem>>
      %c6_128 = arith.constant 6 : index
      %336 = memref.load %arg31[%c6_128] : memref<17xf32, #tpu.memory_space<smem>>
      %c7 = arith.constant 7 : index
      %337 = memref.load %arg31[%c7] : memref<17xf32, #tpu.memory_space<smem>>
      %c8 = arith.constant 8 : index
      %338 = memref.load %arg31[%c8] : memref<17xf32, #tpu.memory_space<smem>>
      %c9 = arith.constant 9 : index
      %339 = memref.load %arg31[%c9] : memref<17xf32, #tpu.memory_space<smem>>
      %c10 = arith.constant 10 : index
      %340 = memref.load %arg31[%c10] : memref<17xf32, #tpu.memory_space<smem>>
      %c14_129 = arith.constant 14 : index
      %341 = memref.load %arg31[%c14_129] : memref<17xf32, #tpu.memory_space<smem>>
      %c15_130 = arith.constant 15 : index
      %342 = memref.load %arg31[%c15_130] : memref<17xf32, #tpu.memory_space<smem>>
      %c16_131 = arith.constant 16 : index
      %343 = memref.load %arg31[%c16_131] : memref<17xf32, #tpu.memory_space<smem>>
      %344 = tpu.iota {dimensions = array<i32: 1>} : vector<1x128xi32>
      %cst_132 = arith.constant 0.000000e+00 : f32
      %345 = vector.broadcast %cst_132 : f32 to vector<1x128xf32>
      %c0_i32_133 = arith.constant 0 : i32
      %346 = vector.broadcast %c0_i32_133 : i32 to vector<1x128xi32>
      %347 = arith.cmpi eq, %344, %346 : vector<1x128xi32>
      %348 = vector.broadcast %330 : f32 to vector<1x128xf32>
      %349 = arith.select %347, %348, %345 : vector<1x128xi1>, vector<1x128xf32>
      %c1_i32_134 = arith.constant 1 : i32
      %350 = vector.broadcast %c1_i32_134 : i32 to vector<1x128xi32>
      %351 = arith.cmpi eq, %344, %350 : vector<1x128xi32>
      %352 = vector.broadcast %331 : f32 to vector<1x128xf32>
      %353 = arith.select %351, %352, %349 : vector<1x128xi1>, vector<1x128xf32>
      %c2_i32 = arith.constant 2 : i32
      %354 = vector.broadcast %c2_i32 : i32 to vector<1x128xi32>
      %355 = arith.cmpi eq, %344, %354 : vector<1x128xi32>
      %356 = vector.broadcast %332 : f32 to vector<1x128xf32>
      %357 = arith.select %355, %356, %353 : vector<1x128xi1>, vector<1x128xf32>
      %c3_i32 = arith.constant 3 : i32
      %358 = vector.broadcast %c3_i32 : i32 to vector<1x128xi32>
      %359 = arith.cmpi eq, %344, %358 : vector<1x128xi32>
      %360 = vector.broadcast %333 : f32 to vector<1x128xf32>
      %361 = arith.select %359, %360, %357 : vector<1x128xi1>, vector<1x128xf32>
      %c4_i32 = arith.constant 4 : i32
      %362 = vector.broadcast %c4_i32 : i32 to vector<1x128xi32>
      %363 = arith.cmpi eq, %344, %362 : vector<1x128xi32>
      %364 = vector.broadcast %334 : f32 to vector<1x128xf32>
      %365 = arith.select %363, %364, %361 : vector<1x128xi1>, vector<1x128xf32>
      %c5_i32 = arith.constant 5 : i32
      %366 = vector.broadcast %c5_i32 : i32 to vector<1x128xi32>
      %367 = arith.cmpi eq, %344, %366 : vector<1x128xi32>
      %368 = vector.broadcast %335 : f32 to vector<1x128xf32>
      %369 = arith.select %367, %368, %365 : vector<1x128xi1>, vector<1x128xf32>
      %c6_i32 = arith.constant 6 : i32
      %370 = vector.broadcast %c6_i32 : i32 to vector<1x128xi32>
      %371 = arith.cmpi eq, %344, %370 : vector<1x128xi32>
      %372 = vector.broadcast %336 : f32 to vector<1x128xf32>
      %373 = arith.select %371, %372, %369 : vector<1x128xi1>, vector<1x128xf32>
      %c7_i32 = arith.constant 7 : i32
      %374 = vector.broadcast %c7_i32 : i32 to vector<1x128xi32>
      %375 = arith.cmpi eq, %344, %374 : vector<1x128xi32>
      %376 = vector.broadcast %337 : f32 to vector<1x128xf32>
      %377 = arith.select %375, %376, %373 : vector<1x128xi1>, vector<1x128xf32>
      %c8_i32 = arith.constant 8 : i32
      %378 = vector.broadcast %c8_i32 : i32 to vector<1x128xi32>
      %379 = arith.cmpi eq, %344, %378 : vector<1x128xi32>
      %380 = vector.broadcast %338 : f32 to vector<1x128xf32>
      %381 = arith.select %379, %380, %377 : vector<1x128xi1>, vector<1x128xf32>
      %c9_i32 = arith.constant 9 : i32
      %382 = vector.broadcast %c9_i32 : i32 to vector<1x128xi32>
      %383 = arith.cmpi eq, %344, %382 : vector<1x128xi32>
      %384 = vector.broadcast %339 : f32 to vector<1x128xf32>
      %385 = arith.select %383, %384, %381 : vector<1x128xi1>, vector<1x128xf32>
      %c10_i32 = arith.constant 10 : i32
      %386 = vector.broadcast %c10_i32 : i32 to vector<1x128xi32>
      %387 = arith.cmpi eq, %344, %386 : vector<1x128xi32>
      %388 = vector.broadcast %340 : f32 to vector<1x128xf32>
      %389 = arith.select %387, %388, %385 : vector<1x128xi1>, vector<1x128xf32>
      %c11_i32 = arith.constant 11 : i32
      %390 = vector.broadcast %c11_i32 : i32 to vector<1x128xi32>
      %391 = arith.cmpi eq, %344, %390 : vector<1x128xi32>
      %392 = vector.broadcast %329 : f32 to vector<1x128xf32>
      %393 = arith.select %391, %392, %389 : vector<1x128xi1>, vector<1x128xf32>
      %c12_i32 = arith.constant 12 : i32
      %394 = vector.broadcast %c12_i32 : i32 to vector<1x128xi32>
      %395 = arith.cmpi eq, %344, %394 : vector<1x128xi32>
      %396 = vector.broadcast %341 : f32 to vector<1x128xf32>
      %397 = arith.select %395, %396, %393 : vector<1x128xi1>, vector<1x128xf32>
      %c13_i32 = arith.constant 13 : i32
      %398 = vector.broadcast %c13_i32 : i32 to vector<1x128xi32>
      %399 = arith.cmpi eq, %344, %398 : vector<1x128xi32>
      %400 = vector.broadcast %342 : f32 to vector<1x128xf32>
      %401 = arith.select %399, %400, %397 : vector<1x128xi1>, vector<1x128xf32>
      %c14_i32 = arith.constant 14 : i32
      %402 = vector.broadcast %c14_i32 : i32 to vector<1x128xi32>
      %403 = arith.cmpi eq, %344, %402 : vector<1x128xi32>
      %404 = vector.broadcast %343 : f32 to vector<1x128xf32>
      %405 = arith.select %403, %404, %401 : vector<1x128xi1>, vector<1x128xf32>
      %c15_i32 = arith.constant 15 : i32
      %406 = vector.broadcast %c15_i32 : i32 to vector<1x128xi32>
      %407 = arith.cmpi eq, %344, %406 : vector<1x128xi32>
      %408 = vector.broadcast %287 : f32 to vector<1x128xf32>
      %409 = arith.select %407, %408, %405 : vector<1x128xi1>, vector<1x128xf32>
      %c16_i32 = arith.constant 16 : i32
      %410 = vector.broadcast %c16_i32 : i32 to vector<1x128xi32>
      %411 = arith.cmpi eq, %344, %410 : vector<1x128xi32>
      %412 = vector.broadcast %304 : f32 to vector<1x128xf32>
      %413 = arith.select %411, %412, %409 : vector<1x128xi1>, vector<1x128xf32>
      %c17_i32 = arith.constant 17 : i32
      %414 = vector.broadcast %c17_i32 : i32 to vector<1x128xi32>
      %415 = arith.cmpi eq, %344, %414 : vector<1x128xi32>
      %416 = vector.broadcast %321 : f32 to vector<1x128xf32>
      %417 = arith.select %415, %416, %413 : vector<1x128xi1>, vector<1x128xf32>
      %c0_135 = arith.constant 0 : index
      %c0_136 = arith.constant 0 : index
      %418 = vector.load %arg26[%c0_135, %c0_136] : memref<1x128xf32, #tpu.memory_space<vmem>>, vector<1x128xf32>
      %419 = arith.mulf %417, %418 : vector<1x128xf32>
      %c0_137 = arith.constant 0 : index
      %c0_138 = arith.constant 0 : index
      %c0_139 = arith.constant 0 : index
      %420 = vector.load %arg27[%c0_137, %c0_138, %c0_139] : memref<1x1x128xf32, #tpu.memory_space<vmem>>, vector<1x1x128xf32>
      %421 = vector.shape_cast %420 : vector<1x1x128xf32> to vector<1x128xf32>
      %422 = vector.shape_cast %419 : vector<1x128xf32> to vector<1x1x128xf32>
      tpu.vector_store %arg27[%c0_137, %c0_138, %c0_139], %422 {strides = array<i32>} : memref<1x1x128xf32, #tpu.memory_space<vmem>>, vector<1x1x128xf32>,
    } else {
    }
    return
  }
  func.func @transform_0(%arg0: i32, %arg1: i32) -> (i32, i32, i32) {
    %c0_i32 = arith.constant 0 : i32
    %c0_i32_0 = arith.constant 0 : i32
    return %arg0, %c0_i32, %arg1 : i32, i32, i32
  }
  func.func @transform_1(%arg0: i32, %arg1: i32) -> (i32, i32, i32) {
    %c0_i32 = arith.constant 0 : i32
    %c0_i32_0 = arith.constant 0 : i32
    return %arg0, %c0_i32, %arg1 : i32, i32, i32
  }
  func.func @transform_2(%arg0: i32, %arg1: i32) -> (i32, i32, i32) {
    %c0_i32 = arith.constant 0 : i32
    %c0_i32_0 = arith.constant 0 : i32
    return %arg0, %c0_i32, %arg1 : i32, i32, i32
  }
  func.func @transform_3(%arg0: i32, %arg1: i32) -> (i32, i32, i32) {
    %c0_i32 = arith.constant 0 : i32
    %c0_i32_0 = arith.constant 0 : i32
    return %arg0, %c0_i32, %arg1 : i32, i32, i32
  }
  func.func @transform_4(%arg0: i32, %arg1: i32) -> (i32, i32, i32) {
    %c0_i32 = arith.constant 0 : i32
    %c0_i32_0 = arith.constant 0 : i32
    %c0_i32_1 = arith.constant 0 : i32
    return %arg0, %c0_i32, %c0_i32_0 : i32, i32, i32
  }
  func.func @transform_5(%arg0: i32, %arg1: i32) -> (i32, i32, i32) {
    %c0_i32 = arith.constant 0 : i32
    %c0_i32_0 = arith.constant 0 : i32
    %c0_i32_1 = arith.constant 0 : i32
    return %arg0, %c0_i32, %c0_i32_0 : i32, i32, i32
  }
  func.func @transform_6(%arg0: i32, %arg1: i32) -> (i32, i32, i32) {
    %c0_i32 = arith.constant 0 : i32
    %c0_i32_0 = arith.constant 0 : i32
    %c0_i32_1 = arith.constant 0 : i32
    return %arg0, %c0_i32, %c0_i32_0 : i32, i32, i32
  }
  func.func @transform_7(%arg0: i32, %arg1: i32) -> (i32, i32, i32) {
    %c0_i32 = arith.constant 0 : i32
    %c0_i32_0 = arith.constant 0 : i32
    %c0_i32_1 = arith.constant 0 : i32
    return %arg0, %c0_i32, %c0_i32_0 : i32, i32, i32
  }
  func.func @transform_8(%arg0: i32, %arg1: i32) -> (i32, i32, i32) {
    %c0_i32 = arith.constant 0 : i32
    %c0_i32_0 = arith.constant 0 : i32
    return %arg0, %c0_i32, %arg1 : i32, i32, i32
  }
  func.func @transform_9(%arg0: i32, %arg1: i32) -> (i32, i32, i32) {
    %c0_i32 = arith.constant 0 : i32
    %c0_i32_0 = arith.constant 0 : i32
    return %arg0, %c0_i32, %arg1 : i32, i32, i32
  }
  func.func @transform_10(%arg0: i32, %arg1: i32) -> (i32, i32, i32) {
    %c0_i32 = arith.constant 0 : i32
    %c0_i32_0 = arith.constant 0 : i32
    return %arg0, %c0_i32, %arg1 : i32, i32, i32
  }
  func.func @transform_11(%arg0: i32, %arg1: i32) -> (i32, i32, i32) {
    %c0_i32 = arith.constant 0 : i32
    %c0_i32_0 = arith.constant 0 : i32
    %c0_i32_1 = arith.constant 0 : i32
    return %arg0, %c0_i32, %c0_i32_0 : i32, i32, i32
  }
  func.func @transform_12(%arg0: i32, %arg1: i32) -> (i32, i32, i32) {
    %c0_i32 = arith.constant 0 : i32
    %c0_i32_0 = arith.constant 0 : i32
    %c0_i32_1 = arith.constant 0 : i32
    return %arg0, %c0_i32, %c0_i32_0 : i32, i32, i32
  }
  func.func @transform_13(%arg0: i32, %arg1: i32) -> (i32, i32, i32) {
    %c0_i32 = arith.constant 0 : i32
    %c0_i32_0 = arith.constant 0 : i32
    %c0_i32_1 = arith.constant 0 : i32
    return %arg0, %c0_i32, %c0_i32_0 : i32, i32, i32
  }
  func.func @transform_14(%arg0: i32, %arg1: i32) -> (i32, i32, i32) {
    %c0_i32 = arith.constant 0 : i32
    %c0_i32_0 = arith.constant 0 : i32
    %c0_i32_1 = arith.constant 0 : i32
    return %arg0, %c0_i32, %c0_i32_0 : i32, i32, i32
  }
  func.func @transform_15(%arg0: i32, %arg1: i32) -> (i32, i32) {
    %c0_i32 = arith.constant 0 : i32
    %c0_i32_0 = arith.constant 0 : i32
    %c0_i32_1 = arith.constant 0 : i32
    return %c0_i32, %c0_i32_0 : i32, i32
  }
  func.func @transform_16(%arg0: i32, %arg1: i32) -> (i32, i32) {
    %c0_i32 = arith.constant 0 : i32
    %c0_i32_0 = arith.constant 0 : i32
    %c0_i32_1 = arith.constant 0 : i32
    return %c0_i32, %c0_i32_0 : i32, i32
  }
  func.func @transform_17(%arg0: i32, %arg1: i32) -> (i32, i32) {
    %c0_i32 = arith.constant 0 : i32
    %c0_i32_0 = arith.constant 0 : i32
    %c0_i32_1 = arith.constant 0 : i32
    return %c0_i32, %c0_i32_0 : i32, i32
  }
  func.func @transform_18(%arg0: i32, %arg1: i32) -> (i32, i32) {
    %c0_i32 = arith.constant 0 : i32
    %c0_i32_0 = arith.constant 0 : i32
    %c0_i32_1 = arith.constant 0 : i32
    return %c0_i32, %c0_i32_0 : i32, i32
  }
  func.func @transform_19(%arg0: i32, %arg1: i32) -> (i32, i32) {
    %c0_i32 = arith.constant 0 : i32
    %c0_i32_0 = arith.constant 0 : i32
    %c0_i32_1 = arith.constant 0 : i32
    return %c0_i32, %c0_i32_0 : i32, i32
  }
  func.func @transform_20(%arg0: i32, %arg1: i32) -> (i32, i32) {
    %c0_i32 = arith.constant 0 : i32
    %c0_i32_0 = arith.constant 0 : i32
    %c0_i32_1 = arith.constant 0 : i32
    return %c0_i32, %c0_i32_0 : i32, i32
  }
  func.func @transform_21(%arg0: i32, %arg1: i32) -> (i32, i32) {
    %c0_i32 = arith.constant 0 : i32
    %c0_i32_0 = arith.constant 0 : i32
    %c0_i32_1 = arith.constant 0 : i32
    return %c0_i32, %c0_i32_0 : i32, i32
  }
  func.func @transform_22(%arg0: i32, %arg1: i32) -> (i32, i32) {
    %c0_i32 = arith.constant 0 : i32
    %c0_i32_0 = arith.constant 0 : i32
    %c0_i32_1 = arith.constant 0 : i32
    return %c0_i32, %c0_i32_0 : i32, i32
  }
  func.func @transform_23(%arg0: i32, %arg1: i32) -> (i32, i32) {
    %c0_i32 = arith.constant 0 : i32
    %c0_i32_0 = arith.constant 0 : i32
    %c0_i32_1 = arith.constant 0 : i32
    return %c0_i32, %c0_i32_0 : i32, i32
  }
  func.func @transform_24(%arg0: i32, %arg1: i32) -> (i32, i32) {
    %c0_i32 = arith.constant 0 : i32
    %c0_i32_0 = arith.constant 0 : i32
    %c0_i32_1 = arith.constant 0 : i32
    return %c0_i32, %c0_i32_0 : i32, i32
  }
  func.func @transform_25(%arg0: i32, %arg1: i32) -> (i32, i32, i32) {
    %c0_i32 = arith.constant 0 : i32
    %c0_i32_0 = arith.constant 0 : i32
    %c0_i32_1 = arith.constant 0 : i32
    return %arg0, %c0_i32, %c0_i32_0 : i32, i32, i32
  }
}

</mosaic_0001>

<bundles_post_ra>
// kernel: loss_with_gan_ste_forward.1
= control target key start
LH: loop header
LB: loop body
LE: loop exit
PB: predicated region body
PF: predicated region fallthrough
CT: control target
= control target key end

     0   :  { %s3243_s29 = smov 0   ;;  %s3249_s30 = smov 0   ;;  %s3918_s0 = inlined_call_operand.vmem [shape: bf16[2,4,256], index: 0, kind: input, shape index: {}]   ;;  %s3919_s1 = inlined_call_operand.vmem [shape: bf16[2,4,256], index: 1, kind: input, shape index: {}]   ;;  %s3920_s2 = inlined_call_operand.vmem [shape: bf16[2,4,256], index: 2, kind: input, shape index: {}]   ;;  %s3921_s3 = inlined_call_operand.vmem [shape: bf16[2,4,256], index: 3, kind: input, shape index: {}]   ;;  %s3922_s4 = inlined_call_operand.vmem [shape: bf16[2,4,64], index: 4, kind: input, shape index: {}]   ;;  %s3923_s5 = inlined_call_operand.vmem [shape: bf16[2,4,64], index: 5, kind: input, shape index: {}]   ;;  %s3924_s6 = inlined_call_operand.vmem [shape: bf16[2,4,16], index: 6, kind: input, shape index: {}]   ;;  %s3925_s7 = inlined_call_operand.vmem [shape: bf16[2,4,16], index: 7, kind: input, shape index: {}]   ;;  %s3926_s8 = inlined_call_operand.vmem [shape: bf16[2,1,256], index: 8, kind: input, shape index: {}]   ;;  %s3927_s9 = inlined_call_operand.vmem [shape: bf16[2,1,256], index: 9, kind: input, shape index: {}]   ;;  %s3928_s10 = inlined_call_operand.vmem [shape: bf16[2,1,256], index: 10, kind: input, shape index: {}]   ;;  %s3929_s11 = inlined_call_operand.vmem [shape: bf16[2,1,64], index: 11, kind: input, shape index: {}]   ;;  %s3930_s12 = inlined_call_operand.vmem [shape: bf16[2,1,64], index: 12, kind: input, shape index: {}]   ;;  %s3931_s13 = inlined_call_operand.vmem [shape: bf16[2,1,16], index: 13, kind: input, shape index: {}]   ;;  %s3932_s14 = inlined_call_operand.vmem [shape: bf16[2,1,16], index: 14, kind: input, shape index: {}]   ;;  %s3933_s15 = inlined_call_operand.vmem [shape: f32[9,4], index: 15, kind: input, shape index: {}]   ;;  %s3934_s16 = inlined_call_operand.vmem [shape: f32[9,1], index: 16, kind: input, shape index: {}]   ;;  %s3935_s17 = inlined_call_operand.vmem [shape: f32[16,8], index: 17, kind: input, shape index: {}]   ;;  %s3936_s18 = inlined_call_operand.vmem [shape: f32[16,1], index: 18, kind: input, shape index: {}]   ;;  %s3937_s19 = inlined_call_operand.vmem [shape: f32[32,16], index: 19, kind: input, shape index: {}]   ;;  %s3938_s20 = inlined_call_operand.vmem [shape: f32[32,1], index: 20, kind: input, shape index: {}]   ;;  %s3939_s21 = inlined_call_operand.vmem [shape: f32[1,2], index: 21, kind: input, shape index: {}]   ;;  %s3940_s22 = inlined_call_operand.vmem [shape: f32[128,32], index: 22, kind: input, shape index: {}]   ;;  %s3941_s23 = inlined_call_operand.vmem [shape: f32[32,8], index: 23, kind: input, shape index: {}]   ;;  %s3942_s24 = inlined_call_operand.vmem [shape: f32[1,128], index: 24, kind: input, shape index: {}]   ;;  %s3943_s25 = inlined_call_operand.vmem [shape: f32[2,1,128], index: 25, kind: output, shape index: {}]  }
   0x1   :  { %3959 = sst [smem:[#allocation12_spill]] %s3918_s0 }
   0x2   :  { %3960 = sst [smem:[#allocation13_spill]] %s3919_s1 }
   0x3   :  { %3961 = sst [smem:[#allocation14_spill]] %s3920_s2  ;;  %s3245_s2 = smov 0  }
   0x4   :  { %3962 = sst [smem:[#allocation15_spill]] %s3921_s3 }
   0x5   :  { %3963 = sst [smem:[#allocation16_spill]] %s3922_s4 }
   0x6   :  { %3964 = sst [smem:[#allocation17_spill]] %s3923_s5 }
   0x7   :  { %3965 = sst [smem:[#allocation18_spill]] %s3924_s6  ;;  %s3247_s6 = smov 0  }
   0x8   :  { %3966 = sst [smem:[#allocation19_spill]] %s3925_s7  ;;  %s3251_s7 = smov 0  }
   0x9   :  { %3967 = sst [smem:[#allocation20_spill]] %s3926_s8 }
   0xa   :  { %3968 = sst [smem:[#allocation21_spill]] %s3927_s9 }
   0xb   :  { %3969 = sst [smem:[#allocation22_spill]] %s3929_s11 }
   0xc   :  { %3970 = sst [smem:[#allocation23_spill]] %s3931_s13 }
   0xd   :  { %3971 = sst [smem:[#allocation24_spill]] %s3932_s14 }
   0xe   :  { %3972 = sst [smem:[#allocation25_spill]] %s3933_s15 }
   0xf   :  { %3973 = sst [smem:[#allocation26_spill]] %s3934_s16 }
  0x10   :  { %3974 = sst [smem:[#allocation27_spill]] %s3935_s17 }
  0x11   :  { %3975 = sst [smem:[#allocation28_spill]] %s3936_s18 }
  0x12   :  { %3976 = sst [smem:[#allocation29_spill]] %s3937_s19 }
  0x13   :  { %3977 = sst [smem:[#allocation30_spill]] %s3938_s20 }
  0x14   :  { %3978 = sst [smem:[#allocation31_spill]] %s3939_s21 }
  0x15   :  { %3979 = sst [smem:[#allocation32_spill]] %s3940_s22 }
  0x16   :  { %3980 = sst [smem:[#allocation33_spill]] %s3941_s23 }
  0x17   :  { %3981 = sst [smem:[#allocation34_spill]] %s3942_s24 }
  0x18   :  { %3982 = sst [smem:[#allocation35_spill]] %s3943_s25 }
  0x19 LB: > { %3983 = sst [smem:[#allocation6_spill]] %s3080_s29  ;;  %s44_s3 = sadd.s32 1, %s3088_s6  ;;  %s3096_s7 = sphi %s3251_s7, %s35_s7   ;;  %s3092_s30 = sphi %s3249_s30, %s4031_s30   ;;  %s3088_s6 = sphi %s3247_s6, %s4030_s6   ;;  %s3084_s2 = sphi %s3245_s2, %s4029_s2   ;;  %s3080_s29 = sphi %s3243_s29, %s4028_s29  }
  0x1a   : > { %3984 = sst [smem:[#allocation7_spill]] %s3088_s6  ;;  %s47_s26 = sadd.s32 1, %s3092_s30 }
  0x1b   : > { %3985 = sst [smem:[#allocation8_spill]] %s3092_s30  ;;  %p45_p0 = scmp.ge.s32.totalorder %s44_s3, 2 }
  0x1c   : > { %3986 = sst [smem:[#allocation9_spill]] %s3096_s7  ;;  %p2809_p1 = scmp.ge.s32.totalorder %s3096_s7, 1 }
  0x1d   : > { %p859_p2 = scmp.lt.s32.totalorder %s3096_s7, 5  ;;  %s4033_s3 = smov (%p45_p0, %s44_s3), 0 }
  0x1e   : > { %3987 = sst [smem:[#allocation10_spill]] %s4033_s3  ;;  %s4035_s26 = smov (!%p45_p0, %s47_s26), %s3092_s30 }
  0x1f   : > { %p860_p3 = pnand %p2809_p1, %p859_p2  ;;  %p49_p4 = scmp.ge.s32.totalorder %s4035_s26, 2 }
  0x20   : > { %p1001_p5 = scmp.lt.s32.totalorder (!%p860_p3), %s3084_s2, 1  ;;  %p1003_p6 = scmp.lt.s32.totalorder (!%p860_p3), %s3080_s29, 1 }
  0x21   : > { %s4037_s26 = smov (%p49_p4, %s4035_s26), 0  ;;  %863 = sbr.rel (%p860_p3) target bundleno = 2250 (0x8ca), region = 120 }
  0x22   : > { %3988 = sst [smem:[#allocation11_spill]] %s4037_s26 }
  0x23   : > { %s3989_s11 = sld [smem:[#allocation22_spill]] (!%p860_p3) }
  0x24   : > { %s3990_s26 = sld [smem:[#allocation16_spill]] (!%p860_p3) }
  0x25   : > { %s3991_s24 = sld [smem:[#allocation17_spill]] (!%p860_p3) }
  0x26   : > { %s4039_s2 = smov (!%p1001_p5, %s3084_s2), 1  ;;  %s3996_s25 = sld [smem:[#allocation18_spill]] }
  0x27   : > { %s1004_s1 = scalar_select %p1003_p6, %s3080_s29, 1 }
  0x28   : > { %s2810_s8 = sshll.u32 %s4039_s2, 1  ;;  %s3997_s27 = sld [smem:[#allocation19_spill]] }
  0x29   : > { %s1072_s28 = scalar_lea.vmem %s3989_s11, %s4039_s2  ;;  %s3284_s9 = sadd.s32 %s2810_s8, %s1004_s1 }
  0x2a   : > { %s1036_s3 = scalar_lea.vmem %s3990_s26, %s2810_s8  ;;  %s3290_s30 = sshll.u32 %s3284_s9, 1 }
  0x2b   : > { %s1040_s1 = scalar_lea.vmem %s3991_s24, %s2810_s8  ;;  %s3998_s21 = sld [smem:[#allocation20_spill]] }
  0x2c   : > { %s1044_s24 = scalar_lea.vmem %s3996_s25, %s2810_s8  ;;  %s3999_s17 = sld [smem:[#allocation21_spill]] }
  0x2d   : > { %s1069_s15 = scalar_lea.vmem %s3928_s10, %s3284_s9  ;;  %s1075_s16 = scalar_lea.vmem %s3930_s12, %s4039_s2 }
  0x2e   : > { %s1048_s11 = scalar_lea.vmem %s3997_s27, %s2810_s8  ;;  %s4000_s13 = sld [smem:[#allocation23_spill]] }
  0x2f   : > { %s4001_s5 = sld [smem:[#allocation24_spill]] }
  0x31   : > { %s1055_s19 = scalar_lea.vmem %s3998_s21, %s3284_s9 }
  0x32   : > { %s1062_s18 = scalar_lea.vmem %s3999_s17, %s3284_s9  ;;  %s4003_s17 = sld [smem:[#allocation6_spill]] }
  0x34   : > { %s1078_s14 = scalar_lea.vmem %s4000_s13, %s4039_s2 }
  0x35   : > { %s1081_s4 = scalar_lea.vmem %s4001_s5, %s4039_s2 }
  0x38   : > { %p2825_p7 = scmp.ne.s32.totalorder %s4003_s17, 0 }
  0x39   : > { %s3098_s23 = smov (!%p2825_p7), 0.0  }
  0x3a   : > { %1088 = sbr.rel (%p2825_p7) target bundleno = 269 (0x10d), region = 124  ;;  %1114 = sst [smem:[#allocation5]] (!%p2825_p7), %s3098_s23 }
  0x3b   : > { %1116 = sst [smem:[#allocation5 + $0x1]] (!%p2825_p7), %s3098_s23 }
  0x3c   : > { %1118 = sst [smem:[#allocation5 + $0x2]] (!%p2825_p7), %s3098_s23 }
  0x3d   : > { %1120 = sst [smem:[#allocation5 + $0x3]] (!%p2825_p7), %s3098_s23 }
  0x3e   : > { %1122 = sst [smem:[#allocation5 + $0x4]] (!%p2825_p7), %s3098_s23 }
  0x3f   : > { %v1187_v0 = vld [vmem:[%s1044_s24] sm:$0x3]  ;;  %vm1200_vm0 = vcmask 125952   ;;  %vm1160_vm1 = vcmask 519168   ;;  %1124 = sst [smem:[#allocation5 + $0x5]] %s3098_s23  ;;  %vm1089_vm2 = vcmask 195584  }
  0x40   : > { %v1189_v1 = vld [vmem:[%s1048_s11] sm:$0x3]  ;;  %v1188_v3 = vunpack.c.l.bf16 %v1187_v0  ;;  %1126 = sst [smem:[#allocation5 + $0x6]] %s3098_s23  ;;  %v3099_v38 = vmov 0.0   ;;  %vm1093_vm3 = vcmask 392192   ;;  %vm1100_vm4 = vcmask 785408  }
  0x41   : > { %v1191_v2 = vld [vmem:[%s1078_s14] sm:$0x1]  ;;  %v1190_v4 = vunpack.c.l.bf16 %v1189_v1  ;;  %1136 = sst [smem:[#allocation5 + $0xb]] %s3098_s23  ;;  %1090 = vst.msk [vmem:[#allocation2] sm:$0xff] %vm1089_vm2, %v3099_v38 }
  0x42   : > { %v1192_v5 = vunpack.c.l.bf16 %v1191_v2  ;;  %v1147_v6 = vld [vmem:[%s1036_s3] sm:$0x3]  ;;  %1138 = sst [smem:[#allocation5 + $0xc]] %s3098_s23  ;;  %1091 = vst.msk [vmem:[#allocation2 + $0x8] sm:$0xff] %vm1089_vm2, %v3099_v38 }
  0x43   : > { %v1149_v7 = vld [vmem:[%s1040_s1] sm:$0x3]  ;;  %v1148_v8 = vunpack.c.l.bf16 %v1147_v6  ;;  %v1195_v12 = vsub.f32 %v1188_v3, %v1190_v4  ;;  %1140 = sst [smem:[#allocation5 + $0xd]] %s3098_s23  ;;  %1092 = vst.msk [vmem:[#allocation2 + $0x10] sm:$0xff] %vm1089_vm2, %v3099_v38 }
  0x44   : > { %v1150_v9 = vunpack.c.l.bf16 %v1149_v7  ;;  %v1151_v10 = vld [vmem:[%s1072_s28] sm:$0x1]  ;;  %v1196_v13 = vsub.f32 1.0, %v1192_v5  ;;  %1142 = sst [smem:[#allocation5 + $0xe]] %s3098_s23  ;;  %1094 = vst.msk [vmem:[#allocation3] sm:$0xff] %vm1093_vm3, %v3099_v38 }
  0x45   : > { %v1193_v11 = vld [vmem:[%s1081_s4] sm:$0x1]  ;;  %v1152_v14 = vunpack.c.l.bf16 %v1151_v10  ;;  %1144 = sst [smem:[#allocation5 + $0xf]] %s3098_s23  ;;  %1095 = vst.msk [vmem:[#allocation3 + $0x8] sm:$0xff] %vm1093_vm3, %v3099_v38 }
  0x46   : > { %v1194_v15 = vunpack.c.l.bf16 %v1193_v11  ;;  %v1153_v16 = vld [vmem:[%s1075_s16] sm:$0x1]  ;;  %v1197_v18 = vperm.slane %v1196_v13, 0  ;;  %v1155_v19 = vsub.f32 %v1148_v8, %v1150_v9  ;;  %1146 = sst [smem:[#allocation5 + $0x10]] %s3098_s23  ;;  %1096 = vst.msk [vmem:[#allocation3 + $0x10] sm:$0xff] %vm1093_vm3, %v3099_v38 }
  0x47   : > { %v1154_v17 = vunpack.c.l.bf16 %v1153_v16  ;;  %v1156_v20 = vsub.f32 1.0, %v1152_v14  ;;  %1097 = vst.msk [vmem:[#allocation3 + $0x18] sm:$0xff] %vm1093_vm3, %v3099_v38 }
  0x48   : > { %v1212_v21 = vmul.f32 %v1194_v15, %v1192_v5  ;;  %v1198_v23 = vmul.f32 %v1197_v18, %v1195_v12  ;;  %1098 = vst.msk [vmem:[#allocation3 + $0x20] sm:$0xff] %vm1093_vm3, %v3099_v38 }
  0x49   : > { %v1172_v22 = vmul.f32 %v1154_v17, %v1152_v14  ;;  %v1157_v24 = vperm.slane %v1156_v20, 0  ;;  %1099 = vst.msk [vmem:[#allocation3 + $0x28] sm:$0xff] %vm1093_vm3, %v3099_v38 }
  0x4a   : > { %v1213_v25 = vperm.slane %v1212_v21, 0  ;;  %v1199_v27 = vand.u32 2147483647, %v1198_v23  ;;  %1101 = vst.msk [vmem:[#allocation4] sm:$0xff] %vm1100_vm4, %v3099_v38 }
  0x4b   : > { %v1173_v26 = vperm.slane %v1172_v22, 0  ;;  %v1158_v28 = vmul.f32 %v1157_v24, %v1155_v19  ;;  %1102 = vst.msk [vmem:[#allocation4 + $0x8] sm:$0xff] %vm1100_vm4, %v3099_v38 }
  0x4c   : > { %v1214_v29 = vmul.f32 %v1213_v25, %v1195_v12  ;;  %v1201_v30 = vsel %vm1200_vm0, %v1199_v27, 0.0  ;;  %1103 = vst.msk [vmem:[#allocation4 + $0x10] sm:$0xff] %vm1100_vm4, %v3099_v38 }
  0x4d   : > { %v1159_v31 = vand.u32 2147483647, %v1158_v28  ;;  %v1174_v32 = vmul.f32 %v1173_v26, %v1155_v19  ;;  %1202 = vadd.xlane.f32.xlu1 %v1201_v30  ;;  %1104 = vst.msk [vmem:[#allocation4 + $0x18] sm:$0xff] %vm1100_vm4, %v3099_v38 }
  0x4e   : > { %v1215_v34 = vand.u32 2147483647, %v1214_v29  ;;  %1105 = vst.msk [vmem:[#allocation4 + $0x20] sm:$0xff] %vm1100_vm4, %v3099_v38 }
  0x4f   : > { %v1161_v33 = vsel %vm1160_vm1, %v1159_v31, 0.0  ;;  %v1175_v35 = vand.u32 2147483647, %v1174_v32  ;;  %1106 = vst.msk [vmem:[#allocation4 + $0x28] sm:$0xff] %vm1100_vm4, %v3099_v38 }
  0x50   : > { %1162 = vadd.xlane.f32.xlu0 %v1161_v33  ;;  %v1216_v36 = vsel %vm1200_vm0, %v1215_v34, 0.0  ;;  %1107 = vst.msk [vmem:[#allocation4 + $0x30] sm:$0xff] %vm1100_vm4, %v3099_v38 }
  0x51   : > { %v1176_v37 = vsel %vm1160_vm1, %v1175_v35, 0.0  ;;  %1108 = vst.msk [vmem:[#allocation4 + $0x38] sm:$0xff] %vm1100_vm4, %v3099_v38 }
  0x52   : > { %1109 = vst.msk [vmem:[#allocation4 + $0x40] sm:$0xff] %vm1100_vm4, %v3099_v38 }
  0x53   : > { %1110 = vst.msk [vmem:[#allocation4 + $0x48] sm:$0xff] %vm1100_vm4, %v3099_v38 }
  0x54   : > { %1111 = vst.msk [vmem:[#allocation4 + $0x50] sm:$0xff] %vm1100_vm4, %v3099_v38 }
  0x55   : > { %1217 = vadd.xlane.f32.xlu1 %v1216_v36  ;;  %1112 = vst.msk [vmem:[#allocation4 + $0x58] sm:$0xff] %vm1100_vm4, %v3099_v38 }
  0x58   : > { %1177 = vadd.xlane.f32.xlu0 %v1176_v37 }
  0xc0   : > { %v1203_v39 = vpop.xlane.xlu1 %1202 }
  0xc1   : > { %v1204_v40 = vrot.slane %v1203_v39, 4 }
  0xc3   : > { %v1163_v41 = vpop.xlane.xlu0 %1162  ;;  %v1205_v44 = vadd.f32 %v1204_v40, %v1203_v39 }
  0xc4   : > { %v1164_v42 = vrot.slane %v1163_v41, 4 }
  0xc5   : > { %v1206_v49 = vrot.slane %v1205_v44, 2 }
  0xc6   : > { %v1165_v43 = vadd.f32 %v1164_v42, %v1163_v41 }
  0xc7   : > { %v1207_v57 = vadd.f32 %v1206_v49, %v1205_v44 }
  0xc8   : > { %v1166_v45 = vrot.slane %v1165_v43, 2  ;;  %v1218_v46 = vpop.xlane.xlu1 %1217 }
  0xc9   : > { %v1219_v47 = vrot.slane %v1218_v46, 4  ;;  %v1208_v62 = vrot.slane %v1207_v57, 1 }
  0xca   : > { %v1167_v48 = vadd.f32 %v1166_v45, %v1165_v43 }
  0xcb   : > { %v1178_v50 = vpop.xlane.xlu0 %1177  ;;  %v1220_v51 = vadd.f32 %v1219_v47, %v1218_v46  ;;  %v1209_v2 = vadd.f32 %v1208_v62, %v1207_v57 }
  0xcc   : > { %v1179_v52 = vrot.slane %v1178_v50, 4  ;;  %v1168_v53 = vrot.slane %v1167_v48, 1 }
  0xcd   : > { %v1221_v54 = vrot.slane %v1220_v51, 2 }
  0xce   : > { %v1180_v55 = vadd.f32 %v1179_v52, %v1178_v50  ;;  %v1169_v56 = vadd.f32 %v1168_v53, %v1167_v48 }
  0xcf   : > { %v1222_v58 = vadd.f32 %v1221_v54, %v1220_v51 }
  0xd0   : > { %v1181_v59 = vrot.slane %v1180_v55, 2  ;;  %2929 = vpush %v1169_v56 }
  0xd1   : > { %v1223_v61 = vrot.slane %v1222_v58, 1 }
  0xd2   : > { %v1182_v60 = vadd.f32 %v1181_v59, %v1180_v55 }
  0xd3   : > { %v1224_v1 = vadd.f32 %v1223_v61, %v1222_v58 }
  0xd4   : > { %v1183_v63 = vrot.slane %v1182_v60, 1 }
  0xd6   : > { %v1184_v0 = vadd.f32 %v1183_v63, %v1182_v60 }
  0xd8   : > { %2931 = vpush %v1184_v0 }
  0xd9   : > { %2933 = vpush %v1209_v2 }
  0xda   : > { %2935 = vpush %v1224_v1 }
 0x101   : > { %s2930_s3 = spop %2929 }
 0x102   : > { %1171 = sst [smem:[#allocation5 + $0x7]] %s2930_s3 }
 0x109   : > { %s2932_s28 = spop %2931 }
 0x10a   : > { %1186 = sst [smem:[#allocation5 + $0x8]] %s2932_s28  ;;  %s2934_s1 = spop %2933 }
 0x10b   : > { %1211 = sst [smem:[#allocation5 + $0x9]] %s2934_s1  ;;  %s2936_s7 = spop %2935 }
 0x10c   : > { %1226 = sst [smem:[#allocation5 + $0xa]] %s2936_s7 }
 0x10d PF: > { %s4004_s26 = sld [smem:[#allocation13_spill]]  ;;  %v1235_v4 = vld [vmem:[%s1055_s19] sm:$0x1]  ;;  %v3100_v12 = vmov 0   ;;  %vm1257_vm5 = vcmask 1043456   ;;  %vm1402_vm6 = vcmask 31744  }
 0x10e   : > { %s4007_s14 = sld [smem:[#allocation12_spill]]  ;;  %v3373_v6 = vunpack.c.l.bf16 %v1235_v4  ;;  %v1237_v7 = vld [vmem:[%s1062_s18] sm:$0x1]  ;;  %3038 = vset.pattern.permute.xlu0 %v3100_v12  ;;  %3039 = vset.pattern.permute.xlu1 %v3100_v12  ;;  %s3101_s21 = smov 32   ;;  %vm1652_vm7 = vcmask 261120   ;;  %vm1654_vm8 = vcmask 523264  }
 0x10f   : > { %v3380_v9 = vunpack.c.l.bf16 %v1237_v7  ;;  %s4010_s17 = sld [smem:[#allocation26_spill]]  ;;  %3040 = vset.pattern.permute.xlu2 %v3100_v12  ;;  %s3102_s20 = smov 64   ;;  %vm1666_vm9 = vcmask 64512   ;;  %vm1934_vm10 = vcmask 195584   ;;  %vm2034_vm11 = vcmask 392192  }
 0x110   : > { %s4011_s3 = sld [smem:[#allocation32_spill]]  ;;  %v1249_v17 = vsub.f32 1.0, %v3373_v6  ;;  %v1247_v21 = vperm.slane %v3373_v6, 0  ;;  %vm1807_vm12 = vcmask 130048   ;;  %s3107_s7 = smov 112   ;;  %vm1344_vm1 = vcmask 1040384  }
 0x111   : > { %v1241_v15 = vperm.slane %v3380_v9, 0  ;;  %v1243_v16 = vsub.f32 1.0, %v3380_v9  ;;  %s4012_s13 = sld [smem:[#allocation14_spill]]  ;;  %vm2239_vm2 = vcmask 785408  }
 0x112   : > { %v3401_v24 = vperm.slane %v1249_v17, 0  ;;  %s4014_s5 = sld [smem:[#allocation25_spill]] }
 0x113   : > { %s4005_s22 = scalar_lea.vmem %s4004_s26, %s3290_s30  ;;  %v1244_v20 = vperm.slane %v1243_v16, 0  ;;  %s4015_s28 = sld [smem:[#allocation33_spill]] }
 0x114   : > { %v1229_v3 = vld [vmem:[%s4005_s22] sm:$0x3]  ;;  %s4008_s8 = scalar_lea.vmem %s4007_s14, %s3290_s30  ;;  %s4016_s16 = sld [smem:[#allocation28_spill]] }
 0x115   : > { %v1227_v5 = vld [vmem:[%s4008_s8] sm:$0x3]  ;;  %v1230_v8 = vunpack.c.l.bf16 %v1229_v3  ;;  %s4017_s8 = sld [smem:[#allocation27_spill]]  ;;  %s3105_s26 = smov 8  }
 0x116   : > { %v1390_v10 = vld [vmem:[%s4010_s17] sm:$0xff]  ;;  %v1567_v11 = vld [vmem:[%s4011_s3 + $0x78] sm:$0xff]  ;;  %v1566_v13 = vld [vmem:[%s4011_s3 + $0x70] sm:$0xff]  ;;  %v1228_v14 = vunpack.c.l.bf16 %v1227_v5  ;;  %s4018_s1 = sld [smem:[#allocation30_spill]] }
 0x117   : > { %1604 = vmatpush.msra.mxu0 %v1567_v11  ;;  %1394 = vperm.xlu0 %3038, %v1390_v10   ;;  %v1565_v18 = vld [vmem:[%s4011_s3 + $0x68] sm:$0xff]  ;;  %v1242_v19 = vmul.f32 %v1241_v15, %v1230_v8  ;;  %v1564_v22 = vld [vmem:[%s4011_s3 + $0x60] sm:$0xff]  ;;  %v1563_v25 = vld [vmem:[%s4011_s3 + $0x58] sm:$0xff]  ;;  %s4013_s14 = scalar_lea.vmem %s4012_s13, %s3290_s30  ;;  %s4019_s13 = sld [smem:[#allocation29_spill]] }
 0x118   : > { %v1245_v23 = vmul.f32 %v1244_v20, %v1228_v14  ;;  %v1248_v27 = vmul.f32 %v1247_v21, %v1228_v14  ;;  %v1562_v28 = vld [vmem:[%s4011_s3 + $0x50] sm:$0xff]  ;;  %v1231_v29 = vld [vmem:[%s4013_s14] sm:$0x3]  ;;  %v1561_v32 = vld [vmem:[%s4011_s3 + $0x48] sm:$0xff]  ;;  %s4021_s27 = sld [smem:[#allocation15_spill]] }
 0x119   : > { %1605 = vmatpush.msra.mxu0 %v1566_v13  ;;  %v1388_v31 = vld [vmem:[%s4014_s5] sm:$0xff]  ;;  %v3427_v34 = vunpack.c.l.bf16 %v1231_v29  ;;  %v1559_v36 = vld [vmem:[%s4011_s3 + $0x38] sm:$0xff]  ;;  %v1558_v37 = vld [vmem:[%s4011_s3 + $0x30] sm:$0xff]  ;;  %s2827_s19 = sld [smem:[#allocation5 + $0x4]] }
 0x11a   : > { %v3406_v26 = vadd.f32 %v1245_v23, %v1242_v19  ;;  %v1560_v35 = vld [vmem:[%s4011_s3 + $0x40] sm:$0xff]  ;;  %v1557_v38 = vld [vmem:[%s4011_s3 + $0x28] sm:$0xff]  ;;  %v1555_v41 = vld [vmem:[%s4011_s3 + $0x18] sm:$0xff]  ;;  %s2828_s23 = sld [smem:[#allocation5 + $0x5]] }
 0x11b   : > { %1606 = vmatpush.msra.mxu0 %v1565_v18  ;;  %v1389_v39 = vld [vmem:[%s4014_s5 + $0x8] sm:$0x1]  ;;  %v1556_v40 = vld [vmem:[%s4011_s3 + $0x20] sm:$0xff]  ;;  %v1554_v42 = vld [vmem:[%s4011_s3 + $0x10] sm:$0xff]  ;;  %s2829_s18 = sld [smem:[#allocation5 + $0x6]] }
 0x11c   : > { %v1251_v30 = vmul.f32 %v3401_v24, %v3406_v26  ;;  %2834 = vmatpush.msk.msra.mxu3 %vm1257_vm5, %v3406_v26  ;;  %v1553_v43 = vld [vmem:[%s4011_s3 + $0x8] sm:$0xff]  ;;  %v1552_v44 = vld [vmem:[%s4011_s3] sm:$0xff]  ;;  %v1571_v59 = vld [vmem:[%s4015_s28 + $0x18] sm:$0xff]  ;;  %s2831_s11 = sld [smem:[#allocation5 + $0xb]] }
 0x11d   : > { %1607 = vmatpush.msra.mxu0 %v1564_v22  ;;  %2835 = vmatmul.msk.f32.vlgmr.msra.gmra.mxu3 %vm1402_vm6, %v1388_v31  ;;  %v1570_v60 = vld [vmem:[%s4015_s28 + $0x10] sm:$0xff]  ;;  %v1569_v61 = vld [vmem:[%s4015_s28 + $0x8] sm:$0xff]  ;;  %v1568_v62 = vld [vmem:[%s4015_s28] sm:$0xff]  ;;  %s2832_s6 = sld [smem:[#allocation5 + $0xc]] }
 0x11e   : > { %v1252_v33 = vadd.f32 %v1251_v30, %v1248_v27  ;;  %1584 = vmatpush.msrb.mxu3 %v1567_v11  ;;  %v1574_v63 = vld [vmem:[%s4016_s16] sm:$0xff]  ;;  %v1575_v0 = vld [vmem:[%s4016_s16 + $0x8] sm:$0xff]  ;;  %v1583_v19 = vld [vmem:[%s4018_s1 + $0x18] sm:$0xff]  ;;  %s4022_s4 = scalar_lea.vmem %s4021_s27, %s3290_s30  ;;  %s2826_s30 = sld [smem:[#allocation5 + $0x3]] }
 0x11f   : > { %1608 = vmatpush.msra.mxu0 %v1563_v25  ;;  %1663 = vperm.xlu2 %3040, %v1575_v0   ;;  %v1572_v7 = vld [vmem:[%s4017_s8] sm:$0xff]  ;;  %v1573_v10 = vld [vmem:[%s4017_s8 + $0x8] sm:$0xff]  ;;  %s2844_s25 = sld [smem:[#allocation5 + $0x1]] }
 0x120   : > { %2837 = vmatpush.msk.msra.mxu2 %vm1257_vm5, %v1252_v33  ;;  %1585 = vmatpush.msrb.mxu3 %v1566_v13  ;;  %v1580_v20 = vld [vmem:[%s4018_s1] sm:$0xff]  ;;  %s3818_s29 = sld [smem:[#allocation5 + $0x2]] }
 0x121   : > { %1609 = vmatpush.msra.mxu0 %v1562_v28  ;;  %2838 = vmatmul.msk.f32.vlgmr.msra.gmra.mxu2 %vm1402_vm6, %v1388_v31  ;;  %v1902_v29 = vld [vmem:[#allocation2] sm:$0xff]  ;;  %s3820_s14 = sld [smem:[#allocation5 + $0xe]] }
 0x122   : > { %2840 = vmatpush.msk.msrb.mxu2 %vm1257_vm5, %v3427_v34  ;;  %1586 = vmatpush.msrb.mxu3 %v1565_v18 }
 0x123   : > { %1610 = vmatpush.msra.mxu0 %v1561_v32 }
 0x124   : > { %1624 = vmatpush.msra.mxu2 %v1567_v11  ;;  %1587 = vmatpush.msrb.mxu3 %v1564_v22 }
 0x125   : > { %1611 = vmatpush.msra.mxu0 %v1560_v35  ;;  %2836 = vmatmul.msk.f32.gmra.mxu3 %vm1402_vm6, %v1389_v39 }
 0x126   : > { %1625 = vmatpush.msra.mxu2 %v1566_v13  ;;  %1588 = vmatpush.msrb.mxu3 %v1563_v25 }
 0x127   : > { %1612 = vmatpush.msra.mxu0 %v1559_v36 }
 0x128   : > { %1626 = vmatpush.msra.mxu2 %v1565_v18  ;;  %1589 = vmatpush.msrb.mxu3 %v1562_v28 }
 0x129   : > { %1613 = vmatpush.msra.mxu0 %v1558_v37  ;;  %2839 = vmatmul.msk.f32.gmra.mxu2 %vm1402_vm6, %v1389_v39 }
 0x12a   : > { %1627 = vmatpush.msra.mxu2 %v1564_v22  ;;  %1590 = vmatpush.msrb.mxu3 %v1561_v32 }
 0x12b   : > { %1614 = vmatpush.msra.mxu0 %v1557_v38 }
 0x12c   : > { %1628 = vmatpush.msra.mxu2 %v1563_v25  ;;  %1591 = vmatpush.msrb.mxu3 %v1560_v35 }
 0x12d   : > { %1615 = vmatpush.msra.mxu0 %v1556_v40 }
 0x12e   : > { %1629 = vmatpush.msra.mxu2 %v1562_v28  ;;  %1592 = vmatpush.msrb.mxu3 %v1559_v36 }
 0x12f   : > { %1616 = vmatpush.msra.mxu0 %v1555_v41 }
 0x130   : > { %1630 = vmatpush.msra.mxu2 %v1561_v32  ;;  %1593 = vmatpush.msrb.mxu3 %v1558_v37  ;;  %v1903_v32 = vld [vmem:[#allocation2 + $0x8] sm:$0xff] }
 0x131   : > { %1617 = vmatpush.msra.mxu0 %v1554_v42  ;;  %2841 = vmatmul.msk.f32.vlgmr.msrb.gmra.mxu2 %vm1402_vm6, %v1388_v31 }
 0x132   : > { %1631 = vmatpush.msra.mxu2 %v1560_v35  ;;  %1594 = vmatpush.msrb.mxu3 %v1557_v38 }
 0x133   : > { %1618 = vmatpush.msra.mxu0 %v1553_v43 }
 0x134   : > { %1632 = vmatpush.msra.mxu2 %v1559_v36  ;;  %1595 = vmatpush.msrb.mxu3 %v1556_v40  ;;  %v1904_v36 = vld [vmem:[#allocation2 + $0x10] sm:$0xff] }
 0x135   : > { %1619 = vmatpush.msra.mxu0 %v1552_v44 }
 0x136   : > { %1633 = vmatpush.msra.mxu2 %v1558_v37  ;;  %1596 = vmatpush.msrb.mxu3 %v1555_v41 }
 0x137   : > { %1778 = vmatpush.msrb.mxu0 %v1571_v59 }
 0x138   : > { %1634 = vmatpush.msra.mxu2 %v1557_v38  ;;  %1597 = vmatpush.msrb.mxu3 %v1554_v42 }
 0x139   : > { %2842 = vmatmul.msk.f32.gmra.mxu2 %vm1402_vm6, %v1389_v39  ;;  %1779 = vmatpush.msrb.mxu0 %v1570_v60 }
 0x13a   : > { %1635 = vmatpush.msra.mxu2 %v1556_v40  ;;  %1598 = vmatpush.msrb.mxu3 %v1553_v43 }
 0x13b   : > { %1780 = vmatpush.msrb.mxu0 %v1569_v61 }
 0x13c   : > { %1636 = vmatpush.msra.mxu2 %v1555_v41  ;;  %1599 = vmatpush.msrb.mxu3 %v1552_v44 }
 0x13d   : > { %1781 = vmatpush.msrb.mxu0 %v1568_v62 }
 0x13e   : > { %1637 = vmatpush.msra.mxu2 %v1554_v42  ;;  %1747 = vmatpush.msra.mxu3 %v1571_v59 }
 0x140   : > { %1638 = vmatpush.msra.mxu2 %v1553_v43  ;;  %1748 = vmatpush.msra.mxu3 %v1570_v60 }
 0x142   : > { %1639 = vmatpush.msra.mxu2 %v1552_v44  ;;  %1749 = vmatpush.msra.mxu3 %v1569_v61 }
 0x144   : > { %1750 = vmatpush.msra.mxu3 %v1568_v62 }
 0x179   : > { %v1664_v15 = vpop.permute.xlu2 %1663 }
 0x189   : > { %v1395_v45 = vpop.permute.xlu0 %1394 }
 0x1a0   : > { %v1435_v46 = vpop.f32.mrf.mxu3 }
 0x1a1   : > { %v1436_v47 = vadd.f32 %v1435_v46, %v1395_v45  ;;  %v1582_v46 = vld [vmem:[%s4018_s1 + $0x10] sm:$0xff] }
 0x1a3   : > { %v3467_v48 = vmax.f32 %v1436_v47, 0.0  ;;  %v1987_v47 = vld [vmem:[#allocation3] sm:$0xff] }
 0x1a4   : > { %v1458_v49 = vpop.f32.mrf.mxu2 }
 0x1a5   : > { %v1459_v50 = vadd.f32 %v1458_v49, %v1395_v45  ;;  %1600 = vmatmul.f32.vlgmr.msrb.gmra.mxu3 %v3467_v48 }
 0x1a7   : > { %v3470_v51 = vmax.f32 %v1459_v50, 0.0 }
 0x1a8   : > { %v3497_v1 = vpop.f32.mrf.mxu3 }
 0x1a9   : > { %1620 = vmatmul.f32.vlgmr.msra.gmra.mxu0 %v3470_v51 }
 0x1ac   : > { %v1461_v52 = vpop.f32.mrf.mxu2 }
 0x1ad   : > { %v1988_v52 = vld [vmem:[#allocation3 + $0x8] sm:$0xff] }
 0x1b4   : > { %v1480_v53 = vpop.f32.mrf.mxu2 }
 0x1b5   : > { %v1481_v54 = vadd.f32 %v1480_v53, %v1395_v45  ;;  %v1581_v45 = vld [vmem:[%s4018_s1 + $0x8] sm:$0xff] }
 0x1b7   : > { %v3473_v55 = vmax.f32 %v1481_v54, 0.0 }
 0x1b9   : > { %1640 = vmatmul.f32.vlgmr.msra.gmra.mxu2 %v3473_v55 }
 0x1bc   : > { %v3476_v57 = vpop.f32.mrf.mxu2 }
 0x226   : > { %v1621_v56 = vpop.f32.mrf.mxu0 }
 0x227   : > { %1645 = vrot.lane.b32.xlu0 %v1621_v56, %s3101_s21  ;;  %s3103_s21 = smov 96   ;;  %v1989_v56 = vld [vmem:[#allocation3 + $0x10] sm:$0xff] }
 0x228   : > { %v1601_v3 = vpop.f32.mrf.mxu3 }
 0x23c   : > { %v1641_v58 = vpop.f32.mrf.mxu2 }
 0x23d   : > { %1649 = vrot.lane.b32.xlu1 %v1641_v58, %s3102_s20 }
 0x245   : > { %1658 = vperm.xlu1 %3039, %v1574_v63   ;;  %v1991_v63 = vld [vmem:[#allocation3 + $0x20] sm:$0xff] }
 0x299   : > { %v1646_v2 = vpop.permute.xlu0 %1645 }
 0x29a   : > { %v1653_v4 = vsel %vm1652_vm7, %v1601_v3, %v1646_v2  ;;  %v1992_v3 = vld [vmem:[#allocation3 + $0x28] sm:$0xff] }
 0x2af   : > { %v1650_v5 = vpop.permute.xlu1 %1649 }
 0x2b0   : > { %v1655_v8 = vsel %vm1654_vm8, %v1653_v4, %v1650_v5 }
 0x2b1   : > { %1688 = vmatpush.msrb.mxu2 %v1655_v8 }
 0x2b2   : > { %2847 = vmatmul.msk.f32.vlgmr.msrb.gmra.mxu2 %vm1666_vm9, %v1572_v7 }
 0x2b3   : > { %1716 = vmatpush.msra.mxu2 %v1571_v59 }
 0x2b5   : > { %1717 = vmatpush.msra.mxu2 %v1570_v60  ;;  %v1990_v60 = vld [vmem:[#allocation3 + $0x18] sm:$0xff] }
 0x2b7   : > { %1718 = vmatpush.msra.mxu2 %v1569_v61  ;;  %v1659_v11 = vpop.permute.xlu1 %1658 }
 0x2b9   : > { %1719 = vmatpush.msra.mxu2 %v1568_v62 }
 0x2ba   : > { %2848 = vmatmul.msk.f32.gmra.mxu2 %vm1666_vm9, %v1573_v10 }
 0x2bb   : > { %1918 = vmatpush.xpose.msrb.mxu2 %v3473_v55 }
 0x2bf   : > { %1919 = vmatpush.xpose.msrb.mxu2 %v3470_v51 }
 0x2c3   : > { %1920 = vmatpush.xpose.msrb.mxu2 %v3467_v48 }
 0x335   : > { %v1690_v12 = vpop.f32.mrf.mxu2 }
 0x336   : > { %v1691_v13 = vadd.f32 %v1690_v12, %v1659_v11 }
 0x338   : > { %v3511_v14 = vmax.f32 %v1691_v13, 0.0 }
 0x33a   : > { %1758 = vrot.lane.b32.xlu0 %v3511_v14, %s3102_s20  ;;  %1727 = vrot.lane.b32.xlu2 %v3511_v14, %s3103_s21 }
 0x33b   : > { %2849 = vmatmul.msk.f32.vlgmr.msra.gmra.mxu2 %vm1652_vm7, %v3511_v14 }
 0x33d   : > { %v1693_v16 = vpop.f32.mrf.mxu2 }
 0x33e   : > { %v1694_v17 = vadd.f32 %v1693_v16, %v1664_v15 }
 0x340   : > { %v3519_v18 = vmax.f32 %v1694_v17, 0.0 }
 0x342   : > { %1729 = vrot.lane.b32.xlu1 %v3519_v18, %s3103_s21  ;;  %1760 = vrot.lane.b32.xlu2 %v3519_v18, %s3102_s20  ;;  %s3104_s20 = smov 16  }
 0x343   : > { %2850 = vmatmul.msk.f32.gmra.mxu2 %vm1652_vm7, %v3519_v18 }
 0x34a   : > { %1827 = vperm.xlu2 %3040, %v1583_v19   ;;  %v1576_v19 = vld [vmem:[%s4019_s13] sm:$0xff] }
 0x34b   : > { %1921 = vmatmul.f32.vlgmr.msrb.gmra.mxu2 %v3467_v48 }
 0x352   : > { %1812 = vperm.xlu2 %3040, %v1580_v20  }
 0x353   : > { %1924 = vmatmul.f32.gmra.mxu2 %v3470_v51 }
 0x35b   : > { %1927 = vmatmul.f32.gmra.mxu2 %v3473_v55 }
 0x394   : > { %v3536_v21 = vpop.permute.xlu2 %1727 }
 0x395   : > { %2851 = vmatmul.msk.f32.vlgmr.msra.gmra.mxu3 %vm1652_vm7, %v3536_v21 }
 0x39c   : > { %v3540_v22 = vpop.permute.xlu2 %1760 }
 0x39d   : > { %2861 = vmatpush.xpose.msk.msrb.mxu3 %vm1652_vm7, %v3540_v22 }
 0x3ac   : > { %v3544_v23 = vpop.permute.xlu0 %1758 }
 0x3ad   : > { %2853 = vmatmul.msk.f32.vlgmr.msrb.gmra.mxu0 %vm1652_vm7, %v3544_v23  ;;  %2862 = vmatpush.xpose.msk.msrb.mxu3 %vm1652_vm7, %v3544_v23 }
 0x3b4   : > { %v3550_v25 = vpop.permute.xlu1 %1729 }
 0x3b5   : > { %2854 = vmatmul.msk.f32.gmra.mxu0 %vm1652_vm7, %v3540_v22  ;;  %2852 = vmatmul.msk.f32.gmra.mxu3 %vm1652_vm7, %v3550_v25 }
 0x3b6   : > { %2863 = vmatpush.xpose.msk.msrb.mxu3 %vm1652_vm7, %v3550_v25 }
 0x3ba   : > { %2864 = vmatpush.xpose.msk.msrb.mxu3 %vm1652_vm7, %v3536_v21 }
 0x3be   : > { %v3560_v27 = vpop.f32.mrf.mxu2  ;;  %2865 = vmatpush.xpose.msk.msrb.mxu3 %vm1652_vm7, %v3519_v18 }
 0x3c2   : > { %2866 = vmatpush.xpose.msk.msrb.mxu3 %vm1652_vm7, %v3511_v14 }
 0x3c5   : > { %2867 = vmatmul.msk.f32.vlgmr.msrb.gmra.mxu3 %vm1652_vm7, %v3511_v14 }
 0x3c6   : > { %v3568_v28 = vpop.f32.mrf.mxu2 }
 0x3cd   : > { %2868 = vmatmul.msk.f32.gmra.mxu3 %vm1652_vm7, %v3519_v18 }
 0x3ce   : > { %v1922_v30 = vpop.f32.mrf.mxu2 }
 0x3cf   : > { %v1931_v31 = vadd.f32 %v1922_v30, %v1902_v29  ;;  %v1579_v29 = vld [vmem:[%s4019_s13 + $0x18] sm:$0xff] }
 0x3d1   : > { %1935 = vst.msk [vmem:[#allocation2] sm:$0xff] %vm1934_vm10, %v1931_v31  ;;  %v3106_v31 = vmov 1  }
 0x3d5   : > { %2869 = vmatmul.msk.f32.gmra.mxu3 %vm1652_vm7, %v3536_v21 }
 0x3d6   : > { %v1925_v33 = vpop.f32.mrf.mxu2 }
 0x3d7   : > { %v1932_v35 = vadd.f32 %v1925_v33, %v1903_v32 }
 0x3d9   : > { %1936 = vst.msk [vmem:[#allocation2 + $0x8] sm:$0xff] %vm1934_vm10, %v1932_v35 }
 0x3dd   : > { %2870 = vmatmul.msk.f32.gmra.mxu3 %vm1652_vm7, %v3550_v25 }
 0x3de   : > { %v1928_v37 = vpop.f32.mrf.mxu2 }
 0x3df   : > { %v1933_v38 = vadd.f32 %v1928_v37, %v1904_v36 }
 0x3e1   : > { %1937 = vst.msk [vmem:[#allocation2 + $0x10] sm:$0xff] %vm1934_vm10, %v1933_v38 }
 0x3e5   : > { %2871 = vmatmul.msk.f32.gmra.mxu3 %vm1652_vm7, %v3544_v23 }
 0x3ed   : > { %2872 = vmatmul.msk.f32.gmra.mxu3 %vm1652_vm7, %v3540_v22 }
 0x418   : > { %v1752_v40 = vpop.f32.mrf.mxu3 }
 0x42a   : > { %v1783_v39 = vpop.f32.mrf.mxu0 }
 0x432   : > { %v1786_v41 = vpop.f32.mrf.mxu0 }
 0x433   : > { %v3046_v42 = vpack.i.bf16 %v1783_v39, %v1786_v41  ;;  %v1828_v41 = vpop.permute.xlu2 %1827 }
 0x435   : > { %3047 = vrot.lane.b32.xlu1 %v3046_v42, %s3104_s20  ;;  %s3108_s20 = smov 120  }
 0x438   : > { %v1755_v43 = vpop.f32.mrf.mxu3 }
 0x439   : > { %v3041_v44 = vpack.i.bf16 %v1752_v40, %v1755_v43 }
 0x43b   : > { %3042 = vrot.lane.b32.xlu0 %v3041_v44, %s3105_s26  ;;  %s4020_s26 = sld [smem:[#allocation31_spill]] }
 0x43d   : > { %1817 = vperm.xlu1 %3039, %v1581_v45   ;;  %v1813_v45 = vpop.permute.xlu2 %1812 }
 0x443   : > { %1822 = vperm.xlu0 %3038, %v1582_v46  }
 0x445   : > { %3051 = vset.pattern.permute.xlu1 %v3106_v31 }
 0x448   : > { %v2010_v49 = vpop.f32.mrf.mxu3 }
 0x449   : > { %v2028_v50 = vadd.f32 %v2010_v49, %v1987_v47  ;;  %v1489_v49 = vld [vmem:[%s4020_s26] sm:$0x1] }
 0x44b   : > { %2035 = vst.msk [vmem:[#allocation3] sm:$0xff] %vm2034_vm11, %v2028_v50  ;;  %v1960_v50 = vsub.f32 %v3519_v18, %v3550_v25  ;;  %v1239_v25 = vld [vmem:[%s1069_s15] sm:$0x1] }
 0x450   : > { %v2013_v53 = vpop.f32.mrf.mxu3 }
 0x451   : > { %v2029_v54 = vadd.f32 %v2013_v53, %v1988_v52  ;;  %v1962_v52 = vand.u32 2147483647, %v1960_v50  ;;  %v1391_v53 = vld [vmem:[%s4010_s17 + $0x8] sm:$0x1] }
 0x453   : > { %2036 = vst.msk [vmem:[#allocation3 + $0x8] sm:$0xff] %vm2034_vm11, %v2029_v54  ;;  %v1959_v54 = vsub.f32 %v3511_v14, %v3536_v21 }
 0x458   : > { %v2016_v58 = vpop.f32.mrf.mxu3 }
 0x459   : > { %v2030_v59 = vadd.f32 %v2016_v58, %v1989_v56  ;;  %v1961_v56 = vand.u32 2147483647, %v1959_v54  ;;  %v1240_v58 = vunpack.c.l.bf16 %v1239_v25 }
 0x45b   : > { %2037 = vst.msk [vmem:[#allocation3 + $0x10] sm:$0xff] %vm2034_vm11, %v2030_v59  ;;  %v2830_v59 = vmul.f32 -1.442695, %v1240_v58 }
 0x45d   : > { %3052 = vpow2.f32 %v2830_v59 }
 0x460   : > { %v2019_v61 = vpop.f32.mrf.mxu3 }
 0x461   : > { %v2031_v62 = vadd.f32 %v2019_v61, %v1990_v60  ;;  %v3653_v61 = vsub.f32 %v3406_v26, %v3427_v34 }
 0x463   : > { %2038 = vst.msk [vmem:[#allocation3 + $0x18] sm:$0xff] %vm2034_vm11, %v2031_v62  ;;  %v3053_v60 = vpop.eup %3052  ;;  %v1255_v21 = vmul.f32 %v3653_v61, %v3401_v24 }
 0x464   : > { %v1325_v62 = vadd.f32 1.0, %v3053_v60 }
 0x466   : > { %3054 = vrcp.f32 %v1325_v62  ;;  %vm1331_vm13 = vweird.f32 %v1325_v62 }
 0x468   : > { %v2022_v0 = vpop.f32.mrf.mxu3 }
 0x469   : > { %v2032_v2 = vadd.f32 %v2022_v0, %v1991_v63  ;;  %v1256_v63 = vand.u32 2147483647, %v1255_v21  ;;  %v1233_v0 = vld [vmem:[%s4022_s4] sm:$0x3]  ;;  %s3822_s4 = sld [smem:[#allocation5 + $0xf]] }
 0x46b   : > { %2039 = vst.msk [vmem:[#allocation3 + $0x20] sm:$0xff] %vm2034_vm11, %v2032_v2  ;;  %v1258_v2 = vsel %vm1257_vm5, %v1256_v63, 0.0 }
 0x46c   : > { %v3055_v26 = vpop.eup %3054 }
 0x46d   : > { %vm1332_vm14 = vweird.f32 %v3055_v26 }
 0x46e   : > { %vm1333_vm15 = vmor %vm1331_vm13, %vm1332_vm14 }
 0x470   : > { %v2025_v4 = vpop.f32.mrf.mxu3 }
 0x471   : > { %v2033_v5 = vadd.f32 %v2025_v4, %v1992_v3  ;;  %v1234_v3 = vunpack.c.l.bf16 %v1233_v0 }
 0x473   : > { %2040 = vst.msk [vmem:[#allocation3 + $0x28] sm:$0xff] %vm2034_vm11, %v2033_v5  ;;  %v3664_v4 = vsub.f32 %v1234_v3, %v3427_v34  ;;  %v1335_v34 = vand.u32 2147483647, %v1325_v62 }
 0x475   : > { %v1291_v5 = vmul.f32 %v3664_v4, %v3401_v24  ;;  %vm1336_vm0 = vcmp.eq.f32.partialorder %v1335_v34, 8.507059e+37 }
 0x4a7   : > { %v3048_v7 = vpop.permute.xlu1 %3047 }
 0x4a8   : > { %v3049_v12 = vunpack.i.l.bf16 %v3048_v7  ;;  %v3050_v16 = vunpack.i.h.bf16 %v3048_v7  ;;  %v1327_v7 = vmul.f32 %v3055_v26, %v1325_v62 }
 0x4ad   : > { %v3043_v8 = vpop.permute.xlu0 %3042 }
 0x4ae   : > { %v3045_v10 = vunpack.i.h.bf16 %v3043_v8  ;;  %v3044_v11 = vunpack.i.l.bf16 %v3043_v8  ;;  %v1292_v8 = vand.u32 2147483647, %v1291_v5 }
 0x4af   : > { %v1818_v32 = vpop.permute.xlu1 %1817 }
 0x4b0   : > { %v1806_v13 = vsel %vm1666_vm9, %v3568_v28, %v3044_v11  ;;  %v1805_v15 = vsel %vm1666_vm9, %v3560_v27, %v3045_v10  ;;  %v1577_v28 = vld [vmem:[%s4019_s13 + $0x8] sm:$0xff]  ;;  %v1578_v27 = vld [vmem:[%s4019_s13 + $0x10] sm:$0xff]  ;;  %v1328_v10 = vsub.f32 1.0, %v1327_v7  ;;  %v1293_v11 = vsel %vm1257_vm5, %v1292_v8, 0.0 }
 0x4b1   : > { %v1809_v17 = vsel %vm1807_vm12, %v1806_v13, %v3049_v12  ;;  %v1808_v20 = vsel %vm1807_vm12, %v1805_v15, %v3050_v16  ;;  %v1337_v13 = vand.u32 2147483648, %v1325_v62  ;;  %v3671_v15 = vmul.f32 %v3380_v9, %v3373_v6 }
 0x4b2   : > { %1856 = vmatpush.msra.mxu1 %v1809_v17  ;;  %v1329_v12 = vmul.f32 %v3055_v26, %v1328_v10  ;;  %v1876_v8 = vsub.f32 %v3467_v48, %v3473_v55 }
 0x4b3   : > { %v1338_v17 = vor.u32 1.1754944e-38, %v1337_v13  ;;  %v1341_v24 = vsub.f32 1.0, %v3671_v15  ;;  %v1273_v25 = vperm.slane %v3671_v15, 0 }
 0x4b4   : > { %1857 = vmatpush.msra.mxu1 %v1808_v20  ;;  %v1330_v16 = vadd.f32 %v3055_v26, %v1329_v12  ;;  %v1877_v10 = vand.u32 2147483647, %v1876_v8  ;;  %v2142_v8 = vld [vmem:[#allocation4 + $0x20] sm:$0xff] }
 0x4b5   : > { %2855 = vmatmul.msk.f32.vlgmr.msra.gmra.mxu1 %vm1807_vm12, %v1576_v19  ;;  %v1823_v37 = vpop.permute.xlu0 %1822  ;;  %v1274_v58 = vmul.f32 %v1273_v25, %v3653_v61  ;;  %v1307_v61 = vmul.f32 %v3664_v4, %v1273_v25 }
 0x4b6   : > { %v1334_v19 = vsel %vm1333_vm15, %v3055_v26, %v1330_v16 }
 0x4b7   : > { %v1339_v20 = vsel %vm1336_vm0, %v1338_v17, %v1334_v19  ;;  %v1308_v19 = vand.u32 2147483647, %v1307_v61 }
 0x4b8   : > { %v1359_v9 = vmul.f32 %v1339_v20, %v1339_v20 }
 0x4bd   : > { %2856 = vmatmul.msk.f32.gmra.mxu1 %vm1807_vm12, %v1577_v28  ;;  %v1343_v28 = vmul.f32 %v1341_v24, %v1339_v20  ;;  %v1941_v20 = vsub.f32 %v3511_v14, %v3544_v23 }
 0x4c5   : > { %2857 = vmatmul.msk.f32.gmra.mxu1 %vm1807_vm12, %v1578_v27  ;;  %v1345_v27 = vsel %vm1344_vm1, %v1343_v28, 0.0 }
 0x4cd   : > { %2858 = vmatmul.msk.f32.gmra.mxu1 %vm1807_vm12, %v1579_v29 }
 0x532   : > { %v1859_v30 = vpop.f32.mrf.mxu1 }
 0x533   : > { %v1860_v46 = vadd.f32 %v1859_v30, %v1813_v45  ;;  %v1360_v30 = vsel %vm1344_vm1, %v1359_v9, 0.0 }
 0x535   : > { %v3627_v47 = vmax.f32 %v1860_v46, 0.0 }
 0x53a   : > { %v1862_v33 = vpop.f32.mrf.mxu1 }
 0x53b   : > { %v1863_v35 = vadd.f32 %v1862_v33, %v1818_v32  ;;  %v1374_v33 = vmul.f32 %v1341_v24, %v1341_v24 }
 0x53d   : > { %v3614_v36 = vmax.f32 %v1863_v35, 0.0 }
 0x53f   : > { %2048 = vrot.lane.b32.xlu2 %v3614_v36, %s3107_s7 }
 0x542   : > { %v1865_v38 = vpop.f32.mrf.mxu1 }
 0x543   : > { %v1866_v39 = vadd.f32 %v1865_v38, %v1823_v37  ;;  %v1375_v37 = vsel %vm1344_vm1, %v1374_v33, 0.0 }
 0x545   : > { %v3617_v40 = vmax.f32 %v1866_v39, 0.0 }
 0x547   : > { %2050 = vrot.lane.b32.xlu1 %v3617_v40, %s3107_s7  ;;  %2086 = vrot.lane.b32.xlu2 %v3617_v40, %s3108_s20 }
 0x54a   : > { %v1868_v42 = vpop.f32.mrf.mxu1 }
 0x54b   : > { %v1869_v43 = vadd.f32 %v1868_v42, %v1828_v41 }
 0x54d   : > { %v3622_v44 = vmax.f32 %v1869_v43, 0.0 }
 0x54f   : > { %2052 = vrot.lane.b32.xlu0 %v3622_v44, %s3107_s7  ;;  %2088 = vrot.lane.b32.xlu1 %v3622_v44, %s3108_s20 }
 0x557   : > { %2082 = vrot.lane.b32.xlu1 %v3627_v47, %s3108_s20  ;;  %2046 = vrot.lane.b32.xlu0 %v3627_v47, %s3107_s7 }
 0x55f   : > { %1498 = vperm.xlu1 %3051, %v1489_v49   ;;  %2084 = vrot.lane.b32.xlu0 %v3614_v36, %s3108_s20 }
 0x567   : > { %1967 = vrot.lane.b32.xlu1 %v1962_v52, %s3103_s21  ;;  %1492 = vperm.xlu0 %3038, %v1489_v49  }
 0x56f   : > { %1399 = vperm.xlu0 %3038, %v1391_v53  }
 0x570   : > { %1259 = vadd.xlane.f32.xlu2 %v1258_v2 }
 0x577   : > { %1965 = vrot.lane.b32.xlu0 %v1961_v56, %s3103_s21  ;;  %s2833_s21 = sld [smem:[#allocation5 + $0xd]] }
 0x578   : > { %1294 = vadd.xlane.f32.xlu2 %v1293_v11  ;;  %v1275_v11 = vand.u32 2147483647, %v1274_v58 }
 0x57a   : > { %v1276_v15 = vsel %vm1257_vm5, %v1275_v11, 0.0 }
 0x580   : > { %1346 = vadd.xlane.f32.xlu2 %v1345_v27  ;;  %v1942_v27 = vsub.f32 %v3519_v18, %v3540_v22  ;;  %v1887_v18 = vsub.f32 %v3470_v51, %v3473_v55 }
 0x582   : > { %v1944_v14 = vand.u32 2147483647, %v1942_v27  ;;  %v2143_v27 = vld [vmem:[#allocation4 + $0x28] sm:$0xff] }
 0x588   : > { %1361 = vadd.xlane.f32.xlu2 %v1360_v30  ;;  %v1309_v30 = vsel %vm1257_vm5, %v1308_v19, 0.0 }
 0x590   : > { %1376 = vadd.xlane.f32.xlu2 %v1375_v37  ;;  %v1943_v37 = vand.u32 2147483647, %v1941_v20 }
 0x592   : > { %v1945_v22 = vsel %vm1652_vm7, %v1943_v37, 0.0 }
 0x599   : > { %v3686_v35 = vpop.permute.xlu2 %2048 }
 0x59a   : > { %v2059_v9 = vsub.f32 %v3614_v36, %v3686_v35 }
 0x59c   : > { %v2063_v23 = vand.u32 2147483647, %v2059_v9 }
 0x5a1   : > { %v3700_v43 = vpop.permute.xlu2 %2086 }
 0x5a2   : > { %v2096_v45 = vsub.f32 %v3617_v40, %v3700_v43 }
 0x5a4   : > { %v2100_v50 = vand.u32 2147483647, %v2096_v45 }
 0x5b9   : > { %v3675_v29 = vpop.permute.xlu1 %2050 }
 0x5c1   : > { %v3678_v31 = vpop.permute.xlu0 %2052  ;;  %v3680_v32 = vpop.permute.xlu1 %2088 }
 0x5c2   : > { %2874 = vmatpush.xpose.msk.msra.mxu0 %vm1666_vm9, %v3678_v31  ;;  %2917 = vmatpush.xpose.msk.msrb.mxu1 %vm1666_vm9, %v3678_v31  ;;  %v2097_v54 = vsub.f32 %v3622_v44, %v3680_v32  ;;  %v2061_v45 = vsub.f32 %v3622_v44, %v3678_v31 }
 0x5c4   : > { %v2101_v60 = vand.u32 2147483647, %v2097_v54  ;;  %v2065_v51 = vand.u32 2147483647, %v2061_v45 }
 0x5c6   : > { %2875 = vmatpush.xpose.msk.msra.mxu0 %vm1666_vm9, %v3675_v29  ;;  %2918 = vmatpush.xpose.msk.msrb.mxu1 %vm1666_vm9, %v3675_v29 }
 0x5c9   : > { %v2083_v38 = vpop.permute.xlu1 %2082  ;;  %v3693_v39 = vpop.permute.xlu0 %2046 }
 0x5ca   : > { %2876 = vmatpush.xpose.msk.msra.mxu0 %vm1666_vm9, %v3686_v35  ;;  %2919 = vmatpush.xpose.msk.msrb.mxu1 %vm1666_vm9, %v3686_v35  ;;  %v2094_v41 = vsub.f32 %v3627_v47, %v2083_v38  ;;  %v2058_v28 = vsub.f32 %v3627_v47, %v3693_v39 }
 0x5cc   : > { %v2098_v42 = vand.u32 2147483647, %v2094_v41  ;;  %v1946_v41 = vsel %vm1652_vm7, %v1944_v14, 0.0 }
 0x5ce   : > { %2106 = vrot.lane.b32.xlu1 %v2098_v42, %s3108_s20  ;;  %2877 = vmatpush.xpose.msk.msra.mxu0 %vm1666_vm9, %v3693_v39 }
 0x5cf   : > { %2920 = vmatpush.xpose.msk.msrb.mxu1 %vm1666_vm9, %v3693_v39 }
 0x5d1   : > { %v2085_v46 = vpop.permute.xlu0 %2084  ;;  %v1499_v59 = vpop.permute.xlu1 %1498 }
 0x5d2   : > { %2878 = vmatpush.xpose.msk.msra.mxu0 %vm1666_vm9, %v3680_v32  ;;  %v2095_v49 = vsub.f32 %v3614_v36, %v2085_v46  ;;  %v1501_v62 = vperm.slane %v1499_v59, 0 }
 0x5d3   : > { %2921 = vmatpush.xpose.msk.msrb.mxu1 %vm1666_vm9, %v3680_v32 }
 0x5d4   : > { %v2099_v52 = vand.u32 2147483647, %v2095_v49 }
 0x5d6   : > { %2110 = vrot.lane.b32.xlu1 %v2100_v50, %s3108_s20  ;;  %2879 = vmatpush.xpose.msk.msra.mxu0 %vm1666_vm9, %v3700_v43  ;;  %v2071_v50 = vsel %vm1666_vm9, %v2065_v51, 0.0 }
 0x5d7   : > { %2922 = vmatpush.xpose.msk.msrb.mxu1 %vm1666_vm9, %v3700_v43  ;;  %2108 = vrot.lane.b32.xlu0 %v2099_v52, %s3108_s20 }
 0x5d9   : > { %v1493_v53 = vpop.permute.xlu0 %1492  ;;  %v1968_v13 = vpop.permute.xlu1 %1967 }
 0x5da   : > { %v1495_v56 = vperm.slane %v1493_v53, 0  ;;  %2880 = vmatpush.xpose.msk.msra.mxu0 %vm1666_vm9, %v2085_v46  ;;  %v1972_v17 = vsel %vm1652_vm7, %v1968_v13, 0.0 }
 0x5db   : > { %2923 = vmatpush.xpose.msk.msrb.mxu1 %vm1666_vm9, %v2085_v46 }
 0x5dc   : > { %v1496_v21 = vmul.f32 %v1495_v56, %v3373_v6 }
 0x5de   : > { %2881 = vmatpush.xpose.msk.msra.mxu0 %vm1666_vm9, %v2083_v38  ;;  %v1502_v0 = vadd.f32 %v1501_v62, %v1496_v21 }
 0x5df   : > { %2924 = vmatpush.xpose.msk.msrb.mxu1 %vm1666_vm9, %v2083_v38  ;;  %2112 = vrot.lane.b32.xlu0 %v2101_v60, %s3108_s20  ;;  %s3816_s20 = sld [smem:[#allocation5]] }
 0x5e1   : > { %v1400_v63 = vpop.permute.xlu0 %1399 }
 0x5e2   : > { %v1484_v2 = vadd.f32 %v3476_v57, %v1400_v63  ;;  %2882 = vmatpush.xpose.msk.msra.mxu0 %vm1666_vm9, %v3622_v44  ;;  %v1439_v6 = vadd.f32 %v3497_v1, %v1400_v63 }
 0x5e3   : > { %2925 = vmatpush.xpose.msk.msrb.mxu1 %vm1666_vm9, %v3622_v44 }
 0x5e4   : > { %v1504_v3 = vadd.f32 %v1502_v0, %v1484_v2  ;;  %v1503_v57 = vadd.f32 %v1502_v0, %v1439_v6 }
 0x5e6   : > { %2883 = vmatpush.xpose.msk.msra.mxu0 %vm1666_vm9, %v3617_v40  ;;  %v2843_v26 = vadd.f32 -1.0, %v1504_v3  ;;  %v1522_v1 = vmul.f32 %v1503_v57, %v1503_v57  ;;  %v2846_v34 = vadd.f32 -1.0, %v1503_v57 }
 0x5e7   : > { %2926 = vmatpush.xpose.msk.msrb.mxu1 %vm1666_vm9, %v3617_v40 }
 0x5e8   : > { %v1507_v5 = vmul.f32 %v2843_v26, %v2843_v26  ;;  %v1523_v4 = vsel %vm1344_vm1, %v1522_v1, 0.0  ;;  %v1538_v24 = vmul.f32 %v2846_v34, %v2846_v34 }
 0x5e9   : > { %v1966_v12 = vpop.permute.xlu0 %1965 }
 0x5ea   : > { %2884 = vmatpush.xpose.msk.msra.mxu0 %vm1666_vm9, %v3614_v36  ;;  %v1508_v7 = vsel %vm1344_vm1, %v1507_v5, 0.0  ;;  %v1971_v16 = vsel %vm1652_vm7, %v1966_v12, 0.0  ;;  %v1539_v33 = vsel %vm1344_vm1, %v1538_v24, 0.0  ;;  %v2139_v24 = vld [vmem:[#allocation4 + $0x8] sm:$0xff] }
 0x5eb   : > { %2927 = vmatpush.xpose.msk.msrb.mxu1 %vm1666_vm9, %v3614_v36  ;;  %1509 = vadd.xlane.f32.xlu2 %v1508_v7  ;;  %v1973_v48 = vadd.f32 %v1972_v17, %v1971_v16 }
 0x5ee   : > { %2885 = vmatpush.xpose.msk.msra.mxu0 %vm1666_vm9, %v3627_v47 }
 0x5ef   : > { %2928 = vmatpush.xpose.msk.msrb.mxu1 %vm1666_vm9, %v3627_v47 }
 0x5f1   : > { %2886 = vmatmul.msk.f32.vlgmr.msra.gmra.mxu0 %vm1666_vm9, %v3627_v47  ;;  %v2060_v47 = vsub.f32 %v3617_v40, %v3675_v29 }
 0x5f2   : > { %2890 = vmatmul.msk.f32.vlgmr.msrb.gmra.mxu1 %vm1666_vm9, %v2083_v38  ;;  %v2062_v38 = vand.u32 2147483647, %v2058_v28 }
 0x5f3   : > { %1524 = vadd.xlane.f32.xlu2 %v1523_v4  ;;  %v2064_v42 = vand.u32 2147483647, %v2060_v47  ;;  %v2138_v4 = vld [vmem:[#allocation4] sm:$0xff] }
 0x5f5   : > { %v2069_v55 = vsel %vm1666_vm9, %v2064_v42, 0.0 }
 0x5f9   : > { %2887 = vmatmul.msk.f32.gmra.mxu0 %vm1666_vm9, %v3614_v36  ;;  %v2066_v36 = vsel %vm1666_vm9, %v2062_v38, 0.0 }
 0x5fa   : > { %2891 = vmatmul.msk.f32.gmra.mxu1 %vm1666_vm9, %v2085_v46  ;;  %v2067_v46 = vsel %vm1666_vm9, %v2063_v23, 0.0 }
 0x5fb   : > { %1878 = vadd.xlane.f32.xlu2 %v1877_v10  ;;  %v2068_v49 = vadd.f32 %v2067_v46, %v2066_v36 }
 0x600   : > { %1277 = vadd.xlane.f32.xlu1 %v1276_v15 }
 0x601   : > { %2888 = vmatmul.msk.f32.gmra.mxu0 %vm1666_vm9, %v3617_v40  ;;  %v1888_v40 = vand.u32 2147483647, %v1887_v18 }
 0x602   : > { %2892 = vmatmul.msk.f32.gmra.mxu1 %vm1666_vm9, %v3700_v43  ;;  %v1947_v43 = vadd.f32 %v1946_v41, %v1945_v22 }
 0x603   : > { %1974 = vadd.xlane.f32.xlu2 %v1973_v48 }
 0x608   : > { %1540 = vadd.xlane.f32.xlu1 %v1539_v33 }
 0x609   : > { %1310 = vadd.xlane.f32.xlu0 %v1309_v30  ;;  %2889 = vmatmul.msk.f32.gmra.mxu0 %vm1666_vm9, %v3622_v44  ;;  %v1260_v44 = vpop.xlane.xlu2 %1259 }
 0x60a   : > { %2893 = vmatmul.msk.f32.gmra.mxu1 %vm1666_vm9, %v3680_v32  ;;  %v2070_v32 = vadd.f32 %v2069_v55, %v2068_v49  ;;  %v1261_v2 = vrot.slane %v1260_v44, 4 }
 0x60c   : > { %v2072_v52 = vadd.f32 %v2071_v50, %v2070_v32  ;;  %v1262_v61 = vadd.f32 %v1261_v2, %v1260_v44  ;;  %v2140_v32 = vld [vmem:[#allocation4 + $0x10] sm:$0xff] }
 0x60e   : > { %v1263_v3 = vrot.slane %v1262_v61, 2 }
 0x610   : > { %1948 = vadd.xlane.f32.xlu1 %v1947_v43  ;;  %v1264_v26 = vadd.f32 %v1263_v3, %v1262_v61 }
 0x611   : > { %1889 = vadd.xlane.f32.xlu0 %v1888_v40  ;;  %v1295_v53 = vpop.xlane.xlu2 %1294 }
 0x612   : > { %2894 = vmatmul.msk.f32.gmra.mxu1 %vm1666_vm9, %v3693_v39  ;;  %v1265_v5 = vrot.slane %v1264_v26, 1  ;;  %v1296_v1 = vrot.slane %v1295_v53, 4 }
 0x614   : > { %v1266_v57 = vadd.f32 %v1265_v5, %v1264_v26  ;;  %v1297_v11 = vadd.f32 %v1296_v1, %v1295_v53 }
 0x616   : > { %2937 = vpush %v1266_v57  ;;  %v1298_v16 = vrot.slane %v1297_v11, 2 }
 0x618   : > { %v1299_v23 = vadd.f32 %v1298_v16, %v1297_v11  ;;  %v2145_v16 = vld [vmem:[#allocation4 + $0x38] sm:$0xff] }
 0x619   : > { %2073 = vadd.xlane.f32.xlu0 %v2072_v52  ;;  %v1347_v39 = vpop.xlane.xlu2 %1346 }
 0x61a   : > { %2895 = vmatmul.msk.f32.gmra.mxu1 %vm1666_vm9, %v3686_v35  ;;  %v1348_v34 = vrot.slane %v1347_v39, 4  ;;  %v1300_v40 = vrot.slane %v1299_v23, 1 }
 0x61c   : > { %v1349_v37 = vadd.f32 %v1348_v34, %v1347_v39 }
 0x61e   : > { %v1350_v45 = vrot.slane %v1349_v37, 2 }
 0x621   : > { %v1362_v58 = vpop.xlane.xlu2 %1361 }
 0x622   : > { %2896 = vmatmul.msk.f32.gmra.mxu1 %vm1666_vm9, %v3675_v29  ;;  %v1363_v20 = vrot.slane %v1362_v58, 4 }
 0x624   : > { %v1364_v22 = vadd.f32 %v1363_v20, %v1362_v58 }
 0x626   : > { %v1365_v52 = vrot.slane %v1364_v22, 2 }
 0x62a   : > { %2897 = vmatmul.msk.f32.gmra.mxu1 %vm1666_vm9, %v3678_v31  ;;  %v1377_v31 = vpop.xlane.xlu2 %1376 }
 0x62b   : > { %v1378_v28 = vrot.slane %v1377_v31, 4 }
 0x62d   : > { %v1379_v36 = vadd.f32 %v1378_v28, %v1377_v31 }
 0x62f   : > { %v1380_v44 = vrot.slane %v1379_v36, 2 }
 0x631   : > { %v1381_v5 = vadd.f32 %v1380_v44, %v1379_v36 }
 0x633   : > { %v1382_v20 = vrot.slane %v1381_v5, 1 }
 0x640   : > { %v2107_v54 = vpop.permute.xlu1 %2106 }
 0x641   : > { %v2118_v59 = vsel %vm1666_vm9, %v2107_v54, 0.0  ;;  %v2144_v54 = vld [vmem:[#allocation4 + $0x30] sm:$0xff] }
 0x647   : > { %s2938_s9 = spop %2937 }
 0x648   : > { %v2111_v60 = vpop.permute.xlu1 %2110  ;;  %s1268_s15 = sadd.f32 %s2938_s9, %s2826_s30 }
 0x649   : > { %v2109_v56 = vpop.permute.xlu0 %2108  ;;  %v2121_v35 = vsel %vm1666_vm9, %v2111_v60, 0.0 }
 0x64a   : > { %v2119_v25 = vsel %vm1666_vm9, %v2109_v56, 0.0  ;;  %1270 = sst [smem:[#allocation5 + $0x3]] %s1268_s15 }
 0x64b   : > { %v2120_v62 = vadd.f32 %v2119_v25, %v2118_v59 }
 0x64d   : > { %v2122_v63 = vadd.f32 %v2121_v35, %v2120_v62 }
 0x651   : > { %v2113_v21 = vpop.permute.xlu0 %2112 }
 0x652   : > { %v2123_v29 = vsel %vm1666_vm9, %v2113_v21, 0.0 }
 0x653   : > { %v2124_v0 = vadd.f32 %v2123_v29, %v2122_v63  ;;  %v1301_v63 = vadd.f32 %v1300_v40, %v1299_v23  ;;  %v1351_v29 = vadd.f32 %v1350_v45, %v1349_v37 }
 0x655   : > { %2125 = vadd.xlane.f32.xlu1 %v2124_v0 }
 0x65e   : > { %v1510_v6 = vpop.xlane.xlu2 %1509 }
 0x65f   : > { %v1511_v9 = vrot.slane %v1510_v6, 4 }
 0x661   : > { %v1512_v41 = vadd.f32 %v1511_v9, %v1510_v6  ;;  %v1366_v6 = vadd.f32 %v1365_v52, %v1364_v22  ;;  %v2146_v52 = vld [vmem:[#allocation4 + $0x40] sm:$0xff] }
 0x663   : > { %v1513_v56 = vrot.slane %v1512_v41, 2 }
 0x665   : > { %v1514_v57 = vadd.f32 %v1513_v56, %v1512_v41 }
 0x666   : > { %v1525_v7 = vpop.xlane.xlu2 %1524 }
 0x667   : > { %v1526_v42 = vrot.slane %v1525_v7, 4  ;;  %v1515_v28 = vrot.slane %v1514_v57, 1 }
 0x669   : > { %v1527_v25 = vadd.f32 %v1526_v42, %v1525_v7  ;;  %v1383_v42 = vadd.f32 %v1382_v20, %v1381_v5  ;;  %v2149_v5 = vld [vmem:[#allocation4 + $0x58] sm:$0xff] }
 0x66b   : > { %v1528_v26 = vrot.slane %v1527_v25, 2 }
 0x66e   : > { %v2191_v10 = vpop.f32.mrf.mxu0  ;;  %v1879_v17 = vpop.xlane.xlu2 %1878 }
 0x66f   : > { %v2227_v12 = vadd.f32 %v2191_v10, %v2138_v4  ;;  %v2203_v13 = vpop.f32.mrf.mxu1  ;;  %v1880_v49 = vrot.slane %v1879_v17, 4  ;;  %v1352_v4 = vrot.slane %v1351_v29, 1 }
 0x670   : > { %v2231_v15 = vadd.f32 %v2203_v13, %v2142_v8  ;;  %v2141_v13 = vld [vmem:[#allocation4 + $0x18] sm:$0xff] }
 0x671   : > { %2240 = vst.msk [vmem:[#allocation4] sm:$0xff] %vm2239_vm2, %v2227_v12  ;;  %v1881_v0 = vadd.f32 %v1880_v49, %v1879_v17  ;;  %v1367_v17 = vrot.slane %v1366_v6, 1  ;;  %v1516_v49 = vadd.f32 %v1515_v28, %v1514_v57 }
 0x672   : > { %2244 = vst.msk [vmem:[#allocation4 + $0x20] sm:$0xff] %vm2239_vm2, %v2231_v15 }
 0x673   : > { %v1278_v48 = vpop.xlane.xlu1 %1277  ;;  %v1882_v8 = vrot.slane %v1881_v0, 2  ;;  %v1368_v36 = vadd.f32 %v1367_v17, %v1366_v6 }
 0x674   : > { %v1279_v19 = vrot.slane %v1278_v48, 4 }
 0x676   : > { %v1280_v30 = vadd.f32 %v1279_v19, %v1278_v48  ;;  %v2194_v33 = vpop.f32.mrf.mxu0  ;;  %v1975_v53 = vpop.xlane.xlu2 %1974 }
 0x677   : > { %v2228_v38 = vadd.f32 %v2194_v33, %v2139_v24  ;;  %v2206_v14 = vpop.f32.mrf.mxu1  ;;  %v1976_v31 = vrot.slane %v1975_v53, 4 }
 0x678   : > { %v1281_v47 = vrot.slane %v1280_v30, 2  ;;  %v2232_v18 = vadd.f32 %v2206_v14, %v2143_v27  ;;  %v1529_v27 = vadd.f32 %v1528_v26, %v1527_v25 }
 0x679   : > { %2241 = vst.msk [vmem:[#allocation4 + $0x8] sm:$0xff] %vm2239_vm2, %v2228_v38  ;;  %v1977_v10 = vadd.f32 %v1976_v31, %v1975_v53  ;;  %v1353_v38 = vadd.f32 %v1352_v4, %v1351_v29  ;;  %v2147_v29 = vld [vmem:[#allocation4 + $0x48] sm:$0xff] }
 0x67a   : > { %2245 = vst.msk [vmem:[#allocation4 + $0x28] sm:$0xff] %vm2239_vm2, %v2232_v18  ;;  %v1282_v43 = vadd.f32 %v1281_v47, %v1280_v30  ;;  %v1883_v18 = vadd.f32 %v1882_v8, %v1881_v0 }
 0x67b   : > { %v1541_v46 = vpop.xlane.xlu1 %1540  ;;  %v1978_v14 = vrot.slane %v1977_v10, 2 }
 0x67c   : > { %v1542_v51 = vrot.slane %v1541_v46, 4  ;;  %v1311_v55 = vpop.xlane.xlu0 %1310  ;;  %v1283_v50 = vrot.slane %v1282_v43, 1 }
 0x67d   : > { %v1312_v39 = vrot.slane %v1311_v55, 4  ;;  %v1979_v40 = vadd.f32 %v1978_v14, %v1977_v10 }
 0x67e   : > { %v1543_v58 = vadd.f32 %v1542_v51, %v1541_v46  ;;  %v2197_v59 = vpop.f32.mrf.mxu0  ;;  %v1284_v60 = vadd.f32 %v1283_v50, %v1282_v43  ;;  %v1530_v43 = vrot.slane %v1529_v27, 1  ;;  %v1884_v51 = vrot.slane %v1883_v18, 1 }
 0x67f   : > { %v1313_v62 = vadd.f32 %v1312_v39, %v1311_v55  ;;  %v2229_v35 = vadd.f32 %v2197_v59, %v2140_v32  ;;  %v2209_v21 = vpop.f32.mrf.mxu1 }
 0x680   : > { %v2233_v2 = vadd.f32 %v2209_v21, %v2144_v54  ;;  %2939 = vpush %v1284_v60  ;;  %v1544_v61 = vrot.slane %v1543_v58, 2  ;;  %v1531_v39 = vadd.f32 %v1530_v43, %v1529_v27  ;;  %v1885_v25 = vadd.f32 %v1884_v51, %v1883_v18 }
 0x681   : > { %v1314_v3 = vrot.slane %v1313_v62, 2  ;;  %2242 = vst.msk [vmem:[#allocation4 + $0x10] sm:$0xff] %vm2239_vm2, %v2229_v35  ;;  %v1980_v60 = vrot.slane %v1979_v40, 1 }
 0x682   : > { %2246 = vst.msk [vmem:[#allocation4 + $0x30] sm:$0xff] %vm2239_vm2, %v2233_v2  ;;  %v1545_v48 = vadd.f32 %v1544_v61, %v1543_v58 }
 0x683   : > { %v1949_v7 = vpop.xlane.xlu1 %1948  ;;  %2941 = vpush %v1301_v63  ;;  %v1315_v1 = vadd.f32 %v1314_v3, %v1313_v62  ;;  %v1981_v63 = vadd.f32 %v1980_v60, %v1979_v40  ;;  %v2148_v3 = vld [vmem:[#allocation4 + $0x50] sm:$0xff] }
 0x684   : > { %v1950_v11 = vrot.slane %v1949_v7, 4  ;;  %v1890_v12 = vpop.xlane.xlu0 %1889  ;;  %v1546_v41 = vrot.slane %v1545_v48, 1 }
 0x685   : > { %v1891_v15 = vrot.slane %v1890_v12, 4  ;;  %v1316_v34 = vrot.slane %v1315_v1, 1 }
 0x686   : > { %v1951_v19 = vadd.f32 %v1950_v11, %v1949_v7  ;;  %v2200_v24 = vpop.f32.mrf.mxu0  ;;  %v1547_v32 = vadd.f32 %v1546_v41, %v1545_v48 }
 0x687   : > { %v1892_v9 = vadd.f32 %v1891_v15, %v1890_v12  ;;  %v2230_v30 = vadd.f32 %v2200_v24, %v2141_v13  ;;  %v2212_v33 = vpop.f32.mrf.mxu1  ;;  %v1317_v37 = vadd.f32 %v1316_v34, %v1315_v1 }
 0x688   : > { %v1952_v23 = vrot.slane %v1951_v19, 2  ;;  %v2234_v47 = vadd.f32 %v2212_v33, %v2145_v16 }
 0x689   : > { %v1893_v22 = vrot.slane %v1892_v9, 2  ;;  %2243 = vst.msk [vmem:[#allocation4 + $0x18] sm:$0xff] %vm2239_vm2, %v2230_v30 }
 0x68a   : > { %2247 = vst.msk [vmem:[#allocation4 + $0x38] sm:$0xff] %vm2239_vm2, %v2234_v47  ;;  %v1953_v45 = vadd.f32 %v1952_v23, %v1951_v19 }
 0x68b   : > { %2943 = vpush %v1317_v37  ;;  %v1894_v46 = vadd.f32 %v1893_v22, %v1892_v9 }
 0x68c   : > { %2945 = vpush %v1353_v38  ;;  %v2074_v55 = vpop.xlane.xlu0 %2073  ;;  %v1954_v53 = vrot.slane %v1953_v45, 1 }
 0x68d   : > { %2947 = vpush %v1368_v36  ;;  %v2075_v50 = vrot.slane %v2074_v55, 4  ;;  %v1895_v44 = vrot.slane %v1894_v46, 1 }
 0x68e   : > { %2949 = vpush %v1383_v42  ;;  %v1955_v35 = vadd.f32 %v1954_v53, %v1953_v45 }
 0x68f   : > { %2951 = vpush %v1516_v49  ;;  %v2076_v54 = vadd.f32 %v2075_v50, %v2074_v55  ;;  %v2215_v56 = vpop.f32.mrf.mxu1  ;;  %v1896_v59 = vadd.f32 %v1895_v44, %v1894_v46 }
 0x690   : > { %2953 = vpush %v1531_v39  ;;  %v2235_v58 = vadd.f32 %v2215_v56, %v2146_v52 }
 0x691   : > { %2955 = vpush %v1547_v32  ;;  %v2077_v62 = vrot.slane %v2076_v54, 2 }
 0x692   : > { %2957 = vpush %v1885_v25 }
 0x693   : > { %v2078_v21 = vadd.f32 %v2077_v62, %v2076_v54  ;;  %2248 = vst.msk [vmem:[#allocation4 + $0x40] sm:$0xff] %vm2239_vm2, %v2235_v58 }
 0x694   : > { %2959 = vpush %v1896_v59 }
 0x695   : > { %2961 = vpush %v1955_v35  ;;  %v2079_v0 = vrot.slane %v2078_v21, 1 }
 0x696   : > { %2963 = vpush %v1981_v63 }
 0x697   : > { %v2218_v31 = vpop.f32.mrf.mxu1  ;;  %v2080_v2 = vadd.f32 %v2079_v0, %v2078_v21 }
 0x698   : > { %v2236_v61 = vadd.f32 %v2218_v31, %v2147_v29 }
 0x699   : > { %2965 = vpush %v2080_v2 }
 0x69a   : > { %2249 = vst.msk [vmem:[#allocation4 + $0x48] sm:$0xff] %vm2239_vm2, %v2236_v61 }
 0x69f   : > { %v2221_v6 = vpop.f32.mrf.mxu1 }
 0x6a0   : > { %v2237_v26 = vadd.f32 %v2221_v6, %v2148_v3 }
 0x6a2   : > { %2250 = vst.msk [vmem:[#allocation4 + $0x50] sm:$0xff] %vm2239_vm2, %v2237_v26 }
 0x6a7   : > { %v2224_v57 = vpop.f32.mrf.mxu1 }
 0x6a8   : > { %v2238_v7 = vadd.f32 %v2224_v57, %v2149_v5 }
 0x6aa   : > { %2251 = vst.msk [vmem:[#allocation4 + $0x58] sm:$0xff] %vm2239_vm2, %v2238_v7 }
 0x6b1   : > { %s2940_s7 = spop %2939 }
 0x6b2   : > { %s1286_s24 = sadd.f32 %s2940_s7, %s2827_s19 }
 0x6b4   : > { %1288 = sst [smem:[#allocation5 + $0x4]] %s1286_s24  ;;  %s2942_s26 = spop %2941 }
 0x6b5   : > { %s1303_s22 = sadd.f32 %s2942_s26, %s2828_s23 }
 0x6b7   : > { %1305 = sst [smem:[#allocation5 + $0x5]] %s1303_s22 }
 0x6bc   : > { %s2944_s27 = spop %2943 }
 0x6bd   : > { %s1319_s30 = sadd.f32 %s2944_s27, %s2829_s18  ;;  %s2946_s9 = spop %2945 }
 0x6be   : > { %s1355_s15 = sadd.f32 %s2946_s9, %s2831_s11  ;;  %s2948_s19 = spop %2947 }
 0x6bf   : > { %1321 = sst [smem:[#allocation5 + $0x6]] %s1319_s30  ;;  %s2950_s7 = spop %2949 }
 0x6c0   : > { %1357 = sst [smem:[#allocation5 + $0xb]] %s1355_s15  ;;  %s2952_s23 = spop %2951 }
 0x6c1   : > { %s1370_s24 = sadd.f32 %s2948_s19, %s2832_s6  ;;  %s2954_s26 = spop %2953 }
 0x6c2   : > { %s1385_s22 = sadd.f32 %s2950_s7, %s2833_s21  ;;  %s2956_s0 = spop %2955 }
 0x6c3   : > { %1372 = sst [smem:[#allocation5 + $0xc]] %s1370_s24  ;;  %s2958_s3 = spop %2957 }
 0x6c4   : > { %1387 = sst [smem:[#allocation5 + $0xd]] %s1385_s22 }
 0x6c5   : > { %s1518_s1 = sadd.f32 %s2952_s23, %s3816_s20  ;;  %s2960_s18 = spop %2959 }
 0x6c6   : > { %s1533_s5 = sadd.f32 %s2954_s26, %s2844_s25  ;;  %s2962_s11 = spop %2961 }
 0x6c7   : > { %1520 = sst [smem:[#allocation5]] %s1518_s1  ;;  %s2964_s9 = spop %2963 }
 0x6c8   : > { %1535 = sst [smem:[#allocation5 + $0x1]] %s1533_s5  ;;  %v2126_v1 = vpop.xlane.xlu1 %2125 }
 0x6c9   : > { %s1549_s27 = sadd.f32 %s2956_s0, %s3818_s29  ;;  %v2127_v4 = vrot.slane %v2126_v1, 4 }
 0x6ca   : > { %s1898_s30 = sadd.f32 %s2960_s18, %s2958_s3  ;;  %s2966_s5 = spop %2965 }
 0x6cb   : > { %1551 = sst [smem:[#allocation5 + $0x2]] %s1549_s27  ;;  %v2128_v8 = vadd.f32 %v2127_v4, %v2126_v1 }
 0x6cc   : > { %s1899_s6 = sadd.f32 %s3820_s14, %s1898_s30 }
 0x6cd   : > { %s1983_s21 = sadd.f32 %s2964_s9, %s2962_s11  ;;  %v2129_v10 = vrot.slane %v2128_v8, 2 }
 0x6ce   : > { %1901 = sst [smem:[#allocation5 + $0xe]] %s1899_s6 }
 0x6cf   : > { %s1984_s15 = sadd.f32 %s3822_s4, %s1983_s21  ;;  %v2130_v11 = vadd.f32 %v2129_v10, %v2128_v8 }
 0x6d0   : > { %s2873_s1 = sld [smem:[#allocation5 + $0x10]] }
 0x6d1   : > { %1986 = sst [smem:[#allocation5 + $0xf]] %s1984_s15  ;;  %v2131_v12 = vrot.slane %v2130_v11, 1 }
 0x6d2   : > { %s4023_s3 = sld [smem:[#allocation6_spill]] }
 0x6d3   : > { %v2132_v13 = vadd.f32 %v2131_v12, %v2130_v11 }
 0x6d5   : > { %2967 = vpush %v2132_v13 }
 0x6d8   : > { %p2898_p8 = scmp.ne.s32.totalorder %s4023_s3, 1 }
 0x6d9   : > { %s3109_s29 = smov (!%p2898_p8), 96   ;;  %s3110_s14 = smov (!%p2898_p8), 112  }
 0x6da   : > { %s3111_s4 = smov (!%p2898_p8), 120   ;;  %s3112_s19 = smov (!%p2898_p8), 64  }
 0x6db   : > { %s2900_s7 = sld [smem:[#allocation5 + $0xc]] (!%p2898_p8) }
 0x6dc   : > { %s2901_s23 = sld [smem:[#allocation5 + $0xd]] (!%p2898_p8) }
 0x6dd   : > { %s2485_s18 = sld [smem:[#allocation5]] (!%p2898_p8) }
 0x6de   : > { %s2902_s11 = sld [smem:[#allocation5 + $0x1]] (!%p2898_p8) }
 0x6df   : > { %s2903_s27 = sld [smem:[#allocation5 + $0x2]] (!%p2898_p8) }
 0x6e0   : > { %s2904_s30 = sld [smem:[#allocation5 + $0x3]] (!%p2898_p8) }
 0x6e1   : > { %s2464_s24 = sadd.f32 (!%p2898_p8), 0.001, %s2900_s7 }
 0x6e2   : > { %s2466_s26 = sadd.f32 (!%p2898_p8), 0.001, %s2901_s23 }
 0x6e3   : > { %s2905_s9 = sld [smem:[#allocation5 + $0x4]] (!%p2898_p8) }
 0x6e4   : > { %s2467_s22 = sadd.f32 (!%p2898_p8), %s2466_s26, %s2464_s24 }
 0x6e5   : > { %s2906_s6 = sld [smem:[#allocation5 + $0x5]] (!%p2898_p8) }
 0x6e6   : > { %s2907_s21 = sld [smem:[#allocation5 + $0x6]] (!%p2898_p8) }
 0x6e7   : > { %s2908_s15 = sld [smem:[#allocation5 + $0x7]] (!%p2898_p8) }
 0x706   : > { %s2968_s20 = spop %2967 }
 0x707   : > { %s2134_s25 = sadd.f32 %s2968_s20, %s2966_s5  ;;  %2255 = sbr.rel (%p2898_p8) target bundleno = 2250 (0x8ca), region = 128 }
 0x708   : > { %s2910_s5 = sld [smem:[#allocation5 + $0x9]] (!%p2898_p8) }
 0x709   : > { %s2135_s0 = sadd.f32 %s2873_s1, %s2134_s25 }
 0x70a   : > { %s2909_s1 = sld [smem:[#allocation5 + $0x8]] (!%p2898_p8) }
 0x70b   : > { %2137 = sst [smem:[#allocation5 + $0x10]] %s2135_s0 }
 0x70c   : > { %v2364_v15 = vld [vmem:[#allocation4 + $0x40] sm:$0xff]  ;;  %v2366_v16 = vld [vmem:[#allocation4 + $0x50] sm:$0xff]  ;;  %v2300_v34 = vld [vmem:[#allocation3 + $0x28] sm:$0xff]  ;;  %s2899_s20 = sld [smem:[#allocation5 + $0xb]] }
 0x70d   : > { %2408 = vrot.lane.b32.xlu0 %v2364_v15, %s3109_s29  ;;  %2412 = vrot.lane.b32.xlu1 %v2366_v16, %s3109_s29  ;;  %v2365_v17 = vld [vmem:[#allocation4 + $0x48] sm:$0xff]  ;;  %v2299_v48 = vld [vmem:[#allocation3 + $0x20] sm:$0xff]  ;;  %v2367_v19 = vld [vmem:[#allocation4 + $0x58] sm:$0xff]  ;;  %s2911_s0 = sld [smem:[#allocation5 + $0xa]] }
 0x70e   : > { %2327 = vrot.lane.b32.xlu2 %v2300_v34, %s3110_s14  ;;  %v2258_v24 = vld [vmem:[#allocation2 + $0x10] sm:$0xff]  ;;  %v2360_v30 = vld [vmem:[#allocation4 + $0x20] sm:$0xff]  ;;  %v2362_v14 = vld [vmem:[#allocation4 + $0x30] sm:$0xff]  ;;  %s2914_s7 = sld [smem:[#allocation5 + $0x10]] }
 0x70f   : > { %v2298_v20 = vld [vmem:[#allocation3 + $0x18] sm:$0xff]  ;;  %v2363_v42 = vld [vmem:[#allocation4 + $0x38] sm:$0xff]  ;;  %v2297_v45 = vld [vmem:[#allocation3 + $0x10] sm:$0xff] }
 0x710   : > { %v2361_v18 = vld [vmem:[#allocation4 + $0x28] sm:$0xff]  ;;  %v2257_v52 = vld [vmem:[#allocation2 + $0x8] sm:$0xff]  ;;  %v2256_v56 = vld [vmem:[#allocation2] sm:$0xff] }
 0x711   : > { %v2357_v35 = vld [vmem:[#allocation4 + $0x8] sm:$0xff]  ;;  %v2356_v21 = vld [vmem:[#allocation4] sm:$0xff]  ;;  %v2358_v31 = vld [vmem:[#allocation4 + $0x10] sm:$0xff] }
 0x712   : > { %v2359_v2 = vld [vmem:[#allocation4 + $0x18] sm:$0xff]  ;;  %v2295_v57 = vld [vmem:[#allocation3] sm:$0xff]  ;;  %s2462_s23 = smul.f32 2.0, %s2899_s20 }
 0x713   : > { %v2296_v5 = vld [vmem:[#allocation3 + $0x8] sm:$0xff] }
 0x715   : > { %2410 = vrot.lane.b32.xlu0 %v2365_v17, %s3109_s29  ;;  %2325 = vrot.lane.b32.xlu1 %v2299_v48, %s3110_s14 }
 0x716   : > { %2414 = vrot.lane.b32.xlu2 %v2367_v19, %s3109_s29 }
 0x71d   : > { %2275 = vrot.lane.b32.xlu0 %v2258_v24, %s3111_s4  ;;  %2372 = vrot.lane.b32.xlu1 %v2364_v15, %s3112_s19 }
 0x71e   : > { %2374 = vrot.lane.b32.xlu2 %v2365_v17, %s3112_s19 }
 0x725   : > { %2376 = vrot.lane.b32.xlu0 %v2366_v16, %s3112_s19  ;;  %2303 = vrot.lane.b32.xlu1 %v2299_v48, %s3109_s29 }
 0x726   : > { %2305 = vrot.lane.b32.xlu2 %v2300_v34, %s3109_s29 }
 0x72d   : > { %2378 = vrot.lane.b32.xlu0 %v2367_v19, %s3112_s19 }
 0x735   : > { %2260 = vrot.lane.b32.xlu0 %v2258_v24, %s3110_s14 }
 0x768   : > { %v2328_v28 = vpop.permute.xlu2 %2327 }
 0x769   : > { %v2332_v27 = vsub.f32 %v2298_v20, %v2328_v28 }
 0x76b   : > { %v2334_v9 = vand.u32 2147483647, %v2332_v27 }
 0x76d   : > { %2339 = vrot.lane.b32.xlu0 %v2334_v9, %s3110_s14 }
 0x770   : > { %v2415_v43 = vpop.permute.xlu2 %2414 }
 0x771   : > { %v2423_v49 = vsub.f32 %v2363_v42, %v2415_v43 }
 0x773   : > { %v2427_v32 = vand.u32 2147483647, %v2423_v49 }
 0x778   : > { %v2375_v63 = vpop.permute.xlu2 %2374 }
 0x779   : > { %v2385_v29 = vsub.f32 %v2357_v35, %v2375_v63 }
 0x77b   : > { %v2389_v3 = vand.u32 2147483647, %v2385_v29 }
 0x77d   : > { %v2393_v4 = vsel %vm1652_vm7, %v2389_v3, 0.0 }
 0x77f   : > { %v2409_v33 = vpop.permute.xlu0 %2408  ;;  %v2413_v37 = vpop.permute.xlu1 %2412 }
 0x780   : > { %v2420_v38 = vsub.f32 %v2360_v30, %v2409_v33  ;;  %v2422_v47 = vsub.f32 %v2362_v14, %v2413_v37  ;;  %v2306_v10 = vpop.permute.xlu2 %2305 }
 0x781   : > { %v2310_v11 = vsub.f32 %v2296_v5, %v2306_v10 }
 0x782   : > { %v2424_v23 = vand.u32 2147483647, %v2420_v38  ;;  %v2426_v36 = vand.u32 2147483647, %v2422_v47 }
 0x783   : > { %v2312_v34 = vand.u32 2147483647, %v2310_v11 }
 0x784   : > { %2432 = vrot.lane.b32.xlu1 %v2424_v23, %s3109_s29 }
 0x785   : > { %v2314_v24 = vsel %vm1807_vm12, %v2312_v34, 0.0 }
 0x787   : > { %v2411_v22 = vpop.permute.xlu0 %2410  ;;  %v2326_v46 = vpop.permute.xlu1 %2325 }
 0x788   : > { %v2421_v41 = vsub.f32 %v2361_v18, %v2411_v22  ;;  %v2331_v51 = vsub.f32 %v2297_v45, %v2326_v46 }
 0x78a   : > { %v2425_v40 = vand.u32 2147483647, %v2421_v41  ;;  %v2333_v50 = vand.u32 2147483647, %v2331_v51 }
 0x78c   : > { %2434 = vrot.lane.b32.xlu2 %v2425_v40, %s3109_s29  ;;  %2436 = vrot.lane.b32.xlu1 %v2426_v36, %s3109_s29 }
 0x78f   : > { %v2276_v55 = vpop.permute.xlu0 %2275  ;;  %v2373_v62 = vpop.permute.xlu1 %2372 }
 0x790   : > { %v2278_v44 = vsub.f32 %v2257_v52, %v2276_v55  ;;  %v2384_v0 = vsub.f32 %v2356_v21, %v2373_v62  ;;  %v2468_v21 = vstv %s2467_s22 }
 0x791   : > { %3056 = vrcp.f32 %v2468_v21  ;;  %vm2474_vm3 = vweird.f32 %v2468_v21 }
 0x792   : > { %v2279_v39 = vand.u32 2147483647, %v2278_v44  ;;  %v2388_v6 = vand.u32 2147483647, %v2384_v0 }
 0x794   : > { %2438 = vrot.lane.b32.xlu1 %v2427_v32, %s3109_s29  ;;  %2337 = vrot.lane.b32.xlu2 %v2333_v50, %s3110_s14  ;;  %v2392_v8 = vsel %vm1652_vm7, %v2388_v6, 0.0  ;;  %s2912_s14 = sld [smem:[#allocation5 + $0xe]] }
 0x795   : > { %v2394_v15 = vadd.f32 %v2393_v4, %v2392_v8 }
 0x797   : > { %v2377_v53 = vpop.permute.xlu0 %2376  ;;  %v2304_v7 = vpop.permute.xlu1 %2303 }
 0x798   : > { %v2386_v61 = vsub.f32 %v2358_v31, %v2377_v53  ;;  %v2309_v12 = vsub.f32 %v2295_v57, %v2304_v7  ;;  %v3057_v57 = vpop.eup %3056 }
 0x799   : > { %v2470_v11 = vmul.f32 %v3057_v57, %v2468_v21  ;;  %vm2475_vm4 = vweird.f32 %v3057_v57 }
 0x79a   : > { %v2390_v1 = vand.u32 2147483647, %v2386_v61  ;;  %v2311_v17 = vand.u32 2147483647, %v2309_v12  ;;  %vm2476_vm5 = vmor %vm2474_vm3, %vm2475_vm4 }
 0x79b   : > { %v2471_v34 = vsub.f32 1.0, %v2470_v11 }
 0x79c   : > { %2281 = vrot.lane.b32.xlu2 %v2279_v39, %s3111_s4  ;;  %v2395_v16 = vsel %vm1652_vm7, %v2390_v1, 0.0  ;;  %v2313_v20 = vsel %vm1807_vm12, %v2311_v17, 0.0  ;;  %s2913_s4 = sld [smem:[#allocation5 + $0xf]] }
 0x79d   : > { %v2396_v19 = vadd.f32 %v2395_v16, %v2394_v15  ;;  %v2315_v27 = vadd.f32 %v2314_v24, %v2313_v20  ;;  %v2480_v20 = vand.u32 2147483648, %v2468_v21 }
 0x79f   : > { %v2379_v54 = vpop.permute.xlu0 %2378 }
 0x7a0   : > { %v2387_v26 = vsub.f32 %v2359_v2, %v2379_v54 }
 0x7a2   : > { %v2391_v13 = vand.u32 2147483647, %v2387_v26 }
 0x7a4   : > { %v2397_v48 = vsel %vm1652_vm7, %v2391_v13, 0.0 }
 0x7a5   : > { %v2398_v28 = vadd.f32 %v2397_v48, %v2396_v19  ;;  %v2472_v48 = vmul.f32 %v3057_v57, %v2471_v34 }
 0x7a7   : > { %v2261_v25 = vpop.permute.xlu0 %2260 }
 0x7a8   : > { %v2263_v58 = vsub.f32 %v2256_v56, %v2261_v25 }
 0x7aa   : > { %v2264_v59 = vand.u32 2147483647, %v2263_v58 }
 0x7ac   : > { %v2265_v60 = vsel %vm1666_vm9, %v2264_v59, 0.0 }
 0x7ad   : > { %2266 = vadd.xlane.f32.xlu0 %v2265_v60 }
 0x7b5   : > { %2399 = vadd.xlane.f32.xlu0 %v2398_v28  ;;  %v2473_v28 = vadd.f32 %v3057_v57, %v2472_v48 }
 0x7c5   : > { %2316 = vadd.xlane.f32.xlu2 %v2315_v27  ;;  %v2478_v27 = vand.u32 2147483647, %v2468_v21 }
 0x7c7   : > { %vm2479_vm6 = vcmp.eq.f32.partialorder %v2478_v27, 8.507059e+37 }
 0x7df   : > { %v2340_v30 = vpop.permute.xlu0 %2339 }
 0x7e0   : > { %v2344_v33 = vsel %vm1807_vm12, %v2340_v30, 0.0 }
 0x7e6   : > { %v2435_v9 = vpop.permute.xlu2 %2434 }
 0x7e7   : > { %v2445_v41 = vsel %vm1652_vm7, %v2435_v9, 0.0 }
 0x7ee   : > { %v2338_v37 = vpop.permute.xlu2 %2337 }
 0x7ef   : > { %v2343_v38 = vsel %vm1807_vm12, %v2338_v37, 0.0  ;;  %v2477_v37 = vsel %vm2476_vm5, %v3057_v57, %v2473_v28 }
 0x7f0   : > { %v2345_v14 = vadd.f32 %v2344_v33, %v2343_v38  ;;  %v2481_v33 = vor.u32 1.1754944e-38, %v2480_v20 }
 0x7f2   : > { %2346 = vadd.xlane.f32.xlu2 %v2345_v14 }
 0x7f6   : > { %v2433_v23 = vpop.permute.xlu1 %2432  ;;  %v2282_v47 = vpop.permute.xlu2 %2281 }
 0x7f7   : > { %v2284_v18 = vsel %vm1666_vm9, %v2282_v47, 0.0  ;;  %v2444_v36 = vsel %vm1652_vm7, %v2433_v23, 0.0  ;;  %v2482_v23 = vsel %vm2479_vm6, %v2481_v33, %v2477_v37  ;;  %v2499_v47 = vlaneseq }
 0x7f8   : > { %2285 = vadd.xlane.f32.xlu1 %v2284_v18  ;;  %v2446_v43 = vadd.f32 %v2445_v41, %v2444_v36  ;;  %v2505_v41 = vstv %s2902_s11 }
 0x7f9   : > { %v3860_v18 = vand.u32 127, %v2499_v47 }
 0x7fb   : > { %vm2504_vm8 = vcmp.eq.s32.totalorder %v3860_v18, 1  ;;  %vm2507_vm9 = vcmp.eq.s32.totalorder %v3860_v18, 2  ;;  %vm2510_vm10 = vcmp.eq.s32.totalorder %v3860_v18, 3  ;;  %vm2513_vm11 = vcmp.eq.s32.totalorder %v3860_v18, 4 }
 0x7fc   : > { %vm2516_vm12 = vcmp.eq.s32.totalorder %v3860_v18, 5  ;;  %vm2519_vm13 = vcmp.eq.s32.totalorder %v3860_v18, 6  ;;  %vm2522_vm14 = vcmp.eq.s32.totalorder %v3860_v18, 7  ;;  %vm2525_vm15 = vcmp.eq.s32.totalorder %v3860_v18, 8 }
 0x7fd   : > { %vm2528_vm0 = vcmp.eq.s32.totalorder %v3860_v18, 9  ;;  %vm2531_vm1 = vcmp.eq.s32.totalorder %v3860_v18, 10  ;;  %vm2534_vm2 = vcmp.eq.s32.totalorder %v3860_v18, 11  ;;  %vm2537_vm3 = vcmp.eq.s32.totalorder %v3860_v18, 12 }
 0x7fe   : > { %v2437_v22 = vpop.permute.xlu1 %2436  ;;  %vm2540_vm4 = vcmp.eq.s32.totalorder %v3860_v18, 13  ;;  %vm2543_vm5 = vcmp.eq.s32.totalorder %v3860_v18, 14  ;;  %vm2546_vm6 = vcmp.eq.s32.totalorder %v3860_v18, 15 }
 0x7ff   : > { %v2447_v42 = vsel %vm1652_vm7, %v2437_v22, 0.0  ;;  %v2502_v22 = vstv %s2485_s18 }
 0x800   : > { %v2448_v45 = vadd.f32 %v2447_v42, %v2446_v43  ;;  %v2508_v43 = vstv %s2903_s27 }
 0x806   : > { %v2439_v46 = vpop.permute.xlu1 %2438 }
 0x807   : > { %v2449_v40 = vsel %vm1652_vm7, %v2439_v46, 0.0  ;;  %vm2501_vm7 = vcmp.eq.s32.totalorder %v3860_v18, 0  ;;  %v2511_v46 = vstv %s2904_s30 }
 0x808   : > { %v2450_v49 = vadd.f32 %v2449_v40, %v2448_v45  ;;  %v2503_v36 = vsel %vm2501_vm7, %v2502_v22, 0.0  ;;  %vm2549_vm7 = vcmp.eq.s32.totalorder %v3860_v18, 16 }
 0x809   : > { %v2506_v42 = vsel %vm2504_vm8, %v2505_v41, %v2503_v36  ;;  %vm2552_vm8 = vcmp.eq.s32.totalorder %v3860_v18, 17 }
 0x80a   : > { %2451 = vadd.xlane.f32.xlu1 %v2450_v49  ;;  %v2509_v45 = vsel %vm2507_vm9, %v2508_v43, %v2506_v42  ;;  %v2514_v49 = vstv %s2905_s9 }
 0x80b   : > { %v2512_v40 = vsel %vm2510_vm10, %v2511_v46, %v2509_v45 }
 0x820   : > { %v2267_v51 = vpop.xlane.xlu0 %2266 }
 0x821   : > { %v2268_v55 = vrot.slane %v2267_v51, 4 }
 0x823   : > { %v2269_v32 = vadd.f32 %v2268_v55, %v2267_v51  ;;  %v2515_v51 = vsel %vm2513_vm11, %v2514_v49, %v2512_v40  ;;  %v2517_v55 = vstv %s2906_s6 }
 0x825   : > { %v2270_v50 = vrot.slane %v2269_v32, 2 }
 0x827   : > { %v2271_v52 = vadd.f32 %v2270_v50, %v2269_v32  ;;  %v2518_v32 = vsel %vm2516_vm12, %v2517_v55, %v2515_v51  ;;  %v2520_v50 = vstv %s2907_s21  ;;  %s4024_s21 = sld [smem:[#allocation34_spill]] }
 0x828   : > { %v2400_v54 = vpop.xlane.xlu0 %2399 }
 0x829   : > { %v2272_v44 = vrot.slane %v2271_v52, 1  ;;  %v2401_v25 = vrot.slane %v2400_v54, 4 }
 0x82b   : > { %v2273_v53 = vadd.f32 %v2272_v44, %v2271_v52  ;;  %v2402_v35 = vadd.f32 %v2401_v25, %v2400_v54  ;;  %v2521_v52 = vsel %vm2519_vm13, %v2520_v50, %v2518_v32  ;;  %v2523_v44 = vstv %s2908_s15 }
 0x82d   : > { %2969 = vpush %v2273_v53  ;;  %v2403_v2 = vrot.slane %v2402_v35, 2  ;;  %v2524_v53 = vsel %vm2522_vm14, %v2523_v44, %v2521_v52 }
 0x82f   : > { %v2404_v5 = vadd.f32 %v2403_v2, %v2402_v35  ;;  %v2541_v35 = vstv %s2913_s4 }
 0x831   : > { %v2405_v10 = vrot.slane %v2404_v5, 1 }
 0x833   : > { %v2406_v16 = vadd.f32 %v2405_v10, %v2404_v5 }
 0x838   : > { %v2317_v39 = vpop.xlane.xlu2 %2316 }
 0x839   : > { %v2318_v56 = vrot.slane %v2317_v39, 4 }
 0x83b   : > { %v2319_v60 = vadd.f32 %v2318_v56, %v2317_v39  ;;  %v2526_v39 = vstv %s2909_s1  ;;  %v2529_v56 = vstv %s2910_s5  ;;  %s4025_s5 = sld [smem:[#allocation35_spill]] }
 0x83c   : > { %v2527_v54 = vsel %vm2525_vm15, %v2526_v39, %v2524_v53 }
 0x83d   : > { %v2320_v63 = vrot.slane %v2319_v60, 2  ;;  %v2530_v25 = vsel %vm2528_vm0, %v2529_v56, %v2527_v54 }
 0x83f   : > { %v2321_v3 = vadd.f32 %v2320_v63, %v2319_v60  ;;  %v2538_v60 = vstv %s2912_s14  ;;  %v2544_v63 = vstv %s2914_s7 }
 0x841   : > { %v2322_v1 = vrot.slane %v2321_v3, 1  ;;  %s4026_s20 = scalar_lea.vmem %s4025_s5, %s4039_s2 }
 0x843   : > { %v2323_v13 = vadd.f32 %v2322_v1, %v2321_v3 }
 0x85e   : > { %s3870_s25 = spop %2969 }
 0x865   : > { %v2347_v58 = vpop.xlane.xlu2 %2346 }
 0x866   : > { %v2348_v59 = vrot.slane %v2347_v58, 4 }
 0x868   : > { %v2349_v62 = vadd.f32 %v2348_v59, %v2347_v58  ;;  %v2532_v58 = vstv %s2911_s0 }
 0x869   : > { %v2533_v59 = vsel %vm2531_vm1, %v2532_v58, %v2530_v25 }
 0x86a   : > { %v2350_v0 = vrot.slane %v2349_v62, 2 }
 0x86b   : > { %v2286_v29 = vpop.xlane.xlu1 %2285 }
 0x86c   : > { %v2287_v31 = vrot.slane %v2286_v29, 4  ;;  %v2351_v6 = vadd.f32 %v2350_v0, %v2349_v62 }
 0x86e   : > { %v2288_v61 = vadd.f32 %v2287_v31, %v2286_v29  ;;  %v2352_v8 = vrot.slane %v2351_v6, 1 }
 0x870   : > { %v2289_v26 = vrot.slane %v2288_v61, 2  ;;  %v2353_v15 = vadd.f32 %v2352_v8, %v2351_v6  ;;  %v2555_v6 = vld [vmem:[%s4024_s21] sm:$0x1] }
 0x872   : > { %v2290_v7 = vadd.f32 %v2289_v26, %v2288_v61 }
 0x874   : > { %v2291_v4 = vrot.slane %v2290_v7, 1 }
 0x876   : > { %v2292_v12 = vadd.f32 %v2291_v4, %v2290_v7 }
 0x878   : > { %2971 = vpush %v2292_v12 }
 0x879   : > { %2973 = vpush %v2323_v13 }
 0x87a   : > { %2975 = vpush %v2353_v15 }
 0x87b   : > { %2977 = vpush %v2406_v16 }
 0x87d   : > { %v2452_v17 = vpop.xlane.xlu1 %2451 }
 0x87e   : > { %v2453_v19 = vrot.slane %v2452_v17, 4 }
 0x880   : > { %v2454_v24 = vadd.f32 %v2453_v19, %v2452_v17 }
 0x882   : > { %v2455_v9 = vrot.slane %v2454_v24, 2 }
 0x884   : > { %v2456_v30 = vadd.f32 %v2455_v9, %v2454_v24 }
 0x886   : > { %v2457_v38 = vrot.slane %v2456_v30, 1 }
 0x888   : > { %v2458_v14 = vadd.f32 %v2457_v38, %v2456_v30 }
 0x88a   : > { %2979 = vpush %v2458_v14 }
 0x88b   : > { %2981 = vpush %v2482_v23 }
 0x8a9   : > { %s3872_s3 = spop %2971 }
 0x8aa   : > { %s3875_s29 = spop %2973  ;;  %s2294_s11 = sadd.f32 %s3872_s3, %s3870_s25 }
 0x8ab   : > { %s3878_s19 = spop %2975 }
 0x8ac   : > { %s3880_s24 = spop %2977  ;;  %s2355_s27 = sadd.f32 %s3878_s19, %s3875_s29  ;;  %v2547_v31 = vstv %s2294_s11 }
 0x8ae   : > { %v2550_v61 = vstv %s2355_s27 }
 0x8bb   : > { %s2980_s26 = spop %2979 }
 0x8bc   : > { %s2982_s22 = spop %2981  ;;  %s2460_s30 = sadd.f32 %s2980_s26, %s3880_s24 }
 0x8bd   : > { %s2484_s18 = smul.f32 %s2982_s22, %s2462_s23 }
 0x8be   : > { %v2553_v26 = vstv %s2460_s30 }
 0x8bf   : > { %v2535_v62 = vstv %s2484_s18 }
 0x8c0   : > { %v2536_v21 = vsel %vm2534_vm2, %v2535_v62, %v2533_v59 }
 0x8c1   : > { %v2539_v29 = vsel %vm2537_vm3, %v2538_v60, %v2536_v21 }
 0x8c2   : > { %v2542_v0 = vsel %vm2540_vm4, %v2541_v35, %v2539_v29 }
 0x8c3   : > { %v2545_v2 = vsel %vm2543_vm5, %v2544_v63, %v2542_v0 }
 0x8c4   : > { %v2548_v3 = vsel %vm2546_vm6, %v2547_v31, %v2545_v2 }
 0x8c5   : > { %v2551_v5 = vsel %vm2549_vm7, %v2550_v61, %v2548_v3 }
 0x8c6   : > { %v2554_v57 = vsel %vm2552_vm8, %v2553_v26, %v2551_v5 }
 0x8c7   : > { %v2556_v7 = vmul.f32 %v2555_v6, %v2554_v57 }
 0x8c9   : > { %2557 = vst [vmem:[%s4026_s20] sm:$0x1] %v2556_v7 }
 0x8ca PF: > { %s4027_s25 = sld [smem:[#allocation9_spill]] }
 0x8cb   : > { %s4028_s29 = sld [smem:[#allocation7_spill]] }
 0x8cc   : > { %s4029_s2 = sld [smem:[#allocation8_spill]] }
 0x8cd   : > { %s4030_s6 = sld [smem:[#allocation10_spill]] }
 0x8ce   : > { %s4031_s30 = sld [smem:[#allocation11_spill]] }
 0x8d0   : > { %s35_s7 = sadd.s32 1, %s4027_s25  }
 0x8d1   : > { %p32_p9 = scmp.ge.s32.totalorder %s35_s7, 6  }
 0x8d3   :  { %34 = sbr.rel (!%p32_p9) target bundleno = 25 (0x19), region = 230 }

</bundles_post_ra>
